<compile_context>
chip_gen: v5e
topology: v5e:2x2
jax: 0.10.0
libtpu: 0.0.40
codegen_flags: <defaults>
</compile_context>

<pallas_src>
import math

import jax
import jax.numpy as jnp
from jax.experimental import pallas as pl
from jax.experimental.pallas import tpu as pltpu

HIDDEN_GRAPH = 128
NO_GRAPH_FEATURES = 128
LEAKY_SLOPE = 0.01       # torch.nn.LeakyReLU default
BN_EPS = 1e-5            # torch.nn.BatchNorm1d default
TILE_ROWS = 512          # row-chunk size (multiple of 128; K dim of MXU matmul)

_HI = jax.lax.Precision.HIGHEST


def _round_up(v, m):
    return (v + m - 1) // m * m


def _make_kernel(num_graphs, cn, ce, num_chunks):
    """Build the kernel closed over static grid / masking constants."""
    inv_g = 1.0 / float(num_graphs)

    def leaky(h):
        return jnp.where(h > 0, h, LEAKY_SLOPE * h)

    def kernel(seg_n_ref, seg_e_ref, x_ref, e_ref,
               w1a_ref, w1b_ref, b1_ref, g1_ref, be1_ref,
               w2_ref, b2_ref, g2_ref, be2_ref,
               w3_ref, b3_ref,
               o_ref, nacc_ref, eacc_ref):
        step = pl.program_id(0)
        g_pad = nacc_ref.shape[0]

        @pl.when(step == 0)
        def _():
            nacc_ref[...] = jnp.zeros_like(nacc_ref)
            eacc_ref[...] = jnp.zeros_like(eacc_ref)

        def accumulate(seg_ref, feat_ref, acc_ref):
            seg = seg_ref[...]                                        # [1, T] int32
            # one-hot scatter matrix (exact 0/1); padded rows have seg == g_pad
            # which never matches, so they contribute nothing.
            oh = (jax.lax.broadcasted_iota(jnp.int32, (g_pad, seg.shape[1]), 0)
                  == seg).astype(jnp.float32)                         # [Gp, T]
            acc_ref[...] += jnp.dot(oh, feat_ref[...],
                                    preferred_element_type=jnp.float32,
                                    precision=_HI)

        @pl.when(step < cn)
        def _():
            accumulate(seg_n_ref, x_ref, nacc_ref)

        @pl.when(step < ce)
        def _():
            accumulate(seg_e_ref, e_ref, eacc_ref)

        @pl.when(step == num_chunks - 1)
        def _():
            # BatchNorm1d (training-mode batch stats) over the *real* graph rows
            row_mask = (jax.lax.broadcasted_iota(jnp.int32, (g_pad, 1), 0)
                        < num_graphs)

            def bn(h, gamma_ref, beta_ref):
                hm = jnp.where(row_mask, h, 0.0)
                mean = jnp.sum(hm, axis=0, keepdims=True) * inv_g
                ex2 = jnp.sum(hm * hm, axis=0, keepdims=True) * inv_g
                var = ex2 - mean * mean
                return ((h - mean) * jax.lax.rsqrt(var + BN_EPS)
                        * gamma_ref[...] + beta_ref[...])

            # cat([node_agg, edge_agg], 1) @ W1^T == node_agg@W1a + edge_agg@W1b
            h = (jnp.dot(nacc_ref[...], w1a_ref[...],
                         preferred_element_type=jnp.float32, precision=_HI)
                 + jnp.dot(eacc_ref[...], w1b_ref[...],
                           preferred_element_type=jnp.float32, precision=_HI)
                 + b1_ref[...])
            h = bn(leaky(h), g1_ref, be1_ref)
            h = bn(leaky(jnp.dot(h, w2_ref[...],
                                 preferred_element_type=jnp.float32,
                                 precision=_HI)
                         + b2_ref[...]),
                   g2_ref, be2_ref)
            o_ref[...] = (jnp.dot(h, w3_ref[...],
                                  preferred_element_type=jnp.float32,
                                  precision=_HI)
                          + b3_ref[...])

    return kernel


def prepare_params(params, num_node_features):
    """One-time weight layout prep (transpose / split / bias reshape)."""
    w1, b1, g1, be1, w2, b2, g2, be2, w3, b3 = params
    w1t = w1.T
    return (w1t[:num_node_features], w1t[num_node_features:],
            b1.reshape(1, -1), g1.reshape(1, -1), be1.reshape(1, -1),
            w2.T, b2.reshape(1, -1), g2.reshape(1, -1), be2.reshape(1, -1),
            w3.T, b3.reshape(1, -1))


def global_model_forward(prepared, x, edge_index, edge_attr, u, batch, num_graphs,
                         tile_rows=TILE_ROWS):
    del u  # `u` is unused in the reference forward pass
    col = edge_index[1]
    seg_n = batch.astype(jnp.int32)
    seg_e = batch[col].astype(jnp.int32)         # glue gather: batch[col]

    n, fx = x.shape
    e, fe = edge_attr.shape
    g = int(num_graphs)
    g_pad = max(8, _round_up(g, 8))              # >= 8 sublanes for MLP / store

    cn = pl.cdiv(n, tile_rows)
    ce = pl.cdiv(e, tile_rows)
    num_chunks = max(cn, ce)
    n_pad = cn * tile_rows
    e_pad = ce * tile_rows

    # Pad rows to whole tiles; padded rows get an out-of-range segment id so the
    # one-hot drops them (matches segment_sum semantics).
    x_p = jnp.pad(x.astype(jnp.float32), ((0, n_pad - n), (0, 0)))
    ea_p = jnp.pad(edge_attr.astype(jnp.float32), ((0, e_pad - e), (0, 0)))
    seg_n_p = jnp.pad(seg_n, (0, n_pad - n), constant_values=g_pad).reshape(1, n_pad)
    seg_e_p = jnp.pad(seg_e, (0, e_pad - e), constant_values=g_pad).reshape(1, e_pad)

    args = (seg_n_p, seg_e_p, x_p, ea_p) + tuple(prepared)

    # Clamp the chunk index for the shorter stream so the auto-DMA stays in
    # bounds; its accumulate is gated off with pl.when inside the kernel.
    in_specs = [
        pl.BlockSpec((1, tile_rows), lambda i: (0, jnp.minimum(i, cn - 1))),
        pl.BlockSpec((1, tile_rows), lambda i: (0, jnp.minimum(i, ce - 1))),
        pl.BlockSpec((tile_rows, fx), lambda i: (jnp.minimum(i, cn - 1), 0)),
        pl.BlockSpec((tile_rows, fe), lambda i: (jnp.minimum(i, ce - 1), 0)),
    ] + [pl.BlockSpec(p.shape, lambda i: (0, 0)) for p in prepared]

    kernel = _make_kernel(g, cn, ce, num_chunks)

    out = pl.pallas_call(
        kernel,
        out_shape=jax.ShapeDtypeStruct((g_pad, NO_GRAPH_FEATURES), jnp.float32),
        grid_spec=pltpu.PrefetchScalarGridSpec(
            num_scalar_prefetch=0,
            grid=(num_chunks,),
            in_specs=in_specs,
            out_specs=pl.BlockSpec((g_pad, NO_GRAPH_FEATURES), lambda i: (0, 0)),
            scratch_shapes=[pltpu.VMEM((g_pad, fx), jnp.float32),
                            pltpu.VMEM((g_pad, fe), jnp.float32)]),
        compiler_params=pltpu.CompilerParams(
            dimension_semantics=("arbitrary",),        # reduction over row chunks
            vmem_limit_bytes=32 * 1024 * 1024),        # safe on v5e/v6e/v7x
    )(*args)
    # TODO(synk): add a core-parallel grid axis with per-core partial accumulators
    # to use the 2nd v7x TensorCore on the scatter phase.
    return out[:g]


# ---------------- deterministic parameter init (matches init_weights) ----------------
def _xavier_uniform(key, out_f, in_f):
    bound = math.sqrt(6.0 / (in_f + out_f))
    return jax.random.uniform(key, (out_f, in_f), jnp.float32, -bound, bound)


def init_params(key, in_features):
    k1, k2, k3 = jax.random.split(key, 3)
    w1 = _xavier_uniform(k1, HIDDEN_GRAPH, in_features)
    b1 = jnp.full((HIDDEN_GRAPH,), 0.01, jnp.float32)
    g1 = jnp.ones((HIDDEN_GRAPH,), jnp.float32)
    be1 = jnp.zeros((HIDDEN_GRAPH,), jnp.float32)
    w2 = _xavier_uniform(k2, HIDDEN_GRAPH, HIDDEN_GRAPH)
    b2 = jnp.full((HIDDEN_GRAPH,), 0.01, jnp.float32)
    g2 = jnp.ones((HIDDEN_GRAPH,), jnp.float32)
    be2 = jnp.zeros((HIDDEN_GRAPH,), jnp.float32)
    w3 = _xavier_uniform(k3, NO_GRAPH_FEATURES, HIDDEN_GRAPH)
    b3 = jnp.full((NO_GRAPH_FEATURES,), 0.01, jnp.float32)
    return (w1, b1, g1, be1, w2, b2, g2, be2, w3, b3)


# ---------------- pure-JAX reference for correctness check ----------------
def reference_forward(params, x, edge_index, edge_attr, u, batch, num_graphs):
    (w1, b1, g1, be1, w2, b2, g2, be2, w3, b3) = params
    col = edge_index[1]
    node_agg = jax.ops.segment_sum(x, batch, num_segments=num_graphs)
    edge_agg = jax.ops.segment_sum(edge_attr, batch[col], num_segments=num_graphs)
    h = jnp.concatenate([node_agg, edge_agg], axis=1)

    def bn(h, g, b):
        m = jnp.mean(h, axis=0, keepdims=True)
        v = jnp.mean((h - m) ** 2, axis=0, keepdims=True)
        return (h - m) / jnp.sqrt(v + BN_EPS) * g + b

    def lrelu(h):
        return jnp.where(h > 0, h, LEAKY_SLOPE * h)

    mm = lambda a, b: jnp.dot(a, b, precision=_HI)
    h = bn(lrelu(mm(h, w1.T) + b1), g1, be1)
    h = bn(lrelu(mm(h, w2.T) + b2), g2, be2)
    return mm(h, w3.T) + b3


if __name__ == "__main__":
    key = jax.random.PRNGKey(0)
    k_x, k_e, k_ei, k_u, k_p = jax.random.split(key, 5)

    # small but multi-chunk shapes: cn=3 node chunks, ce=5 edge chunks @ 512,
    # exercising the clamped / gated reduction grid and the G->8 padding.
    N, E, G = 1100, 2300, 6
    FX, FE = 32, 48

    x = jax.random.normal(k_x, (N, FX), jnp.float32)
    edge_attr = jax.random.normal(k_e, (E, FE), jnp.float32)
    edge_index = jax.random.randint(k_ei, (2, E), 0, N, jnp.int32)
    u = jax.random.normal(k_u, (G, 8), jnp.float32)        # unused by forward
    batch = (jnp.arange(N, dtype=jnp.int32) * G // N).astype(jnp.int32)

    params = init_params(k_p, FX + FE)
    prepared = prepare_params(params, FX)

    out = global_model_forward(prepared, x, edge_index, edge_attr, u, batch, G)
    out = jax.block_until_ready(out)

    ref = reference_forward(params, x, edge_index, edge_attr, u, batch, G)
    assert out.shape == (G, NO_GRAPH_FEATURES)
    assert jnp.allclose(out, ref, atol=5e-3, rtol=5e-3), (
        f"max abs diff {jnp.max(jnp.abs(out - ref))}")

    print("KERNEL_OK")
</pallas_src>

<mosaic_0001>
module attributes {stable_mosaic.version = 11 : i64} {
  func.func @kernel(%arg0: i32, %arg1: memref<1x512xi32, #tpu.memory_space<vmem>>, %arg2: memref<1x512xi32, #tpu.memory_space<vmem>>, %arg3: memref<512x32xf32, #tpu.memory_space<vmem>>, %arg4: memref<512x48xf32, #tpu.memory_space<vmem>>, %arg5: memref<32x128xf32, #tpu.memory_space<vmem>>, %arg6: memref<48x128xf32, #tpu.memory_space<vmem>>, %arg7: memref<1x128xf32, #tpu.memory_space<vmem>>, %arg8: memref<1x128xf32, #tpu.memory_space<vmem>>, %arg9: memref<1x128xf32, #tpu.memory_space<vmem>>, %arg10: memref<128x128xf32, #tpu.memory_space<vmem>>, %arg11: memref<1x128xf32, #tpu.memory_space<vmem>>, %arg12: memref<1x128xf32, #tpu.memory_space<vmem>>, %arg13: memref<1x128xf32, #tpu.memory_space<vmem>>, %arg14: memref<128x128xf32, #tpu.memory_space<vmem>>, %arg15: memref<1x128xf32, #tpu.memory_space<vmem>>, %arg16: memref<8x128xf32, #tpu.memory_space<vmem>>, %arg17: memref<8x32xf32, #tpu.memory_space<vmem>>, %arg18: memref<8x48xf32, #tpu.memory_space<vmem>>) attributes {dimension_semantics = [#tpu.dimension_semantics<arbitrary>], iteration_bounds = array<i64: 5>, scalar_prefetch = 0 : i64, scratch_operands = 2 : i64, tpu.core_type = #tpu.core_type<tc>, window_params = [{transform_indices = @transform_0, window_bounds = array<i64: 1, 512>}, {transform_indices = @transform_1, window_bounds = array<i64: 1, 512>}, {transform_indices = @transform_2, window_bounds = array<i64: 512, 32>}, {transform_indices = @transform_3, window_bounds = array<i64: 512, 48>}, {pipeline_mode = #tpu.pipeline_mode<synchronous>, transform_indices = @transform_4, window_bounds = array<i64: 32, 128>}, {pipeline_mode = #tpu.pipeline_mode<synchronous>, transform_indices = @transform_5, window_bounds = array<i64: 48, 128>}, {pipeline_mode = #tpu.pipeline_mode<synchronous>, transform_indices = @transform_6, window_bounds = array<i64: 1, 128>}, {pipeline_mode = #tpu.pipeline_mode<synchronous>, transform_indices = @transform_7, window_bounds = array<i64: 1, 128>}, {pipeline_mode = #tpu.pipeline_mode<synchronous>, transform_indices = @transform_8, window_bounds = array<i64: 1, 128>}, {pipeline_mode = #tpu.pipeline_mode<synchronous>, transform_indices = @transform_9, window_bounds = array<i64: 128, 128>}, {pipeline_mode = #tpu.pipeline_mode<synchronous>, transform_indices = @transform_10, window_bounds = array<i64: 1, 128>}, {pipeline_mode = #tpu.pipeline_mode<synchronous>, transform_indices = @transform_11, window_bounds = array<i64: 1, 128>}, {pipeline_mode = #tpu.pipeline_mode<synchronous>, transform_indices = @transform_12, window_bounds = array<i64: 1, 128>}, {pipeline_mode = #tpu.pipeline_mode<synchronous>, transform_indices = @transform_13, window_bounds = array<i64: 128, 128>}, {pipeline_mode = #tpu.pipeline_mode<synchronous>, transform_indices = @transform_14, window_bounds = array<i64: 1, 128>}, {pipeline_mode = #tpu.pipeline_mode<synchronous>, transform_indices = @transform_15, window_bounds = array<i64: 8, 128>}]} {
    %c0_i32 = arith.constant 0 : i32
    %0 = arith.cmpi eq, %arg0, %c0_i32 : i32
    %1 = arith.extui %0 : i1 to i32
    %c0_i32_0 = arith.constant 0 : i32
    %2 = arith.cmpi ne, %1, %c0_i32_0 : i32
    scf.if %2 {
      %cst = arith.constant 0.000000e+00 : f32
      %12 = vector.broadcast %cst : f32 to vector<8x32xf32>
      %c0 = arith.constant 0 : index
      %c0_4 = arith.constant 0 : index
      %13 = vector.load %arg17[%c0, %c0_4] : memref<8x32xf32, #tpu.memory_space<vmem>>, vector<8x32xf32>
      tpu.vector_store %arg17[%c0, %c0_4], %12 {strides = array<i32>} : memref<8x32xf32, #tpu.memory_space<vmem>>, vector<8x32xf32>,
      %cst_5 = arith.constant 0.000000e+00 : f32
      %14 = vector.broadcast %cst_5 : f32 to vector<8x48xf32>
      %c0_6 = arith.constant 0 : index
      %c0_7 = arith.constant 0 : index
      %15 = vector.load %arg18[%c0_6, %c0_7] : memref<8x48xf32, #tpu.memory_space<vmem>>, vector<8x48xf32>
      tpu.vector_store %arg18[%c0_6, %c0_7], %14 {strides = array<i32>} : memref<8x48xf32, #tpu.memory_space<vmem>>, vector<8x48xf32>,
    } else {
    }
    %c3_i32 = arith.constant 3 : i32
    %3 = arith.cmpi slt, %arg0, %c3_i32 : i32
    %4 = arith.extui %3 : i1 to i32
    %c0_i32_1 = arith.constant 0 : i32
    %5 = arith.cmpi ne, %4, %c0_i32_1 : i32
    scf.if %5 {
      %c0 = arith.constant 0 : index
      %c0_4 = arith.constant 0 : index
      %12 = vector.load %arg1[%c0, %c0_4] : memref<1x512xi32, #tpu.memory_space<vmem>>, vector<1x512xi32>
      %13 = tpu.iota {dimensions = array<i32: 0>} : vector<8x512xi32>
      %14 = vector.broadcast %12 : vector<1x512xi32> to vector<8x512xi32>
      %15 = arith.cmpi eq, %13, %14 : vector<8x512xi32>
      %16 = arith.extui %15 : vector<8x512xi1> to vector<8x512xi32>
      %17 = arith.sitofp %16 : vector<8x512xi32> to vector<8x512xf32>
      %c0_5 = arith.constant 0 : index
      %c0_6 = arith.constant 0 : index
      %18 = vector.load %arg17[%c0_5, %c0_6] : memref<8x32xf32, #tpu.memory_space<vmem>>, vector<8x32xf32>
      %c0_7 = arith.constant 0 : index
      %c0_8 = arith.constant 0 : index
      %19 = vector.load %arg3[%c0_7, %c0_8] : memref<512x32xf32, #tpu.memory_space<vmem>>, vector<512x32xf32>
      %cst = arith.constant dense<0.000000e+00> : vector<8x32xf32>
      %20 = tpu.matmul %17, %19, %cst {dimension_numbers = #tpu.dot_dimension_numbers<[1], [0], [0], [1], [0, 0, 1, 1], [], []>, precision = #tpu.contract_precision<fp32>} : vector<8x512xf32>, vector<512x32xf32>, vector<8x32xf32> -> vector<8x32xf32>
      %21 = arith.addf %18, %20 : vector<8x32xf32>
      %c0_9 = arith.constant 0 : index
      %c0_10 = arith.constant 0 : index
      %22 = vector.load %arg17[%c0_9, %c0_10] : memref<8x32xf32, #tpu.memory_space<vmem>>, vector<8x32xf32>
      tpu.vector_store %arg17[%c0_9, %c0_10], %21 {strides = array<i32>} : memref<8x32xf32, #tpu.memory_space<vmem>>, vector<8x32xf32>,
    } else {
    }
    %c5_i32 = arith.constant 5 : i32
    %6 = arith.cmpi slt, %arg0, %c5_i32 : i32
    %7 = arith.extui %6 : i1 to i32
    %c0_i32_2 = arith.constant 0 : i32
    %8 = arith.cmpi ne, %7, %c0_i32_2 : i32
    scf.if %8 {
      %c0 = arith.constant 0 : index
      %c0_4 = arith.constant 0 : index
      %12 = vector.load %arg2[%c0, %c0_4] : memref<1x512xi32, #tpu.memory_space<vmem>>, vector<1x512xi32>
      %13 = tpu.iota {dimensions = array<i32: 0>} : vector<8x512xi32>
      %14 = vector.broadcast %12 : vector<1x512xi32> to vector<8x512xi32>
      %15 = arith.cmpi eq, %13, %14 : vector<8x512xi32>
      %16 = arith.extui %15 : vector<8x512xi1> to vector<8x512xi32>
      %17 = arith.sitofp %16 : vector<8x512xi32> to vector<8x512xf32>
      %c0_5 = arith.constant 0 : index
      %c0_6 = arith.constant 0 : index
      %18 = vector.load %arg18[%c0_5, %c0_6] : memref<8x48xf32, #tpu.memory_space<vmem>>, vector<8x48xf32>
      %c0_7 = arith.constant 0 : index
      %c0_8 = arith.constant 0 : index
      %19 = vector.load %arg4[%c0_7, %c0_8] : memref<512x48xf32, #tpu.memory_space<vmem>>, vector<512x48xf32>
      %cst = arith.constant dense<0.000000e+00> : vector<8x48xf32>
      %20 = tpu.matmul %17, %19, %cst {dimension_numbers = #tpu.dot_dimension_numbers<[1], [0], [0], [1], [0, 0, 1, 1], [], []>, precision = #tpu.contract_precision<fp32>} : vector<8x512xf32>, vector<512x48xf32>, vector<8x48xf32> -> vector<8x48xf32>
      %21 = arith.addf %18, %20 : vector<8x48xf32>
      %c0_9 = arith.constant 0 : index
      %c0_10 = arith.constant 0 : index
      %22 = vector.load %arg18[%c0_9, %c0_10] : memref<8x48xf32, #tpu.memory_space<vmem>>, vector<8x48xf32>
      tpu.vector_store %arg18[%c0_9, %c0_10], %21 {strides = array<i32>} : memref<8x48xf32, #tpu.memory_space<vmem>>, vector<8x48xf32>,
    } else {
    }
    %c4_i32 = arith.constant 4 : i32
    %9 = arith.cmpi eq, %arg0, %c4_i32 : i32
    %10 = arith.extui %9 : i1 to i32
    %c0_i32_3 = arith.constant 0 : i32
    %11 = arith.cmpi ne, %10, %c0_i32_3 : i32
    scf.if %11 {
      %12 = tpu.iota {dimensions = array<i32: 0>} : vector<8x1xi32>
      %c6_i32 = arith.constant 6 : i32
      %13 = vector.broadcast %c6_i32 : i32 to vector<8x1xi32>
      %14 = arith.cmpi slt, %12, %13 : vector<8x1xi32>
      %c0 = arith.constant 0 : index
      %c0_4 = arith.constant 0 : index
      %15 = vector.load %arg17[%c0, %c0_4] : memref<8x32xf32, #tpu.memory_space<vmem>>, vector<8x32xf32>
      %c0_5 = arith.constant 0 : index
      %c0_6 = arith.constant 0 : index
      %16 = vector.load %arg5[%c0_5, %c0_6] : memref<32x128xf32, #tpu.memory_space<vmem>>, vector<32x128xf32>
      %cst = arith.constant dense<0.000000e+00> : vector<8x128xf32>
      %17 = tpu.matmul %15, %16, %cst {dimension_numbers = #tpu.dot_dimension_numbers<[1], [0], [0], [1], [0, 0, 1, 1], [], []>, precision = #tpu.contract_precision<fp32>} : vector<8x32xf32>, vector<32x128xf32>, vector<8x128xf32> -> vector<8x128xf32>
      %c0_7 = arith.constant 0 : index
      %c0_8 = arith.constant 0 : index
      %18 = vector.load %arg18[%c0_7, %c0_8] : memref<8x48xf32, #tpu.memory_space<vmem>>, vector<8x48xf32>
      %c0_9 = arith.constant 0 : index
      %c0_10 = arith.constant 0 : index
      %19 = vector.load %arg6[%c0_9, %c0_10] : memref<48x128xf32, #tpu.memory_space<vmem>>, vector<48x128xf32>
      %cst_11 = arith.constant dense<0.000000e+00> : vector<8x128xf32>
      %20 = tpu.matmul %18, %19, %cst_11 {dimension_numbers = #tpu.dot_dimension_numbers<[1], [0], [0], [1], [0, 0, 1, 1], [], []>, precision = #tpu.contract_precision<fp32>} : vector<8x48xf32>, vector<48x128xf32>, vector<8x128xf32> -> vector<8x128xf32>
      %21 = arith.addf %17, %20 : vector<8x128xf32>
      %c0_12 = arith.constant 0 : index
      %c0_13 = arith.constant 0 : index
      %22 = vector.load %arg7[%c0_12, %c0_13] : memref<1x128xf32, #tpu.memory_space<vmem>>, vector<1x128xf32>
      %23 = vector.broadcast %22 : vector<1x128xf32> to vector<8x128xf32>
      %24 = arith.addf %21, %23 : vector<8x128xf32>
      %cst_14 = arith.constant 0.000000e+00 : f32
      %25 = vector.broadcast %cst_14 : f32 to vector<8x128xf32>
      %26 = arith.cmpf ogt, %24, %25 : vector<8x128xf32>
      %cst_15 = arith.constant 0.00999999977 : f32
      %27 = vector.broadcast %cst_15 : f32 to vector<8x128xf32>
      %28 = arith.mulf %27, %24 : vector<8x128xf32>
      %29 = arith.select %26, %24, %28 : vector<8x128xi1>, vector<8x128xf32>
      %cst_16 = arith.constant 0.000000e+00 : f32
      %30 = vector.shape_cast %14 : vector<8x1xi1> to vector<8x1xi1>
      %31 = vector.broadcast %30 : vector<8x1xi1> to vector<8x128xi1>
      %32 = vector.broadcast %cst_16 : f32 to vector<8x128xf32>
      %33 = arith.select %31, %29, %32 : vector<8x128xi1>, vector<8x128xf32>
      %cst_17 = arith.constant dense<0.000000e+00> : vector<128xf32>
      %34 = vector.multi_reduction <add>, %33, %cst_17 [0] : vector<8x128xf32> to vector<128xf32>
      %35 = vector.shape_cast %34 : vector<128xf32> to vector<1x128xf32>
      %cst_18 = arith.constant 0.166666672 : f32
      %36 = vector.broadcast %cst_18 : f32 to vector<1x128xf32>
      %37 = arith.mulf %35, %36 : vector<1x128xf32>
      %38 = arith.mulf %33, %33 : vector<8x128xf32>
      %cst_19 = arith.constant dense<0.000000e+00> : vector<128xf32>
      %39 = vector.multi_reduction <add>, %38, %cst_19 [0] : vector<8x128xf32> to vector<128xf32>
      %40 = vector.shape_cast %39 : vector<128xf32> to vector<1x128xf32>
      %cst_20 = arith.constant 0.166666672 : f32
      %41 = vector.broadcast %cst_20 : f32 to vector<1x128xf32>
      %42 = arith.mulf %40, %41 : vector<1x128xf32>
      %43 = arith.mulf %37, %37 : vector<1x128xf32>
      %44 = arith.subf %42, %43 : vector<1x128xf32>
      %45 = vector.broadcast %37 : vector<1x128xf32> to vector<8x128xf32>
      %46 = arith.subf %29, %45 : vector<8x128xf32>
      %cst_21 = arith.constant 9.99999974E-6 : f32
      %47 = vector.broadcast %cst_21 : f32 to vector<1x128xf32>
      %48 = arith.addf %44, %47 : vector<1x128xf32>
      %49 = math.rsqrt %48 : vector<1x128xf32>
      %50 = vector.broadcast %49 : vector<1x128xf32> to vector<8x128xf32>
      %51 = arith.mulf %46, %50 : vector<8x128xf32>
      %c0_22 = arith.constant 0 : index
      %c0_23 = arith.constant 0 : index
      %52 = vector.load %arg8[%c0_22, %c0_23] : memref<1x128xf32, #tpu.memory_space<vmem>>, vector<1x128xf32>
      %53 = vector.broadcast %52 : vector<1x128xf32> to vector<8x128xf32>
      %54 = arith.mulf %51, %53 : vector<8x128xf32>
      %c0_24 = arith.constant 0 : index
      %c0_25 = arith.constant 0 : index
      %55 = vector.load %arg9[%c0_24, %c0_25] : memref<1x128xf32, #tpu.memory_space<vmem>>, vector<1x128xf32>
      %56 = vector.broadcast %55 : vector<1x128xf32> to vector<8x128xf32>
      %57 = arith.addf %54, %56 : vector<8x128xf32>
      %c0_26 = arith.constant 0 : index
      %c0_27 = arith.constant 0 : index
      %58 = vector.load %arg10[%c0_26, %c0_27] : memref<128x128xf32, #tpu.memory_space<vmem>>, vector<128x128xf32>
      %cst_28 = arith.constant dense<0.000000e+00> : vector<8x128xf32>
      %59 = tpu.matmul %57, %58, %cst_28 {dimension_numbers = #tpu.dot_dimension_numbers<[1], [0], [0], [1], [0, 0, 1, 1], [], []>, precision = #tpu.contract_precision<fp32>} : vector<8x128xf32>, vector<128x128xf32>, vector<8x128xf32> -> vector<8x128xf32>
      %c0_29 = arith.constant 0 : index
      %c0_30 = arith.constant 0 : index
      %60 = vector.load %arg11[%c0_29, %c0_30] : memref<1x128xf32, #tpu.memory_space<vmem>>, vector<1x128xf32>
      %61 = vector.broadcast %60 : vector<1x128xf32> to vector<8x128xf32>
      %62 = arith.addf %59, %61 : vector<8x128xf32>
      %cst_31 = arith.constant 0.000000e+00 : f32
      %63 = vector.broadcast %cst_31 : f32 to vector<8x128xf32>
      %64 = arith.cmpf ogt, %62, %63 : vector<8x128xf32>
      %cst_32 = arith.constant 0.00999999977 : f32
      %65 = vector.broadcast %cst_32 : f32 to vector<8x128xf32>
      %66 = arith.mulf %65, %62 : vector<8x128xf32>
      %67 = arith.select %64, %62, %66 : vector<8x128xi1>, vector<8x128xf32>
      %cst_33 = arith.constant 0.000000e+00 : f32
      %68 = vector.shape_cast %14 : vector<8x1xi1> to vector<8x1xi1>
      %69 = vector.broadcast %68 : vector<8x1xi1> to vector<8x128xi1>
      %70 = vector.broadcast %cst_33 : f32 to vector<8x128xf32>
      %71 = arith.select %69, %67, %70 : vector<8x128xi1>, vector<8x128xf32>
      %cst_34 = arith.constant dense<0.000000e+00> : vector<128xf32>
      %72 = vector.multi_reduction <add>, %71, %cst_34 [0] : vector<8x128xf32> to vector<128xf32>
      %73 = vector.shape_cast %72 : vector<128xf32> to vector<1x128xf32>
      %cst_35 = arith.constant 0.166666672 : f32
      %74 = vector.broadcast %cst_35 : f32 to vector<1x128xf32>
      %75 = arith.mulf %73, %74 : vector<1x128xf32>
      %76 = arith.mulf %71, %71 : vector<8x128xf32>
      %cst_36 = arith.constant dense<0.000000e+00> : vector<128xf32>
      %77 = vector.multi_reduction <add>, %76, %cst_36 [0] : vector<8x128xf32> to vector<128xf32>
      %78 = vector.shape_cast %77 : vector<128xf32> to vector<1x128xf32>
      %cst_37 = arith.constant 0.166666672 : f32
      %79 = vector.broadcast %cst_37 : f32 to vector<1x128xf32>
      %80 = arith.mulf %78, %79 : vector<1x128xf32>
      %81 = arith.mulf %75, %75 : vector<1x128xf32>
      %82 = arith.subf %80, %81 : vector<1x128xf32>
      %83 = vector.broadcast %75 : vector<1x128xf32> to vector<8x128xf32>
      %84 = arith.subf %67, %83 : vector<8x128xf32>
      %cst_38 = arith.constant 9.99999974E-6 : f32
      %85 = vector.broadcast %cst_38 : f32 to vector<1x128xf32>
      %86 = arith.addf %82, %85 : vector<1x128xf32>
      %87 = math.rsqrt %86 : vector<1x128xf32>
      %88 = vector.broadcast %87 : vector<1x128xf32> to vector<8x128xf32>
      %89 = arith.mulf %84, %88 : vector<8x128xf32>
      %c0_39 = arith.constant 0 : index
      %c0_40 = arith.constant 0 : index
      %90 = vector.load %arg12[%c0_39, %c0_40] : memref<1x128xf32, #tpu.memory_space<vmem>>, vector<1x128xf32>
      %91 = vector.broadcast %90 : vector<1x128xf32> to vector<8x128xf32>
      %92 = arith.mulf %89, %91 : vector<8x128xf32>
      %c0_41 = arith.constant 0 : index
      %c0_42 = arith.constant 0 : index
      %93 = vector.load %arg13[%c0_41, %c0_42] : memref<1x128xf32, #tpu.memory_space<vmem>>, vector<1x128xf32>
      %94 = vector.broadcast %93 : vector<1x128xf32> to vector<8x128xf32>
      %95 = arith.addf %92, %94 : vector<8x128xf32>
      %c0_43 = arith.constant 0 : index
      %c0_44 = arith.constant 0 : index
      %96 = vector.load %arg14[%c0_43, %c0_44] : memref<128x128xf32, #tpu.memory_space<vmem>>, vector<128x128xf32>
      %cst_45 = arith.constant dense<0.000000e+00> : vector<8x128xf32>
      %97 = tpu.matmul %95, %96, %cst_45 {dimension_numbers = #tpu.dot_dimension_numbers<[1], [0], [0], [1], [0, 0, 1, 1], [], []>, precision = #tpu.contract_precision<fp32>} : vector<8x128xf32>, vector<128x128xf32>, vector<8x128xf32> -> vector<8x128xf32>
      %c0_46 = arith.constant 0 : index
      %c0_47 = arith.constant 0 : index
      %98 = vector.load %arg15[%c0_46, %c0_47] : memref<1x128xf32, #tpu.memory_space<vmem>>, vector<1x128xf32>
      %99 = vector.broadcast %98 : vector<1x128xf32> to vector<8x128xf32>
      %100 = arith.addf %97, %99 : vector<8x128xf32>
      %c0_48 = arith.constant 0 : index
      %c0_49 = arith.constant 0 : index
      %101 = vector.load %arg16[%c0_48, %c0_49] : memref<8x128xf32, #tpu.memory_space<vmem>>, vector<8x128xf32>
      tpu.vector_store %arg16[%c0_48, %c0_49], %100 {strides = array<i32>} : memref<8x128xf32, #tpu.memory_space<vmem>>, vector<8x128xf32>,
    } else {
    }
    return
  }
  func.func @transform_0(%arg0: i32) -> (i32, i32) {
    %c2_i32 = arith.constant 2 : i32
    %0 = arith.minsi %arg0, %c2_i32 : i32
    %c0_i32 = arith.constant 0 : i32
    %c0_i32_0 = arith.constant 0 : i32
    return %c0_i32, %0 : i32, i32
  }
  func.func @transform_1(%arg0: i32) -> (i32, i32) {
    %c4_i32 = arith.constant 4 : i32
    %0 = arith.minsi %arg0, %c4_i32 : i32
    %c0_i32 = arith.constant 0 : i32
    %c0_i32_0 = arith.constant 0 : i32
    return %c0_i32, %0 : i32, i32
  }
  func.func @transform_2(%arg0: i32) -> (i32, i32) {
    %c2_i32 = arith.constant 2 : i32
    %0 = arith.minsi %arg0, %c2_i32 : i32
    %c0_i32 = arith.constant 0 : i32
    %c0_i32_0 = arith.constant 0 : i32
    return %0, %c0_i32 : i32, i32
  }
  func.func @transform_3(%arg0: i32) -> (i32, i32) {
    %c4_i32 = arith.constant 4 : i32
    %0 = arith.minsi %arg0, %c4_i32 : i32
    %c0_i32 = arith.constant 0 : i32
    %c0_i32_0 = arith.constant 0 : i32
    return %0, %c0_i32 : i32, i32
  }
  func.func @transform_4(%arg0: i32) -> (i32, i32) {
    %c0_i32 = arith.constant 0 : i32
    %c0_i32_0 = arith.constant 0 : i32
    %c0_i32_1 = arith.constant 0 : i32
    return %c0_i32, %c0_i32_0 : i32, i32
  }
  func.func @transform_5(%arg0: i32) -> (i32, i32) {
    %c0_i32 = arith.constant 0 : i32
    %c0_i32_0 = arith.constant 0 : i32
    %c0_i32_1 = arith.constant 0 : i32
    return %c0_i32, %c0_i32_0 : i32, i32
  }
  func.func @transform_6(%arg0: i32) -> (i32, i32) {
    %c0_i32 = arith.constant 0 : i32
    %c0_i32_0 = arith.constant 0 : i32
    %c0_i32_1 = arith.constant 0 : i32
    return %c0_i32, %c0_i32_0 : i32, i32
  }
  func.func @transform_7(%arg0: i32) -> (i32, i32) {
    %c0_i32 = arith.constant 0 : i32
    %c0_i32_0 = arith.constant 0 : i32
    %c0_i32_1 = arith.constant 0 : i32
    return %c0_i32, %c0_i32_0 : i32, i32
  }
  func.func @transform_8(%arg0: i32) -> (i32, i32) {
    %c0_i32 = arith.constant 0 : i32
    %c0_i32_0 = arith.constant 0 : i32
    %c0_i32_1 = arith.constant 0 : i32
    return %c0_i32, %c0_i32_0 : i32, i32
  }
  func.func @transform_9(%arg0: i32) -> (i32, i32) {
    %c0_i32 = arith.constant 0 : i32
    %c0_i32_0 = arith.constant 0 : i32
    %c0_i32_1 = arith.constant 0 : i32
    return %c0_i32, %c0_i32_0 : i32, i32
  }
  func.func @transform_10(%arg0: i32) -> (i32, i32) {
    %c0_i32 = arith.constant 0 : i32
    %c0_i32_0 = arith.constant 0 : i32
    %c0_i32_1 = arith.constant 0 : i32
    return %c0_i32, %c0_i32_0 : i32, i32
  }
  func.func @transform_11(%arg0: i32) -> (i32, i32) {
    %c0_i32 = arith.constant 0 : i32
    %c0_i32_0 = arith.constant 0 : i32
    %c0_i32_1 = arith.constant 0 : i32
    return %c0_i32, %c0_i32_0 : i32, i32
  }
  func.func @transform_12(%arg0: i32) -> (i32, i32) {
    %c0_i32 = arith.constant 0 : i32
    %c0_i32_0 = arith.constant 0 : i32
    %c0_i32_1 = arith.constant 0 : i32
    return %c0_i32, %c0_i32_0 : i32, i32
  }
  func.func @transform_13(%arg0: i32) -> (i32, i32) {
    %c0_i32 = arith.constant 0 : i32
    %c0_i32_0 = arith.constant 0 : i32
    %c0_i32_1 = arith.constant 0 : i32
    return %c0_i32, %c0_i32_0 : i32, i32
  }
  func.func @transform_14(%arg0: i32) -> (i32, i32) {
    %c0_i32 = arith.constant 0 : i32
    %c0_i32_0 = arith.constant 0 : i32
    %c0_i32_1 = arith.constant 0 : i32
    return %c0_i32, %c0_i32_0 : i32, i32
  }
  func.func @transform_15(%arg0: i32) -> (i32, i32) {
    %c0_i32 = arith.constant 0 : i32
    %c0_i32_0 = arith.constant 0 : i32
    %c0_i32_1 = arith.constant 0 : i32
    return %c0_i32, %c0_i32_0 : i32, i32
  }
}

</mosaic_0001>

<bundles_post_ra>
// kernel: tpu_custom_call.1
= control target key start
LH: loop header
LB: loop body
LE: loop exit
PB: predicated region body
PF: predicated region fallthrough
CT: control target
= control target key end

     0   :  { %s8146_s0 = inlined_call_operand.vmem [shape: s32[1,1536], index: 0, kind: input, shape index: {}]   ;;  %s8147_s1 = inlined_call_operand.vmem [shape: s32[1,2560], index: 1, kind: input, shape index: {}]   ;;  %s8148_s2 = inlined_call_operand.vmem [shape: f32[1536,32], index: 2, kind: input, shape index: {}]   ;;  %s8149_s3 = inlined_call_operand.vmem [shape: f32[2560,48], index: 3, kind: input, shape index: {}]   ;;  %s8150_s4 = inlined_call_operand.vmem [shape: f32[32,128], index: 4, kind: input, shape index: {}]   ;;  %s8151_s5 = inlined_call_operand.vmem [shape: f32[48,128], index: 5, kind: input, shape index: {}]   ;;  %s8152_s6 = inlined_call_operand.vmem [shape: f32[1,128], index: 6, kind: input, shape index: {}]   ;;  %s8153_s7 = inlined_call_operand.vmem [shape: f32[1,128], index: 7, kind: input, shape index: {}]   ;;  %s8154_s8 = inlined_call_operand.vmem [shape: f32[1,128], index: 8, kind: input, shape index: {}]   ;;  %s8155_s9 = inlined_call_operand.vmem [shape: f32[128,128], index: 9, kind: input, shape index: {}]   ;;  %s8156_s10 = inlined_call_operand.vmem [shape: f32[1,128], index: 10, kind: input, shape index: {}]   ;;  %s8157_s11 = inlined_call_operand.vmem [shape: f32[1,128], index: 11, kind: input, shape index: {}]   ;;  %s8158_s12 = inlined_call_operand.vmem [shape: f32[1,128], index: 12, kind: input, shape index: {}]   ;;  %s8159_s13 = inlined_call_operand.vmem [shape: f32[128,128], index: 13, kind: input, shape index: {}]   ;;  %s8160_s14 = inlined_call_operand.vmem [shape: f32[1,128], index: 14, kind: input, shape index: {}]   ;;  %s8161_s15 = inlined_call_operand.hbm [shape: f32[8,128], index: 15, kind: output, shape index: {}]  }
   0x1   :  { %8265 = sst [smem:[#allocation16_spill]] %s8157_s11 }
   0x2   :  { %8266 = sst [smem:[#allocation17_spill]] %s8158_s12 }
   0x3   :  { %8267 = sst [smem:[#allocation18_spill]] %s8160_s14 }
   0x4   :  { %8268 = sst [smem:[#allocation19_spill]] %s8161_s15 }
   0x5   :  { %20 = vsyncpa [#allocation5], 0  ;;  %s5043_s18 = smov 0  }
   0x6 LB: > { %8269 = sst [smem:[#allocation7_spill]] %s4955_s18  ;;  %s5049_s19 = sadd.s32 4294967295, %s4955_s18   ;;  %s4955_s18 = sphi %s5043_s18, %s26_s18  }
   0x7   : > { %p4839_p0 = scmp.ge.s32.totalorder %s4955_s18, 1  ;;  %p497_p1 = scmp.lt.s32.totalorder %s4955_s18, 6 }
   0x9   : > { %p498_p2 = pnand %p4839_p0, %p497_p1 }
   0xa   : > { %p561_p3 = scmp.lt.s32.totalorder (!%p498_p2), %s5049_s19, 2  ;;  %p570_p4 = scmp.lt.s32.totalorder (!%p498_p2), %s5049_s19, 4 }
   0xb   : > { %501 = sbr.rel (%p498_p2) target bundleno = 1333 (0x535), region = 80  ;;  %p4846_p9 = scmp.ne.s32.totalorder (!%p498_p2), %s5049_s19, 0 }
  0x10   : > { %s562_s20 = scalar_select %p561_p3, %s5049_s19, 2 }
  0x11   : > { %s571_s21 = scalar_select %p570_p4, %s5049_s19, 4 }
  0x12   : > { %s4840_s22 = sshll.u32 %s562_s20, 2  ;;  %s4842_s23 = sshll.u32 %s562_s20, 6 }
  0x13   : > { %p564_p5 = scmp.lt.s32.totalorder %s4840_s22, 11  ;;  %s4841_s24 = sshll.u32 %s571_s21, 2 }
  0x14   : > { %p573_p6 = scmp.lt.s32.totalorder %s4841_s24, 19  ;;  %p582_p7 = scmp.lt.s32.totalorder %s4842_s23, 191 }
  0x15   : > { %s8446_s22 = smov (!%p564_p5, %s4840_s22), 11  ;;  %s4844_s28 = sshll.u32 %s571_s21, 6 }
  0x16   : > { %s8448_s24 = smov (!%p573_p6, %s4841_s24), 19  ;;  %s566_s27 = scalar_lea.vmem %s8146_s0, %s8446_s22 }
  0x17   : > { %s575_s16 = scalar_lea.vmem %s8147_s1, %s8448_s24  ;;  %p592_p8 = scmp.lt.s32.totalorder %s4844_s28, 319 }
  0x18   : > { %s8450_s23 = smov (!%p582_p7, %s4842_s23), 191  ;;  %602 = sbr.rel (%p4846_p9) target bundleno = 32 (0x20), region = 84 }
  0x19   : > { %s8452_s28 = smov (!%p592_p8, %s4844_s28), 319  ;;  %s4843_s17 = sshll.u32 %s8450_s23, 3 }
  0x1a   : > { %s5072_s15 = scalar_lea.vmem %s8148_s2, %s4843_s17  ;;  %s4845_s14 = sshll.u32 %s8452_s28, 3 }
  0x1b   : > { %s5077_s25 = scalar_lea.vmem %s8149_s3, %s4845_s14 }
  0x1d   : > { %vm603_vm0 = vcmask 261120   ;;  %vm605_vm1 = vcmask 392192   ;;  %v4957_v0 = vmov 0.0  }
  0x1e   : > { %604 = vst.msk [vmem:[#allocation2] sm:$0xff] %vm603_vm0, %v4957_v0 }
  0x1f   : > { %606 = vst.msk [vmem:[#allocation3] sm:$0xff] %vm605_vm1, %v4957_v0 }
  0x20 PF: > { %p4847_p10 = scmp.ge.s32.totalorder %s5049_s19, 3 }
  0x22   : > { %610 = sbr.rel (%p4847_p10) target bundleno = 385 (0x181), region = 88 }
  0x27   : > { %v646_v1 = vld [vmem:[%s5072_s15 + $0x78] sm:$0xff]  ;;  %v645_v2 = vld [vmem:[%s5072_s15 + $0x70] sm:$0xff]  ;;  %v644_v3 = vld [vmem:[%s5072_s15 + $0x68] sm:$0xff]  ;;  %vm2060_vm6 = vcmask 261120  }
  0x28   : > { %v5084_v4 = vand.u32 4294901760, %v646_v1  ;;  %v5086_v5 = vand.u32 4294901760, %v645_v2  ;;  %v5088_v6 = vand.u32 4294901760, %v644_v3  ;;  %v643_v7 = vld [vmem:[%s5072_s15 + $0x60] sm:$0xff]  ;;  %v642_v8 = vld [vmem:[%s5072_s15 + $0x58] sm:$0xff]  ;;  %v641_v9 = vld [vmem:[%s5072_s15 + $0x50] sm:$0xff] }
  0x29   : > { %v5093_v10 = vand.u32 4294901760, %v643_v7  ;;  %v5095_v11 = vand.u32 4294901760, %v642_v8  ;;  %v5097_v12 = vand.u32 4294901760, %v641_v9  ;;  %v640_v13 = vld [vmem:[%s5072_s15 + $0x48] sm:$0xff]  ;;  %v639_v14 = vld [vmem:[%s5072_s15 + $0x40] sm:$0xff]  ;;  %v638_v19 = vld [vmem:[%s5072_s15 + $0x38] sm:$0xff] }
  0x2a   : > { %696 = vmatpush.msra.mxu0 %v5084_v4  ;;  %v5103_v15 = vsub.f32 %v646_v1, %v5084_v4  ;;  %v5106_v16 = vsub.f32 %v645_v2, %v5086_v5  ;;  %892 = vmatpush.msra.mxu3 %v5084_v4  ;;  %v5110_v17 = vsub.f32 %v644_v3, %v5088_v6  ;;  %v5112_v18 = vand.u32 4294901760, %v640_v13  ;;  %v637_v27 = vld [vmem:[%s5072_s15 + $0x30] sm:$0xff]  ;;  %v636_v37 = vld [vmem:[%s5072_s15 + $0x28] sm:$0xff]  ;;  %v635_v43 = vld [vmem:[%s5072_s15 + $0x20] sm:$0xff] }
  0x2b   : > { %v5116_v20 = vsub.f32 %v643_v7, %v5093_v10  ;;  %v5119_v21 = vsub.f32 %v642_v8, %v5095_v11  ;;  %v5122_v22 = vsub.f32 %v641_v9, %v5097_v12  ;;  %v5129_v26 = vand.u32 4294901760, %v639_v14  ;;  %v634_v49 = vld [vmem:[%s5072_s15 + $0x18] sm:$0xff]  ;;  %v633_v55 = vld [vmem:[%s5072_s15 + $0x10] sm:$0xff]  ;;  %v632_v62 = vld [vmem:[%s5072_s15 + $0x8] sm:$0xff] }
  0x2c   : > { %698 = vmatpush.msra.mxu0 %v5086_v5  ;;  %839 = vmatpush.msra.mxu2 %v5103_v15  ;;  %v738_v23 = vand.u32 4294901760, %v5103_v15  ;;  %v8178_v24 = vand.u32 4294901760, %v5106_v16  ;;  %v8176_v25 = vand.u32 4294901760, %v5110_v17  ;;  %v5134_v29 = vand.u32 4294901760, %v638_v19  ;;  %v662_v60 = vld [vmem:[%s5072_s15 + $0xf8] sm:$0xff]  ;;  %v631_v3 = vld [vmem:[%s5072_s15] sm:$0xff] }
  0x2d   : > { %894 = vmatpush.msra.mxu3 %v5086_v5  ;;  %v8173_v28 = vand.u32 4294901760, %v5116_v20  ;;  %v5137_v30 = vsub.f32 %v640_v13, %v5112_v18  ;;  %v8172_v34 = vand.u32 4294901760, %v5119_v21  ;;  %v5152_v35 = vand.u32 4294901760, %v637_v27  ;;  %v661_v7 = vld [vmem:[%s5072_s15 + $0xf0] sm:$0xff] }
  0x2e   : > { %700 = vmatpush.msra.mxu0 %v5088_v6  ;;  %842 = vmatpush.msra.mxu2 %v5106_v16  ;;  %v739_v31 = vsub.f32 %v5103_v15, %v738_v23  ;;  %v745_v32 = vsub.f32 %v5106_v16, %v8178_v24  ;;  %v751_v33 = vsub.f32 %v5110_v17, %v8176_v25  ;;  %v8170_v36 = vand.u32 4294901760, %v5122_v22 }
  0x2f   : > { %896 = vmatpush.msra.mxu3 %v5088_v6  ;;  %v757_v40 = vsub.f32 %v5116_v20, %v8173_v28  ;;  %v5162_v41 = vsub.f32 %v639_v14, %v5129_v26  ;;  %v5166_v42 = vsub.f32 %v638_v19, %v5134_v29  ;;  %v763_v45 = vsub.f32 %v5119_v21, %v8172_v34  ;;  %v654_v28 = vld [vmem:[%s5072_s15 + $0xb8] sm:$0xff] }
  0x30   : > { %702 = vmatpush.msra.mxu0 %v5093_v10  ;;  %v740_v38 = vand.u32 4294901760, %v739_v31  ;;  %845 = vmatpush.msra.mxu2 %v5110_v17  ;;  %v746_v39 = vand.u32 4294901760, %v745_v32  ;;  %v752_v44 = vand.u32 4294901760, %v751_v33  ;;  %v5173_v46 = vand.u32 4294901760, %v636_v37  ;;  %v660_v33 = vld [vmem:[%s5072_s15 + $0xe8] sm:$0xff] }
  0x31   : > { %898 = vmatpush.msra.mxu3 %v5093_v10  ;;  %v8169_v47 = vand.u32 4294901760, %v5137_v30  ;;  %v769_v48 = vsub.f32 %v5122_v22, %v8170_v36  ;;  %v758_v50 = vand.u32 4294901760, %v757_v40  ;;  %v5183_v51 = vand.u32 4294901760, %v635_v43 }
  0x32   : > { %704 = vmatpush.msra.mxu0 %v5095_v11  ;;  %741 = vmatpush.msra.mxu1 %v740_v38  ;;  %v8168_v52 = vand.u32 4294901760, %v5162_v41  ;;  %v5187_v53 = vsub.f32 %v637_v27, %v5152_v35  ;;  %v8166_v54 = vand.u32 4294901760, %v5166_v42  ;;  %v764_v56 = vand.u32 4294901760, %v763_v45  ;;  %v659_v45 = vld [vmem:[%s5072_s15 + $0xe0] sm:$0xff] }
  0x33   : > { %848 = vmatpush.msra.mxu2 %v5116_v20  ;;  %900 = vmatpush.msra.mxu3 %v5095_v11  ;;  %v775_v57 = vsub.f32 %v5137_v30, %v8169_v47  ;;  %v5197_v58 = vand.u32 4294901760, %v634_v49  ;;  %v5200_v59 = vsub.f32 %v636_v37, %v5173_v46  ;;  %v770_v61 = vand.u32 4294901760, %v769_v48  ;;  %v655_v47 = vld [vmem:[%s5072_s15 + $0xc0] sm:$0xff] }
  0x34   : > { %706 = vmatpush.msra.mxu0 %v5097_v12  ;;  %747 = vmatpush.msra.mxu1 %v746_v39  ;;  %v781_v63 = vsub.f32 %v5162_v41, %v8168_v52  ;;  %v5210_v0 = vand.u32 4294901760, %v633_v55  ;;  %v8165_v1 = vand.u32 4294901760, %v5187_v53  ;;  %v5214_v2 = vsub.f32 %v635_v43, %v5183_v51 }
  0x35   : > { %851 = vmatpush.msra.mxu2 %v5119_v21  ;;  %902 = vmatpush.msra.mxu3 %v5097_v12  ;;  %v787_v8 = vsub.f32 %v5166_v42, %v8166_v54  ;;  %v5223_v9 = vand.u32 4294901760, %v662_v60  ;;  %v776_v13 = vand.u32 4294901760, %v775_v57  ;;  %v5226_v14 = vand.u32 4294901760, %v632_v62 }
  0x36   : > { %708 = vmatpush.msra.mxu0 %v5112_v18  ;;  %753 = vmatpush.msra.mxu1 %v752_v44  ;;  %v8164_v19 = vand.u32 4294901760, %v5200_v59  ;;  %v5230_v27 = vsub.f32 %v634_v49, %v5197_v58  ;;  %v5234_v31 = vand.u32 4294901760, %v631_v3  ;;  %v5236_v32 = vand.u32 4294901760, %v661_v7 }
  0x37   : > { %854 = vmatpush.msra.mxu2 %v5122_v22  ;;  %904 = vmatpush.msra.mxu3 %v5112_v18  ;;  %8270 = vst [vmem:[#allocation8_spill] sm:$0xff] %v5223_v9  ;;  %v782_v37 = vand.u32 4294901760, %v781_v63  ;;  %v793_v38 = vsub.f32 %v5187_v53, %v8165_v1  ;;  %v8163_v39 = vand.u32 4294901760, %v5214_v2  ;;  %v5245_v40 = vsub.f32 %v633_v55, %v5210_v0  ;;  %v656_v1 = vld [vmem:[%s5072_s15 + $0xc8] sm:$0xff] }
  0x38   : > { %710 = vmatpush.msra.mxu0 %v5129_v26  ;;  %759 = vmatpush.msra.mxu1 %v758_v50  ;;  %8271 = vst [vmem:[#allocation9_spill] sm:$0xff] %v5226_v14  ;;  %v788_v43 = vand.u32 4294901760, %v787_v8  ;;  %v5250_v44 = vsub.f32 %v662_v60, %v5223_v9  ;;  %v799_v48 = vsub.f32 %v5200_v59, %v8164_v19  ;;  %v8167_v49 = vand.u32 4294901760, %v5230_v27 }
  0x39   : > { %857 = vmatpush.msra.mxu2 %v5137_v30  ;;  %906 = vmatpush.msra.mxu3 %v5129_v26  ;;  %8272 = vst [vmem:[#allocation10_spill] sm:$0xff] %v5234_v31  ;;  %v5259_v50 = vsub.f32 %v632_v62, %v5226_v14  ;;  %v5261_v55 = vand.u32 4294901760, %v660_v33  ;;  %v5267_v57 = vsub.f32 %v631_v3, %v5234_v31  ;;  %v8171_v63 = vand.u32 4294901760, %v5245_v40 }
  0x3a   : > { %712 = vmatpush.msra.mxu0 %v5134_v29  ;;  %765 = vmatpush.msra.mxu1 %v764_v56  ;;  %8273 = vst [vmem:[#allocation11_spill] sm:$0xff] %v5236_v32  ;;  %v658_v56 = vld [vmem:[%s5072_s15 + $0xd8] sm:$0xff]  ;;  %v5270_v60 = vsub.f32 %v661_v7, %v5236_v32  ;;  %v805_v62 = vsub.f32 %v5214_v2, %v8163_v39  ;;  %v5277_v8 = vand.u32 4294901760, %v659_v45  ;;  %v8174_v3 = vand.u32 4294901760, %v5250_v44 }
  0x3b   : > { %860 = vmatpush.msra.mxu2 %v5162_v41  ;;  %908 = vmatpush.msra.mxu3 %v5134_v29  ;;  %v5282_v7 = vand.u32 4294901760, %v658_v56  ;;  %v8175_v39 = vand.u32 4294901760, %v5259_v50  ;;  %v5291_v19 = vsub.f32 %v660_v33, %v5261_v55  ;;  %v8179_v54 = vand.u32 4294901760, %v5267_v57 }
  0x3c   : > { %714 = vmatpush.msra.mxu0 %v5152_v35  ;;  %771 = vmatpush.msra.mxu1 %v770_v61  ;;  %v794_v61 = vand.u32 4294901760, %v793_v38  ;;  %v811_v38 = vsub.f32 %v5230_v27, %v8167_v49  ;;  %v817_v49 = vsub.f32 %v5245_v40, %v8171_v63  ;;  %v5303_v33 = vsub.f32 %v659_v45, %v5277_v8 }
  0x3d   : > { %863 = vmatpush.msra.mxu2 %v5166_v42  ;;  %910 = vmatpush.msra.mxu3 %v5152_v35  ;;  %v5316_v36 = vand.u32 4294901760, %v656_v1  ;;  %v823_v63 = vsub.f32 %v5259_v50, %v8175_v39  ;;  %v8180_v34 = vand.u32 4294901760, %v5291_v19  ;;  %v5346_v24 = vand.u32 4294901760, %v654_v28 }
  0x3e   : > { %716 = vmatpush.msra.mxu0 %v5173_v46  ;;  %777 = vmatpush.msra.mxu1 %v776_v13  ;;  %v657_v13 = vld [vmem:[%s5072_s15 + $0xd0] sm:$0xff]  ;;  %v812_v45 = vand.u32 4294901760, %v811_v38  ;;  %v829_v38 = vsub.f32 %v5267_v57, %v8179_v54 }
  0x3f   : > { %866 = vmatpush.msra.mxu2 %v5187_v53  ;;  %912 = vmatpush.msra.mxu3 %v5173_v46  ;;  %v5305_v52 = vand.u32 4294901760, %v657_v13  ;;  %v653_v54 = vld [vmem:[%s5072_s15 + $0xb0] sm:$0xff]  ;;  %v824_v39 = vand.u32 4294901760, %v823_v63  ;;  %v1092_v15 = vsub.f32 %v5291_v19, %v8180_v34  ;;  %v5365_v63 = vld [vmem:[%s566_s27] sm:$0xf] }
  0x40   : > { %718 = vmatpush.msra.mxu0 %v5183_v51  ;;  %783 = vmatpush.msra.mxu1 %v782_v37  ;;  %v800_v37 = vand.u32 4294901760, %v799_v48  ;;  %v806_v48 = vand.u32 4294901760, %v805_v62  ;;  %v5314_v62 = vsub.f32 %v658_v56, %v5282_v7  ;;  %v5372_v34 = vand.u32 4294901760, %v653_v54 }
  0x41   : > { %869 = vmatpush.msra.mxu2 %v5200_v59  ;;  %914 = vmatpush.msra.mxu3 %v5183_v51  ;;  %v5337_v25 = vsub.f32 %v657_v13, %v5305_v52  ;;  %v8274_v13 = vand.u32 4294901760, %v5106_v16  ;;  %v8275_v16 = vand.u32 4294901760, %v5303_v33 }
  0x42   : > { %720 = vmatpush.msra.mxu0 %v5197_v58  ;;  %789 = vmatpush.msra.mxu1 %v788_v43  ;;  %v8177_v43 = vand.u32 4294901760, %v5270_v60 }
  0x43   : > { %872 = vmatpush.msra.mxu2 %v5214_v2  ;;  %916 = vmatpush.msra.mxu3 %v5197_v58 }
  0x44   : > { %722 = vmatpush.msra.mxu0 %v5210_v0  ;;  %795 = vmatpush.msra.mxu1 %v794_v61  ;;  %v1080_v61 = vsub.f32 %v5250_v44, %v8174_v3  ;;  %v1086_v56 = vsub.f32 %v5270_v60, %v8177_v43  ;;  %v5329_v3 = vand.u32 4294901760, %v655_v47 }
  0x45   : > { %875 = vmatpush.msra.mxu2 %v5230_v27  ;;  %918 = vmatpush.msra.mxu3 %v5210_v0 }
  0x46   : > { %724 = vmatpush.msra.mxu0 %v5226_v14  ;;  %801 = vmatpush.msra.mxu1 %v800_v37  ;;  %v818_v37 = vand.u32 4294901760, %v817_v49  ;;  %v1081_v43 = vand.u32 4294901760, %v1080_v61  ;;  %v5344_v49 = vsub.f32 %v656_v1, %v5316_v36  ;;  %v1087_v1 = vand.u32 4294901760, %v1086_v56 }
  0x47   : > { %878 = vmatpush.msra.mxu2 %v5245_v40  ;;  %920 = vmatpush.msra.mxu3 %v5226_v14  ;;  %v5357_v61 = vsub.f32 %v655_v47, %v5329_v3  ;;  %v8276_v47 = vand.u32 4294901760, %v5110_v17  ;;  %v651_v14 = vld [vmem:[%s5072_s15 + $0xa0] sm:$0xff] }
  0x48   : > { %726 = vmatpush.msra.mxu0 %v5234_v31  ;;  %807 = vmatpush.msra.mxu1 %v806_v48  ;;  %v652_v48 = vld [vmem:[%s5072_s15 + $0xa8] sm:$0xff] }
  0x49   : > { %881 = vmatpush.msra.mxu2 %v5259_v50  ;;  %922 = vmatpush.msra.mxu3 %v5234_v31  ;;  %v8277_v31 = vand.u32 4294901760, %v5314_v62  ;;  %v5385_v56 = vand.u32 4294901760, %v652_v48 }
  0x4a   : > { %933 = vmatpush.msrb.mxu0 %v738_v23  ;;  %813 = vmatpush.msra.mxu1 %v812_v45  ;;  %v612_v23 = vlaneseq  ;;  %v830_v45 = vand.u32 4294901760, %v829_v38  ;;  %v5381_v38 = vsub.f32 %v654_v28, %v5346_v24 }
  0x4b   : > { %884 = vmatpush.msra.mxu2 %v5267_v57  ;;  %1082 = vmatpush.msrb.mxu3 %v1081_v43  ;;  %v614_v43 = vperm.slane %v5365_v63, 0 }
  0x4c   : > { %937 = vmatpush.msrb.mxu0 %v8274_v13  ;;  %819 = vmatpush.msra.mxu1 %v818_v37  ;;  %v1098_v13 = vsub.f32 %v5303_v33, %v8275_v16  ;;  %v1104_v37 = vsub.f32 %v5314_v62, %v8277_v31  ;;  %v1093_v16 = vand.u32 4294901760, %v1092_v15  ;;  %v5387_v17 = vshrl.u32 %v612_v23, 7 }
  0x4d   : > { %1037 = vmatpush.msrb.mxu2 %v5223_v9  ;;  %1088 = vmatpush.msrb.mxu3 %v1087_v1  ;;  %v8188_v31 = vand.u32 4294901760, %v5357_v61  ;;  %v650_v9 = vld [vmem:[%s5072_s15 + $0x98] sm:$0xff]  ;;  %v5399_v23 = vsub.f32 %v653_v54, %v5372_v34  ;;  %v5412_v54 = vsub.f32 %v652_v48, %v5385_v56 }
  0x4e   : > { %941 = vmatpush.msrb.mxu0 %v8276_v47  ;;  %825 = vmatpush.msra.mxu1 %v824_v39  ;;  %v8278_v47 = vand.u32 4294901760, %v5116_v20  ;;  %v1099_v28 = vand.u32 4294901760, %v1098_v13  ;;  %v8279_v39 = vand.u32 4294901760, %v5337_v25  ;;  %v8280_v20 = vand.u32 4294901760, %v5119_v21 }
  0x4f   : > { %1039 = vmatpush.msrb.mxu2 %v5236_v32  ;;  %v5401_v32 = vand.u32 4294901760, %v651_v14  ;;  %v1105_v1 = vand.u32 4294901760, %v1104_v37  ;;  %1094 = vmatpush.msrb.mxu3 %v1093_v16  ;;  %vm5417_vm2 = vcmp.eq.s32.totalorder %v5387_v17, %v614_v43  ;;  %v1122_v37 = vsub.f32 %v5357_v61, %v8188_v31  ;;  %v649_v16 = vld [vmem:[%s5072_s15 + $0x90] sm:$0xff] }
  0x50   : > { %945 = vmatpush.msrb.mxu0 %v8278_v47  ;;  %831 = vmatpush.msra.mxu1 %v830_v45  ;;  %v1110_v15 = vsub.f32 %v5337_v25, %v8279_v39  ;;  %v8281_v45 = vand.u32 4294901760, %v5344_v49  ;;  %v8187_v47 = vand.u32 4294901760, %v5381_v38  ;;  %v5414_v39 = vand.u32 4294901760, %v650_v9 }
  0x51   : > { %1041 = vmatpush.msrb.mxu2 %v5261_v55  ;;  %1100 = vmatpush.msrb.mxu3 %v1099_v28  ;;  %v5431_v43 = vsub.f32 %v651_v14, %v5401_v32 }
  0x52   : > { %949 = vmatpush.msrb.mxu0 %v8280_v20  ;;  %1000 = vmatpush.msrb.mxu1 %v5084_v4  ;;  %v1116_v13 = vsub.f32 %v5344_v49, %v8281_v45  ;;  %v8284_v4 = vand.u32 4294901760, %v5122_v22  ;;  %v1111_v48 = vand.u32 4294901760, %v1110_v15  ;;  %v1133_v20 = vand.u32 4294901760, %v5399_v23  ;;  %v648_v15 = vld [vmem:[%s5072_s15 + $0x88] sm:$0xff] }
  0x53   : > { %1043 = vmatpush.msrb.mxu2 %v5277_v8  ;;  %v8285_v45 = vand.u32 4294901760, %v5137_v30  ;;  %v8189_v22 = vmov 0.0   ;;  %1106 = vmatpush.msrb.mxu3 %v1105_v1  ;;  %v1139_v30 = vand.u32 4294901760, %v5412_v54 }
  0x54   : > { %953 = vmatpush.msrb.mxu0 %v8284_v4  ;;  %1002 = vmatpush.msrb.mxu1 %v5086_v5  ;;  %v1128_v5 = vsub.f32 %v5381_v38, %v8187_v47  ;;  %v4848_v28 = vsel %vm5417_vm2, 1.0, %v8189_v22  ;;  %v1117_v14 = vand.u32 4294901760, %v1116_v13  ;;  %v5445_v4 = vand.u32 4294901760, %v649_v16 }
  0x55   : > { %1045 = vmatpush.msrb.mxu2 %v5282_v7  ;;  %v1123_v47 = vand.u32 4294901760, %v1122_v37  ;;  %1112 = vmatpush.msrb.mxu3 %v1111_v48  ;;  %v1134_v1 = vsub.f32 %v5399_v23, %v1133_v20  ;;  %v1145_v13 = vand.u32 4294901760, %v5431_v43  ;;  %v5458_v31 = vsub.f32 %v4848_v28, %v4848_v28 }
  0x56   : > { %957 = vmatpush.msrb.mxu0 %v8285_v45  ;;  %1004 = vmatpush.msrb.mxu1 %v5088_v6  ;;  %v5448_v6 = vsub.f32 %v650_v9, %v5414_v39  ;;  %v8286_v45 = vand.u32 4294901760, %v5162_v41  ;;  %v5460_v22 = vand.u32 4294901760, %v648_v15  ;;  %v647_v9 = vld [vmem:[%s5072_s15 + $0x80] sm:$0xff]  ;;  %v8287_v41 = vand.u32 4294901760, %v5166_v42 }
  0x57   : > { %1047 = vmatpush.msrb.mxu2 %v5305_v52  ;;  %1118 = vmatpush.msrb.mxu3 %v1117_v14  ;;  %v1140_v37 = vsub.f32 %v5412_v54, %v1139_v30  ;;  %v5472_v28 = vsub.f32 %v649_v16, %v5445_v4  ;;  %v8288_v42 = vand.u32 4294901760, %v5187_v53  ;;  %v1146_v14 = vsub.f32 %v5431_v43, %v1145_v13 }
  0x58   : > { %961 = vmatpush.msrb.mxu0 %v8286_v45  ;;  %1006 = vmatpush.msrb.mxu1 %v5093_v10  ;;  %v1129_v10 = vand.u32 4294901760, %v1128_v5  ;;  %v1151_v48 = vand.u32 4294901760, %v5448_v6  ;;  %v615_v45 = vperm.slane %v5365_v63, 1  ;;  %v1135_v5 = vand.u32 4294901760, %v1134_v1 }
  0x59   : > { %1049 = vmatpush.msrb.mxu2 %v5316_v36  ;;  %1124 = vmatpush.msrb.mxu3 %v1123_v47  ;;  %v729_v16 = vand.u32 4294901760, %v5458_v31  ;;  %v8289_v53 = vand.u32 4294901760, %v5200_v59  ;;  %v1157_v1 = vand.u32 4294901760, %v5472_v28  ;;  %v8292_v59 = vand.u32 4294901760, %v5214_v2 }
  0x5a   : > { %965 = vmatpush.msrb.mxu0 %v8287_v41  ;;  %1008 = vmatpush.msrb.mxu1 %v5095_v11  ;;  %v5478_v11 = vand.u32 4294901760, %v647_v9  ;;  %v5486_v41 = vsub.f32 %v648_v15, %v5460_v22  ;;  %v1152_v47 = vsub.f32 %v5448_v6, %v1151_v48  ;;  %vm5497_vm3 = vcmp.eq.s32.totalorder %v5387_v17, %v615_v45 }
  0x5b   : > { %1051 = vmatpush.msrb.mxu2 %v5329_v3  ;;  %1130 = vmatpush.msrb.mxu3 %v1129_v10  ;;  %v1147_v15 = vand.u32 4294901760, %v1146_v14  ;;  %v730_v10 = vsub.f32 %v5458_v31, %v729_v16  ;;  %v8293_v45 = vand.u32 4294901760, %v5230_v27  ;;  %v8294_v2 = vmov 0.0  }
  0x5c   : > { %969 = vmatpush.msrb.mxu0 %v8288_v42  ;;  %1010 = vmatpush.msrb.mxu1 %v5097_v12  ;;  %v1141_v12 = vand.u32 4294901760, %v1140_v37  ;;  %v1163_v37 = vand.u32 4294901760, %v5486_v41  ;;  %v8295_v14 = vand.u32 4294901760, %v5245_v40  ;;  %v8297_v40 = vand.u32 4294901760, %v5267_v57  ;;  %v8299_v57 = vld [vmem:[#allocation9_spill] sm:$0xff] }
  0x5d   : > { %1053 = vmatpush.msrb.mxu2 %v5346_v24  ;;  %1136 = vmatpush.msrb.mxu3 %v1135_v5  ;;  %v1158_v5 = vsub.f32 %v5472_v28, %v1157_v1  ;;  %v616_v42 = vperm.slane %v5365_v63, 2 }
  0x5e   : > { %973 = vmatpush.msrb.mxu0 %v8289_v53  ;;  %1012 = vmatpush.msrb.mxu1 %v5112_v18  ;;  %v5505_v18 = vsub.f32 %v647_v9, %v5478_v11  ;;  %v1153_v9 = vand.u32 4294901760, %v1152_v47  ;;  %v1164_v53 = vsub.f32 %v5486_v41, %v1163_v37  ;;  %v8296_v47 = vand.u32 4294901760, %v5259_v50 }
  0x5f   : > { %1055 = vmatpush.msrb.mxu2 %v5372_v34  ;;  %1142 = vmatpush.msrb.mxu3 %v1141_v12  ;;  %vm5753_vm4 = vcmp.eq.s32.totalorder %v5387_v17, %v616_v42  ;;  %v663_v42 = vld [vmem:[%s5072_s15 + $0x100] sm:$0xff] }
  0x60   : > { %977 = vmatpush.msrb.mxu0 %v8292_v59  ;;  %1014 = vmatpush.msrb.mxu1 %v5129_v26  ;;  %v4849_v26 = vsel %vm5497_vm3, 1.0, %v8294_v2  ;;  %v1169_v27 = vand.u32 4294901760, %v5505_v18  ;;  %v1165_v50 = vand.u32 4294901760, %v1164_v53 }
  0x61   : > { %1057 = vmatpush.msrb.mxu2 %v5385_v56  ;;  %1148 = vmatpush.msrb.mxu3 %v1147_v15  ;;  %v5528_v12 = vsub.f32 %v4849_v26, %v4849_v26  ;;  %v8304_v26 = vld [vmem:[#allocation11_spill] sm:$0xff] }
  0x62   : > { %981 = vmatpush.msrb.mxu0 %v8293_v45  ;;  %1016 = vmatpush.msrb.mxu1 %v5134_v29  ;;  %v731_v29 = vand.u32 4294901760, %v730_v10  ;;  %v1170_v59 = vsub.f32 %v5505_v18, %v1169_v27  ;;  %v8302_v45 = vld [vmem:[#allocation10_spill] sm:$0xff] }
  0x63   : > { %1059 = vmatpush.msrb.mxu2 %v5401_v32  ;;  %1154 = vmatpush.msrb.mxu3 %v1153_v9  ;;  %v1070_v15 = vand.u32 4294901760, %v5528_v12 }
  0x64   : > { %985 = vmatpush.msrb.mxu0 %v8295_v14  ;;  %1018 = vmatpush.msrb.mxu1 %v5152_v35  ;;  %v1159_v35 = vand.u32 4294901760, %v1158_v5 }
  0x65   : > { %1061 = vmatpush.msrb.mxu2 %v5414_v39  ;;  %732 = vmatmul.f32.vlgmr.msra.gmra.mxu0 %v731_v29 }
  0x66   : > { %989 = vmatpush.msrb.mxu0 %v8296_v47  ;;  %1020 = vmatpush.msrb.mxu1 %v5173_v46  ;;  %v1171_v46 = vand.u32 4294901760, %v1170_v59 }
  0x67   : > { %1063 = vmatpush.msrb.mxu2 %v5445_v4  ;;  %1160 = vmatpush.msrb.mxu3 %v1159_v35  ;;  %v668_v35 = vld [vmem:[%s5072_s15 + $0x128] sm:$0xff] }
  0x68   : > { %993 = vmatpush.msrb.mxu0 %v8297_v40  ;;  %1022 = vmatpush.msrb.mxu1 %v5183_v51  ;;  %v1071_v51 = vsub.f32 %v5528_v12, %v1070_v15 }
  0x69   : > { %1065 = vmatpush.msrb.mxu2 %v5460_v22  ;;  %1166 = vmatpush.msrb.mxu3 %v1165_v50 }
  0x6a   : > { %1180 = vmatpush.msra.mxu0 %v5250_v44  ;;  %1024 = vmatpush.msrb.mxu1 %v5197_v58  ;;  %v8298_v58 = vand.u32 4294901760, %v5250_v44  ;;  %v1072_v10 = vand.u32 4294901760, %v1071_v51  ;;  %v8303_v44 = vand.u32 4294901760, %v5291_v19 }
  0x6b   : > { %887 = vmatmul.f32.vlgmr.msra.gmra.mxu2 %v5458_v31  ;;  %926 = vmatmul.f32.vlgmr.msra.gmra.mxu3 %v729_v16  ;;  %v8199_v31 = vmov 1.0   ;;  %v8301_v16 = vld [vmem:[#allocation8_spill] sm:$0xff] }
  0x6c   : > { %1183 = vmatpush.msra.mxu0 %v5270_v60  ;;  %1026 = vmatpush.msrb.mxu1 %v5210_v0  ;;  %v8300_v0 = vand.u32 4294901760, %v5270_v60  ;;  %v8305_v60 = vand.u32 4294901760, %v5303_v33 }
  0x6d   : > { %1067 = vmatpush.msrb.mxu2 %v5478_v11  ;;  %1172 = vmatpush.msrb.mxu3 %v1171_v46 }
  0x6e   : > { %1186 = vmatpush.msra.mxu0 %v5291_v19  ;;  %1028 = vmatpush.msrb.mxu1 %v8299_v57  ;;  %v8306_v19 = vand.u32 4294901760, %v5314_v62 }
  0x6f   : > { %1274 = vmatpush.msra.mxu2 %v8298_v58  ;;  %4852 = vmatmul.msk.f32.vlgmr.msra.gmra.mxu1 %vm5417_vm2, %v8199_v31  ;;  %v667_v58 = vld [vmem:[%s5072_s15 + $0x120] sm:$0xff] }
  0x70   : > { %1189 = vmatpush.msra.mxu0 %v5303_v33  ;;  %1341 = vmatpush.msra.mxu3 %v8301_v16  ;;  %v8307_v33 = vand.u32 4294901760, %v5337_v25 }
  0x71   : > { %1278 = vmatpush.msra.mxu2 %v8300_v0  ;;  %1030 = vmatpush.msrb.mxu1 %v8302_v45  ;;  %v5741_v0 = vand.u32 4294901760, %v668_v35 }
  0x72   : > { %1192 = vmatpush.msra.mxu0 %v5314_v62  ;;  %1343 = vmatpush.msra.mxu3 %v8304_v26 }
  0x73   : > { %1233 = vmatpush.msra.mxu1 %v8301_v16  ;;  %1282 = vmatpush.msra.mxu2 %v8303_v44  ;;  %v5758_v44 = vand.u32 4294901760, %v667_v58 }
  0x74   : > { %1073 = vmatmul.f32.vlgmr.msrb.gmra.mxu2 %v1072_v10  ;;  %1195 = vmatpush.msra.mxu0 %v5337_v25  ;;  %v678_v25 = vld [vmem:[%s5072_s15 + $0x178] sm:$0xff] }
  0x75   : > { %1235 = vmatpush.msra.mxu1 %v8304_v26  ;;  %1286 = vmatpush.msra.mxu2 %v8305_v60  ;;  %v5614_v62 = vand.u32 4294901760, %v678_v25 }
  0x76   : > { %1345 = vmatpush.msra.mxu3 %v5261_v55  ;;  %4853 = vmatmul.msk.f32.vlgmr.msrb.gmra.mxu0 %vm5417_vm2, %v8199_v31 }
  0x77   : > { %4855 = vmatmul.msk.f32.vlgmr.msrb.gmra.mxu3 %vm5497_vm3, %v8199_v31  ;;  %1198 = vmatpush.msra.mxu0 %v5344_v49 }
  0x78   : > { %1237 = vmatpush.msra.mxu1 %v5261_v55  ;;  %1290 = vmatpush.msra.mxu2 %v8306_v19  ;;  %v8308_v55 = vand.u32 4294901760, %v5344_v49  ;;  %v675_v49 = vld [vmem:[%s5072_s15 + $0x160] sm:$0xff] }
  0x79   : > { %1347 = vmatpush.msra.mxu3 %v5277_v8  ;;  %4854 = vmatmul.msk.f32.vlgmr.msrb.gmra.mxu1 %vm5417_vm2, %v8199_v31 }
  0x7a   : > { %1201 = vmatpush.msra.mxu0 %v5357_v61  ;;  %1239 = vmatpush.msra.mxu1 %v5277_v8  ;;  %v8309_v8 = vand.u32 4294901760, %v5357_v61  ;;  %v5633_v61 = vsub.f32 %v678_v25, %v5614_v62 }
  0x7b   : > { %1294 = vmatpush.msra.mxu2 %v8307_v33  ;;  %1349 = vmatpush.msra.mxu3 %v5282_v7 }
  0x7c   : > { %1204 = vmatpush.msra.mxu0 %v5381_v38  ;;  %1241 = vmatpush.msra.mxu1 %v5282_v7  ;;  %v8310_v7 = vand.u32 4294901760, %v5381_v38  ;;  %v674_v38 = vld [vmem:[%s5072_s15 + $0x158] sm:$0xff] }
  0x7d   : > { %1298 = vmatpush.msra.mxu2 %v8308_v55  ;;  %1351 = vmatpush.msra.mxu3 %v5305_v52  ;;  %v5649_v21 = vand.u32 4294901760, %v674_v38  ;;  %v665_v55 = vld [vmem:[%s5072_s15 + $0x110] sm:$0xff] }
  0x7e   : > { %1207 = vmatpush.msra.mxu0 %v5399_v23  ;;  %1243 = vmatpush.msra.mxu1 %v5305_v52  ;;  %v677_v52 = vld [vmem:[%s5072_s15 + $0x170] sm:$0xff] }
  0x7f   : > { %1302 = vmatpush.msra.mxu2 %v8309_v8  ;;  %1353 = vmatpush.msra.mxu3 %v5316_v36 }
  0x80   : > { %1210 = vmatpush.msra.mxu0 %v5412_v54  ;;  %1245 = vmatpush.msra.mxu1 %v5316_v36  ;;  %v676_v36 = vld [vmem:[%s5072_s15 + $0x168] sm:$0xff]  ;;  %v673_v54 = vld [vmem:[%s5072_s15 + $0x150] sm:$0xff] }
  0x81   : > { %1306 = vmatpush.msra.mxu2 %v8310_v7  ;;  %1355 = vmatpush.msra.mxu3 %v5329_v3  ;;  %v5775_v7 = vsub.f32 %v668_v35, %v5741_v0 }
  0x82   : > { %1213 = vmatpush.msra.mxu0 %v5431_v43  ;;  %1247 = vmatpush.msra.mxu1 %v5329_v3  ;;  %v5622_v3 = vand.u32 4294901760, %v677_v52  ;;  %v672_v43 = vld [vmem:[%s5072_s15 + $0x148] sm:$0xff] }
  0x83   : > { %1310 = vmatpush.msra.mxu2 %v1133_v20  ;;  %1357 = vmatpush.msra.mxu3 %v5346_v24 }
  0x84   : > { %1216 = vmatpush.msra.mxu0 %v5448_v6  ;;  %1249 = vmatpush.msra.mxu1 %v5346_v24  ;;  %v5630_v24 = vand.u32 4294901760, %v676_v36  ;;  %v5644_v23 = vsub.f32 %v677_v52, %v5622_v3  ;;  %v4850_v52 = vsel %vm5753_vm4, 1.0, %v8294_v2 }
  0x85   : > { %1314 = vmatpush.msra.mxu2 %v1139_v30  ;;  %1359 = vmatpush.msra.mxu3 %v5372_v34  ;;  %v5661_v30 = vand.u32 4294901760, %v673_v54 }
  0x86   : > { %1219 = vmatpush.msra.mxu0 %v5472_v28  ;;  %1251 = vmatpush.msra.mxu1 %v5372_v34  ;;  %v5641_v34 = vand.u32 4294901760, %v675_v49  ;;  %v5656_v20 = vsub.f32 %v676_v36, %v5630_v24 }
  0x87   : > { %1318 = vmatpush.msra.mxu2 %v1145_v13  ;;  %1361 = vmatpush.msra.mxu3 %v5385_v56  ;;  %v5672_v13 = vand.u32 4294901760, %v672_v43 }
  0x88   : > { %1222 = vmatpush.msra.mxu0 %v5486_v41  ;;  %1253 = vmatpush.msra.mxu1 %v5385_v56  ;;  %v1420_v56 = vand.u32 4294901760, %v5633_v61  ;;  %v5668_v6 = vsub.f32 %v675_v49, %v5641_v34  ;;  %v8206_v41 = vand.u32 4294901760, %v5656_v20 }
  0x89   : > { %1322 = vmatpush.msra.mxu2 %v1151_v48  ;;  %1363 = vmatpush.msra.mxu3 %v5401_v32  ;;  %v671_v48 = vld [vmem:[%s5072_s15 + $0x140] sm:$0xff]  ;;  %v5705_v14 = vsub.f32 %v672_v43, %v5672_v13  ;;  %v5790_v43 = vsub.f32 %v667_v58, %v5758_v44 }
  0x8a   : > { %1225 = vmatpush.msra.mxu0 %v5505_v18  ;;  %1255 = vmatpush.msra.mxu1 %v5401_v32  ;;  %v1426_v32 = vand.u32 4294901760, %v5644_v23  ;;  %v1421_v28 = vsub.f32 %v5633_v61, %v1420_v56  ;;  %v8203_v9 = vand.u32 4294901760, %v5668_v6  ;;  %v1433_v53 = vsub.f32 %v5656_v20, %v8206_v41  ;;  %v687_v41 = vld [vmem:[%s5072_s15 + $0x1c0] sm:$0xff] }
  0x8b   : > { %1326 = vmatpush.msra.mxu2 %v1157_v1  ;;  %1365 = vmatpush.msra.mxu3 %v5414_v39  ;;  %v670_v1 = vld [vmem:[%s5072_s15 + $0x138] sm:$0xff]  ;;  %v8196_v51 = vand.u32 4294901760, %v5705_v14 }
  0x8c   : > { %1228 = vmatmul.f32.vlgmr.msra.gmra.mxu0 %v5528_v12  ;;  %1257 = vmatpush.msra.mxu1 %v5414_v39  ;;  %v5675_v39 = vsub.f32 %v674_v38, %v5649_v21  ;;  %v1427_v18 = vsub.f32 %v5644_v23, %v1426_v32  ;;  %v1422_v29 = vand.u32 4294901760, %v1421_v28  ;;  %v1439_v59 = vsub.f32 %v5668_v6, %v8203_v9 }
  0x8d   : > { %1378 = vmatpush.msrb.mxu0 %v5614_v62  ;;  %1330 = vmatpush.msra.mxu2 %v1163_v37  ;;  %v5698_v37 = vand.u32 4294901760, %v671_v48  ;;  %v1434_v57 = vand.u32 4294901760, %v1433_v53  ;;  %v1457_v33 = vsub.f32 %v5705_v14, %v8196_v51  ;;  %v5786_v38 = vand.u32 4294901760, %v665_v55  ;;  %v694_v53 = vld [vmem:[%s5072_s15 + $0x1f8] sm:$0xff] }
  0x8e   : > { %1367 = vmatpush.msra.mxu3 %v5445_v4  ;;  %1259 = vmatpush.msra.mxu1 %v5445_v4  ;;  %v5690_v4 = vsub.f32 %v673_v54, %v5661_v30  ;;  %v8201_v5 = vand.u32 4294901760, %v5675_v39  ;;  %v1428_v40 = vand.u32 4294901760, %v1427_v18  ;;  %v1440_v45 = vand.u32 4294901760, %v1439_v59  ;;  %v690_v51 = vld [vmem:[%s5072_s15 + $0x1d8] sm:$0xff] }
  0x8f   : > { %1380 = vmatpush.msrb.mxu0 %v5622_v3  ;;  %1334 = vmatpush.msra.mxu2 %v1169_v27  ;;  %v669_v27 = vld [vmem:[%s5072_s15 + $0x130] sm:$0xff]  ;;  %v5730_v46 = vsub.f32 %v671_v48, %v5698_v37  ;;  %v664_v48 = vld [vmem:[%s5072_s15 + $0x108] sm:$0xff]  ;;  %v5795_v28 = vsub.f32 %v4850_v52, %v4850_v52  ;;  %v5817_v58 = vsub.f32 %v665_v55, %v5786_v38 }
  0x90   : > { %1369 = vmatpush.msra.mxu3 %v5460_v22  ;;  %4856 = vmatmul.msk.f32.vlgmr.msra.gmra.mxu2 %vm5497_vm3, %v8199_v31  ;;  %v8198_v47 = vand.u32 4294901760, %v5690_v4  ;;  %v5727_v50 = vand.u32 4294901760, %v669_v27  ;;  %v5808_v35 = vand.u32 4294901760, %v664_v48 }
  0x91   : > { %1382 = vmatpush.msrb.mxu0 %v5630_v24  ;;  %1521 = vmatpush.msrb.mxu2 %v5633_v61  ;;  %v8195_v26 = vand.u32 4294901760, %v5730_v46 }
  0x92   : > { %1261 = vmatpush.msra.mxu1 %v5460_v22  ;;  %1371 = vmatpush.msra.mxu3 %v5478_v11  ;;  %v5715_v22 = vand.u32 4294901760, %v670_v1  ;;  %v1451_v12 = vsub.f32 %v5690_v4, %v8198_v47  ;;  %v5762_v60 = vsub.f32 %v669_v27, %v5727_v50  ;;  %v8191_v27 = vand.u32 4294901760, %v5775_v7  ;;  %8313 = vst [vmem:[#allocation9_spill] sm:$0xff] %v5808_v35 }
  0x93   : > { %4857 = vmatmul.msk.f32.vlgmr.msra.gmra.mxu3 %vm5497_vm3, %v8199_v31  ;;  %1384 = vmatpush.msrb.mxu0 %v5641_v34  ;;  %v1463_v49 = vsub.f32 %v5730_v46, %v8195_v26  ;;  %v5835_v52 = vsub.f32 %v664_v48, %v5808_v35 }
  0x94   : > { %1524 = vmatpush.msrb.mxu2 %v5644_v23  ;;  %1574 = vmatpush.msrb.mxu3 %v5614_v62  ;;  %v5744_v10 = vsub.f32 %v670_v1, %v5715_v22  ;;  %v1452_v36 = vand.u32 4294901760, %v1451_v12  ;;  %v8192_v54 = vand.u32 4294901760, %v5762_v60  ;;  %v1458_v1 = vand.u32 4294901760, %v1457_v33  ;;  %v685_v23 = vld [vmem:[%s5072_s15 + $0x1b0] sm:$0xff] }
  0x95   : > { %1263 = vmatpush.msra.mxu1 %v5478_v11  ;;  %1386 = vmatpush.msrb.mxu0 %v5649_v21  ;;  %v1445_v11 = vsub.f32 %v5675_v39, %v8201_v5  ;;  %v5822_v12 = vand.u32 4294901760, %v694_v53  ;;  %v5829_v33 = vand.u32 4294901760, %v663_v42  ;;  %v5879_v5 = vand.u32 4294901760, %v690_v51 }
  0x96   : > { %1267 = vmatmul.f32.vlgmr.msra.gmra.mxu1 %v1070_v15  ;;  %1527 = vmatpush.msrb.mxu2 %v5656_v20  ;;  %v666_v15 = vld [vmem:[%s5072_s15 + $0x118] sm:$0xff]  ;;  %v8194_v25 = vand.u32 4294901760, %v5744_v10  ;;  %v1475_v59 = vsub.f32 %v5762_v60, %v8192_v54  ;;  %v691_v54 = vld [vmem:[%s5072_s15 + $0x1e0] sm:$0xff] }
  0x97   : > { %1423 = vmatpush.msrb.mxu1 %v1422_v29  ;;  %1576 = vmatpush.msrb.mxu3 %v5622_v3  ;;  %v1446_v19 = vand.u32 4294901760, %v1445_v11  ;;  %v5771_v8 = vand.u32 4294901760, %v666_v15  ;;  %v8193_v11 = vand.u32 4294901760, %v5790_v43  ;;  %8314 = vst [vmem:[#allocation8_spill] sm:$0xff] %v5822_v12 }
  0x98   : > { %1388 = vmatpush.msrb.mxu0 %v5661_v30  ;;  %1530 = vmatpush.msrb.mxu2 %v5668_v6  ;;  %v1469_v18 = vsub.f32 %v5744_v10, %v8194_v25  ;;  %8315 = vst [vmem:[#allocation10_spill] sm:$0xff] %v5829_v33  ;;  %v5859_v25 = vsub.f32 %v663_v42, %v5829_v33 }
  0x99   : > { %1429 = vmatpush.msrb.mxu1 %v1428_v40  ;;  %1578 = vmatpush.msrb.mxu3 %v5630_v24  ;;  %v5803_v29 = vsub.f32 %v666_v15, %v5771_v8  ;;  %v1464_v40 = vand.u32 4294901760, %v1463_v49  ;;  %v693_v15 = vld [vmem:[%s5072_s15 + $0x1f0] sm:$0xff]  ;;  %v1476_v49 = vand.u32 4294901760, %v1475_v59 }
  0x9a   : > { %1390 = vmatpush.msrb.mxu0 %v5672_v13  ;;  %1533 = vmatpush.msrb.mxu2 %v5675_v39 }
  0x9b   : > { %1435 = vmatpush.msrb.mxu1 %v1434_v57  ;;  %1580 = vmatpush.msrb.mxu3 %v5641_v34  ;;  %v8204_v57 = vand.u32 4294901760, %v5795_v28  ;;  %v8197_v55 = vand.u32 4294901760, %v5803_v29 }
  0x9c   : > { %1392 = vmatpush.msrb.mxu0 %v5698_v37  ;;  %1536 = vmatpush.msrb.mxu2 %v5690_v4 }
  0x9d   : > { %1441 = vmatpush.msrb.mxu1 %v1440_v45  ;;  %1582 = vmatpush.msrb.mxu3 %v5649_v21  ;;  %v1470_v45 = vand.u32 4294901760, %v1469_v18  ;;  %v8202_v18 = vand.u32 4294901760, %v5817_v58  ;;  %v1412_v48 = vsub.f32 %v5795_v28, %v8204_v57  ;;  %v686_v57 = vld [vmem:[%s5072_s15 + $0x1b8] sm:$0xff] }
  0x9e   : > { %1394 = vmatpush.msrb.mxu0 %v5715_v22  ;;  %1539 = vmatpush.msrb.mxu2 %v5705_v14 }
  0x9f   : > { %1447 = vmatpush.msrb.mxu1 %v1446_v19  ;;  %1584 = vmatpush.msrb.mxu3 %v5661_v30  ;;  %v1481_v19 = vsub.f32 %v5775_v7, %v8191_v27  ;;  %v5843_v27 = vand.u32 4294901760, %v693_v15  ;;  %v1499_v42 = vsub.f32 %v5817_v58, %v8202_v18  ;;  %v1413_v47 = vand.u32 4294901760, %v1412_v48 }
  0xa0   : > { %1396 = vmatpush.msrb.mxu0 %v5727_v50  ;;  %1542 = vmatpush.msrb.mxu2 %v5730_v46  ;;  %v8208_v18 = vand.u32 4294901760, %v5859_v25 }
  0xa1   : > { %1453 = vmatpush.msrb.mxu1 %v1452_v36  ;;  %1586 = vmatpush.msrb.mxu3 %v5672_v13  ;;  %v692_v36 = vld [vmem:[%s5072_s15 + $0x1e8] sm:$0xff]  ;;  %v1482_v59 = vand.u32 4294901760, %v1481_v19 }
  0xa2   : > { %1398 = vmatpush.msrb.mxu0 %v5741_v0  ;;  %1545 = vmatpush.msrb.mxu2 %v5744_v10  ;;  %v5861_v26 = vand.u32 4294901760, %v692_v36 }
  0xa3   : > { %1459 = vmatpush.msrb.mxu1 %v1458_v1  ;;  %1588 = vmatpush.msrb.mxu3 %v5698_v37  ;;  %v1487_v1 = vsub.f32 %v5790_v43, %v8193_v11  ;;  %v1493_v11 = vsub.f32 %v5803_v29, %v8197_v55  ;;  %v5874_v55 = vsub.f32 %v693_v15, %v5843_v27 }
  0xa4   : > { %1400 = vmatpush.msrb.mxu0 %v5758_v44  ;;  %1548 = vmatpush.msrb.mxu2 %v5762_v60  ;;  %v5885_v15 = vsub.f32 %v692_v36, %v5861_v26 }
  0xa5   : > { %1465 = vmatpush.msrb.mxu1 %v1464_v40  ;;  %1590 = vmatpush.msrb.mxu3 %v5715_v22  ;;  %v5852_v40 = vsub.f32 %v694_v53, %v5822_v12  ;;  %v8205_v53 = vand.u32 4294901760, %v5835_v52  ;;  %v1488_v19 = vand.u32 4294901760, %v1487_v1  ;;  %v1494_v1 = vand.u32 4294901760, %v1493_v11 }
  0xa6   : > { %1402 = vmatpush.msrb.mxu0 %v5771_v8  ;;  %1551 = vmatpush.msrb.mxu2 %v5775_v7  ;;  %v1500_v11 = vand.u32 4294901760, %v1499_v42  ;;  %v8316_v61 = vand.u32 4294901760, %v5874_v55 }
  0xa7   : > { %1471 = vmatpush.msrb.mxu1 %v1470_v45  ;;  %1592 = vmatpush.msrb.mxu3 %v5727_v50  ;;  %v5867_v45 = vand.u32 4294901760, %v691_v54  ;;  %v8207_v31 = vand.u32 4294901760, %v5852_v40  ;;  %v1505_v48 = vsub.f32 %v5835_v52, %v8205_v53 }
  0xa8   : > { %1404 = vmatpush.msrb.mxu0 %v5786_v38  ;;  %1554 = vmatpush.msrb.mxu2 %v5790_v43 }
  0xa9   : > { %1477 = vmatpush.msrb.mxu1 %v1476_v49  ;;  %1594 = vmatpush.msrb.mxu3 %v5741_v0  ;;  %v689_v49 = vld [vmem:[%s5072_s15 + $0x1d0] sm:$0xff]  ;;  %v5893_v9 = vsub.f32 %v691_v54, %v5867_v45  ;;  %v1762_v53 = vsub.f32 %v5852_v40, %v8207_v31  ;;  %v5905_v54 = vsub.f32 %v690_v51, %v5879_v5  ;;  %v1506_v51 = vand.u32 4294901760, %v1505_v48 }
  0xaa   : > { %1406 = vmatpush.msrb.mxu0 %v5808_v35  ;;  %1557 = vmatpush.msrb.mxu2 %v5803_v29  ;;  %v5898_v36 = vand.u32 4294901760, %v689_v49  ;;  %v8320_v31 = vand.u32 4294901760, %v5668_v6 }
  0xab   : > { %1483 = vmatpush.msrb.mxu1 %v1482_v59  ;;  %1596 = vmatpush.msrb.mxu3 %v5758_v44  ;;  %v688_v59 = vld [vmem:[%s5072_s15 + $0x1c8] sm:$0xff]  ;;  %v1763_v48 = vand.u32 4294901760, %v1762_v53  ;;  %v8318_v53 = vand.u32 4294901760, %v5893_v9  ;;  %v8349_v16 = vand.u32 4294901760, %v5905_v54 }
  0xac   : > { %1408 = vmatpush.msrb.mxu0 %v5829_v33  ;;  %1560 = vmatpush.msrb.mxu2 %v5817_v58  ;;  %v5914_v42 = vand.u32 4294901760, %v688_v59 }
  0xad   : > { %1489 = vmatpush.msrb.mxu1 %v1488_v19  ;;  %1598 = vmatpush.msrb.mxu3 %v5771_v8  ;;  %v1511_v19 = vsub.f32 %v5859_v25, %v8208_v18  ;;  %v5928_v18 = vand.u32 4294901760, %v687_v41 }
  0xae   : > { %1414 = vmatmul.f32.vlgmr.msrb.gmra.mxu0 %v1413_v47  ;;  %1563 = vmatpush.msrb.mxu2 %v5835_v52  ;;  %v8210_v47 = vand.u32 4294901760, %v5885_v15 }
  0xaf   : > { %1615 = vmatpush.msra.mxu0 %v1420_v56  ;;  %1495 = vmatpush.msrb.mxu1 %v1494_v1  ;;  %v1768_v56 = vsub.f32 %v5874_v55, %v8316_v61  ;;  %v5926_v1 = vsub.f32 %v689_v49, %v5898_v36  ;;  %v5941_v61 = vsub.f32 %v688_v59, %v5914_v42 }
  0xb0   : > { %1600 = vmatpush.msrb.mxu3 %v5786_v38  ;;  %1566 = vmatpush.msrb.mxu2 %v5859_v25  ;;  %v1774_v49 = vsub.f32 %v5885_v15, %v8210_v47 }
  0xb1   : > { %1619 = vmatpush.msra.mxu0 %v1426_v32  ;;  %1501 = vmatpush.msrb.mxu1 %v1500_v11  ;;  %v8317_v32 = vand.u32 4294901760, %v5656_v20  ;;  %v1512_v11 = vand.u32 4294901760, %v1511_v19  ;;  %v1780_v20 = vsub.f32 %v5893_v9, %v8318_v53  ;;  %v8319_v19 = vand.u32 4294901760, %v5795_v28 }
  0xb2   : > { %1602 = vmatpush.msrb.mxu3 %v5808_v35  ;;  %1569 = vmatmul.f32.vlgmr.msrb.gmra.mxu2 %v5795_v28  ;;  %v5943_v35 = vand.u32 4294901760, %v686_v57  ;;  %v1769_v47 = vand.u32 4294901760, %v1768_v56  ;;  %v8321_v53 = vand.u32 4294901760, %v5905_v54  ;;  %v1775_v6 = vand.u32 4294901760, %v1774_v49 }
  0xb3   : > { %1623 = vmatpush.msra.mxu0 %v8317_v32  ;;  %1719 = vmatpush.msra.mxu2 %v5822_v12  ;;  %v684_v32 = vld [vmem:[%s5072_s15 + $0x1a8] sm:$0xff]  ;;  %v5956_v12 = vsub.f32 %v687_v41, %v5928_v18  ;;  %v8325_v56 = vand.u32 4294901760, %v5690_v4 }
  0xb4   : > { %1507 = vmatpush.msrb.mxu1 %v1506_v51  ;;  %1604 = vmatpush.msrb.mxu3 %v5829_v33  ;;  %v5958_v51 = vand.u32 4294901760, %v685_v23  ;;  %v1786_v28 = vsub.f32 %v5905_v54, %v8321_v53  ;;  %v5969_v41 = vsub.f32 %v686_v57, %v5943_v35  ;;  %v5971_v59 = vand.u32 4294901760, %v684_v32  ;;  %v682_v53 = vld [vmem:[%s5072_s15 + $0x198] sm:$0xff] }
  0xb5   : > { %1608 = vmatmul.f32.vlgmr.msrb.gmra.mxu3 %v8319_v19  ;;  %1627 = vmatpush.msra.mxu0 %v8320_v31  ;;  %v683_v19 = vld [vmem:[%s5072_s15 + $0x1a0] sm:$0xff]  ;;  %v8322_v31 = vand.u32 4294901760, %v5675_v39  ;;  %v8323_v33 = vmov 1.0   ;;  %v8324_v39 = vand.u32 4294901760, %v5926_v1  ;;  %v6000_v4 = vand.u32 4294901760, %v682_v53 }
  0xb6   : > { %1721 = vmatpush.msra.mxu2 %v5843_v27  ;;  %1764 = vmatpush.msra.mxu3 %v1763_v48  ;;  %v1781_v48 = vand.u32 4294901760, %v1780_v20  ;;  %v5984_v49 = vsub.f32 %v685_v23, %v5958_v51  ;;  %v1787_v20 = vand.u32 4294901760, %v1786_v28  ;;  %v5998_v57 = vsub.f32 %v684_v32, %v5971_v59  ;;  %v680_v23 = vld [vmem:[%s5072_s15 + $0x188] sm:$0xff] }
  0xb7   : > { %1513 = vmatpush.msrb.mxu1 %v1512_v11  ;;  %1631 = vmatpush.msra.mxu0 %v8322_v31  ;;  %v1792_v11 = vsub.f32 %v5926_v1, %v8324_v39  ;;  %v5986_v31 = vand.u32 4294901760, %v683_v19  ;;  %v8327_v28 = vand.u32 4294901760, %v5705_v14  ;;  %v8329_v14 = vand.u32 4294901760, %v5730_v46 }
  0xb8   : > { %4858 = vmatmul.msk.f32.vlgmr.msrb.gmra.mxu1 %vm5753_vm4, %v8323_v33  ;;  %1723 = vmatpush.msra.mxu2 %v5861_v26  ;;  %v1821_v46 = vand.u32 4294901760, %v5998_v57  ;;  %v8333_v32 = vand.u32 4294901760, %v5744_v10  ;;  %v8335_v10 = vand.u32 4294901760, %v5762_v60  ;;  %v8336_v60 = vand.u32 4294901760, %v5775_v7 }
  0xb9   : > { %1682 = vmatpush.msra.mxu1 %v5614_v62  ;;  %1770 = vmatpush.msra.mxu3 %v1769_v47  ;;  %v617_v62 = vperm.slane %v5365_v63, 3  ;;  %v8326_v47 = vand.u32 4294901760, %v5941_v61  ;;  %v1793_v63 = vand.u32 4294901760, %v1792_v11 }
  0xba   : > { %1635 = vmatpush.msra.mxu0 %v8325_v56  ;;  %1725 = vmatpush.msra.mxu2 %v5867_v45  ;;  %v681_v56 = vld [vmem:[%s5072_s15 + $0x190] sm:$0xff] }
  0xbb   : > { %1684 = vmatpush.msra.mxu1 %v5622_v3  ;;  %1776 = vmatpush.msra.mxu3 %v1775_v6  ;;  %v1798_v39 = vsub.f32 %v5941_v61, %v8326_v47  ;;  %v8328_v3 = vand.u32 4294901760, %v5956_v12  ;;  %v6012_v47 = vsub.f32 %v683_v19, %v5986_v31  ;;  %vm6021_vm5 = vcmp.eq.s32.totalorder %v5387_v17, %v617_v62 }
  0xbc   : > { %1639 = vmatpush.msra.mxu0 %v8327_v28  ;;  %1727 = vmatpush.msra.mxu2 %v5879_v5  ;;  %v6018_v28 = vand.u32 4294901760, %v681_v56  ;;  %v8332_v19 = vand.u32 4294901760, %v5969_v41  ;;  %v6037_v17 = vand.u32 4294901760, %v680_v23 }
  0xbd   : > { %1686 = vmatpush.msra.mxu1 %v5630_v24  ;;  %1782 = vmatpush.msra.mxu3 %v1781_v48  ;;  %v1804_v6 = vsub.f32 %v5956_v12, %v8328_v3  ;;  %v1799_v48 = vand.u32 4294901760, %v1798_v39  ;;  %v6031_v3 = vsub.f32 %v682_v53, %v6000_v4  ;;  %v1827_v39 = vand.u32 4294901760, %v6012_v47 }
  0xbe   : > { %1643 = vmatpush.msra.mxu0 %v8329_v14  ;;  %1729 = vmatpush.msra.mxu2 %v5898_v36  ;;  %v1810_v11 = vsub.f32 %v5969_v41, %v8332_v19  ;;  %v679_v14 = vld [vmem:[%s5072_s15 + $0x180] sm:$0xff]  ;;  %v4851_v53 = vsel %vm6021_vm5, 1.0, %v8294_v2 }
  0xbf   : > { %1688 = vmatpush.msra.mxu1 %v5641_v34  ;;  %1788 = vmatpush.msra.mxu3 %v1787_v20  ;;  %v1805_v34 = vand.u32 4294901760, %v1804_v6  ;;  %v8334_v20 = vand.u32 4294901760, %v5984_v49  ;;  %v1822_v6 = vsub.f32 %v5998_v57, %v1821_v46  ;;  %v1833_v2 = vand.u32 4294901760, %v6031_v3 }
  0xc0   : > { %1647 = vmatpush.msra.mxu0 %v8333_v32  ;;  %1731 = vmatpush.msra.mxu2 %v5914_v42  ;;  %v6051_v32 = vsub.f32 %v681_v56, %v6018_v28  ;;  %v6064_v56 = vsub.f32 %v680_v23, %v6037_v17  ;;  %v6066_v19 = vsub.f32 %v4851_v53, %v4851_v53 }
  0xc1   : > { %1690 = vmatpush.msra.mxu1 %v5649_v21  ;;  %1794 = vmatpush.msra.mxu3 %v1793_v63  ;;  %v1816_v62 = vsub.f32 %v5984_v49, %v8334_v20  ;;  %v6053_v21 = vand.u32 4294901760, %v679_v14  ;;  %v1811_v63 = vand.u32 4294901760, %v1810_v11  ;;  %v8337_v11 = vand.u32 4294901760, %v5790_v43 }
  0xc2   : > { %1651 = vmatpush.msra.mxu0 %v8335_v10  ;;  %1733 = vmatpush.msra.mxu2 %v5928_v18  ;;  %v1839_v7 = vand.u32 4294901760, %v6051_v32  ;;  %v8338_v20 = vand.u32 4294901760, %v5803_v29  ;;  %v1845_v43 = vand.u32 4294901760, %v6064_v56 }
  0xc3   : > { %1692 = vmatpush.msra.mxu1 %v5661_v30  ;;  %1800 = vmatpush.msra.mxu3 %v1799_v48  ;;  %v1817_v30 = vand.u32 4294901760, %v1816_v62  ;;  %v1828_v48 = vsub.f32 %v6012_v47, %v1827_v39  ;;  %v6077_v23 = vsub.f32 %v679_v14, %v6053_v21  ;;  %v1752_v62 = vand.u32 4294901760, %v6066_v19 }
  0xc4   : > { %1655 = vmatpush.msra.mxu0 %v8336_v60  ;;  %1735 = vmatpush.msra.mxu2 %v5943_v35  ;;  %v1840_v29 = vsub.f32 %v6051_v32, %v1839_v7 }
  0xc5   : > { %1694 = vmatpush.msra.mxu1 %v5672_v13  ;;  %1806 = vmatpush.msra.mxu3 %v1805_v34  ;;  %v1823_v13 = vand.u32 4294901760, %v1822_v6  ;;  %v1834_v34 = vsub.f32 %v6031_v3, %v1833_v2  ;;  %v1829_v14 = vand.u32 4294901760, %v1828_v48  ;;  %v1851_v53 = vand.u32 4294901760, %v6077_v23  ;;  %v8346_v48 = vld [vmem:[#allocation10_spill] sm:$0xff] }
  0xc6   : > { %1659 = vmatpush.msra.mxu0 %v8337_v11  ;;  %1737 = vmatpush.msra.mxu2 %v5958_v51 }
  0xc7   : > { %1696 = vmatpush.msra.mxu1 %v5698_v37  ;;  %1812 = vmatpush.msra.mxu3 %v1811_v63  ;;  %v8339_v37 = vand.u32 4294901760, %v5817_v58  ;;  %v1835_v10 = vand.u32 4294901760, %v1834_v34  ;;  %v8340_v63 = vand.u32 4294901760, %v5835_v52  ;;  %v1753_v58 = vsub.f32 %v6066_v19, %v1752_v62 }
  0xc8   : > { %1663 = vmatpush.msra.mxu0 %v8338_v20  ;;  %1739 = vmatpush.msra.mxu2 %v5971_v59  ;;  %v1841_v52 = vand.u32 4294901760, %v1840_v29  ;;  %v1852_v6 = vsub.f32 %v6077_v23, %v1851_v53 }
  0xc9   : > { %1698 = vmatpush.msra.mxu1 %v5715_v22  ;;  %1818 = vmatpush.msra.mxu3 %v1817_v30  ;;  %v1846_v22 = vsub.f32 %v6064_v56, %v1845_v43  ;;  %v1754_v60 = vand.u32 4294901760, %v1753_v58  ;;  %v8343_v30 = vld [vmem:[#allocation9_spill] sm:$0xff] }
  0xca   : > { %1667 = vmatpush.msra.mxu0 %v8339_v37  ;;  %1741 = vmatpush.msra.mxu2 %v5986_v31 }
  0xcb   : > { %1700 = vmatpush.msra.mxu1 %v5727_v50  ;;  %1824 = vmatpush.msra.mxu3 %v1823_v13  ;;  %v8341_v50 = vand.u32 4294901760, %v5859_v25  ;;  %v1853_v25 = vand.u32 4294901760, %v1852_v6 }
  0xcc   : > { %1671 = vmatpush.msra.mxu0 %v8340_v63  ;;  %1743 = vmatpush.msra.mxu2 %v6000_v4 }
  0xcd   : > { %1702 = vmatpush.msra.mxu1 %v5741_v0  ;;  %1830 = vmatpush.msra.mxu3 %v1829_v14  ;;  %v1847_v0 = vand.u32 4294901760, %v1846_v22 }
  0xce   : > { %1675 = vmatpush.msra.mxu0 %v8341_v50  ;;  %1745 = vmatpush.msra.mxu2 %v6018_v28  ;;  %v630_v50 = vld [vmem:[#allocation2] sm:$0xff] }
  0xcf   : > { %1704 = vmatpush.msra.mxu1 %v5758_v44  ;;  %1836 = vmatpush.msra.mxu3 %v1835_v10  ;;  %v8342_v44 = vand.u32 4294901760, %v5852_v40 }
  0xd0   : > { %4859 = vmatmul.msk.f32.vlgmr.msra.gmra.mxu0 %vm5753_vm4, %v8323_v33  ;;  %1747 = vmatpush.msra.mxu2 %v6037_v17 }
  0xd1   : > { %1862 = vmatpush.msrb.mxu0 %v5852_v40  ;;  %1706 = vmatpush.msra.mxu1 %v5771_v8  ;;  %v8344_v8 = vand.u32 4294901760, %v5874_v55  ;;  %v8347_v40 = vand.u32 4294901760, %v5885_v15 }
  0xd2   : > { %1842 = vmatpush.msra.mxu3 %v1841_v52  ;;  %1749 = vmatpush.msra.mxu2 %v6053_v21 }
  0xd3   : > { %1865 = vmatpush.msrb.mxu0 %v5874_v55  ;;  %1708 = vmatpush.msra.mxu1 %v5786_v38  ;;  %v8345_v38 = vld [vmem:[#allocation8_spill] sm:$0xff]  ;;  %v8348_v55 = vand.u32 4294901760, %v5893_v9 }
  0xd4   : > { %1848 = vmatpush.msra.mxu3 %v1847_v0  ;;  %1755 = vmatmul.f32.vlgmr.msra.gmra.mxu2 %v1754_v60 }
  0xd5   : > { %1868 = vmatpush.msrb.mxu0 %v5885_v15  ;;  %1956 = vmatpush.msrb.mxu2 %v8342_v44  ;;  %v8350_v15 = vand.u32 4294901760, %v5926_v1 }
  0xd6   : > { %1710 = vmatpush.msra.mxu1 %v8343_v30  ;;  %1854 = vmatpush.msra.mxu3 %v1853_v25 }
  0xd7   : > { %4861 = vmatmul.msk.f32.vlgmr.msra.gmra.mxu3 %vm6021_vm5, %v8323_v33  ;;  %1871 = vmatpush.msrb.mxu0 %v5893_v9  ;;  %v8351_v9 = vand.u32 4294901760, %v5941_v61 }
  0xd8   : > { %1960 = vmatpush.msrb.mxu2 %v8344_v8  ;;  %2023 = vmatpush.msrb.mxu3 %v8345_v38 }
  0xd9   : > { %1712 = vmatpush.msra.mxu1 %v8346_v48  ;;  %1874 = vmatpush.msrb.mxu0 %v5905_v54 }
  0xda   : > { %4860 = vmatmul.msk.f32.vlgmr.msra.gmra.mxu1 %vm5753_vm4, %v8323_v33  ;;  %1964 = vmatpush.msrb.mxu2 %v8347_v40 }
  0xdb   : > { %1915 = vmatpush.msrb.mxu1 %v8345_v38  ;;  %2025 = vmatpush.msrb.mxu3 %v5843_v27 }
  0xdc   : > { %1877 = vmatpush.msrb.mxu0 %v5926_v1  ;;  %1968 = vmatpush.msrb.mxu2 %v8348_v55 }
  0xdd   : > { %1917 = vmatpush.msrb.mxu1 %v5843_v27  ;;  %2027 = vmatpush.msrb.mxu3 %v5861_v26  ;;  %v8353_v27 = vand.u32 4294901760, %v5969_v41 }
  0xde   : > { %1880 = vmatpush.msrb.mxu0 %v5941_v61  ;;  %1972 = vmatpush.msrb.mxu2 %v8349_v16 }
  0xdf   : > { %1919 = vmatpush.msrb.mxu1 %v5861_v26  ;;  %2029 = vmatpush.msrb.mxu3 %v5867_v45  ;;  %v8352_v26 = vand.u32 4294901760, %v5956_v12 }
  0xe0   : > { %1883 = vmatpush.msrb.mxu0 %v5956_v12  ;;  %1976 = vmatpush.msrb.mxu2 %v8350_v15 }
  0xe1   : > { %1921 = vmatpush.msrb.mxu1 %v5867_v45  ;;  %2031 = vmatpush.msrb.mxu3 %v5879_v5 }
  0xe2   : > { %1886 = vmatpush.msrb.mxu0 %v5969_v41  ;;  %1980 = vmatpush.msrb.mxu2 %v8351_v9  ;;  %v733_v12 = vpop.f32.mrf.mxu0 }
  0xe3   : > { %1923 = vmatpush.msrb.mxu1 %v5879_v5  ;;  %2033 = vmatpush.msrb.mxu3 %v5898_v36  ;;  %v8354_v5 = vand.u32 4294901760, %v5984_v49 }
  0xe4   : > { %1889 = vmatpush.msrb.mxu0 %v5984_v49  ;;  %1984 = vmatpush.msrb.mxu2 %v8352_v26 }
  0xe5   : > { %1925 = vmatpush.msrb.mxu1 %v5898_v36  ;;  %2035 = vmatpush.msrb.mxu3 %v5914_v42 }
  0xe6   : > { %1892 = vmatpush.msrb.mxu0 %v5998_v57  ;;  %1988 = vmatpush.msrb.mxu2 %v8353_v27 }
  0xe7   : > { %1927 = vmatpush.msrb.mxu1 %v5914_v42  ;;  %2037 = vmatpush.msrb.mxu3 %v5928_v18 }
  0xe8   : > { %1895 = vmatpush.msrb.mxu0 %v6012_v47  ;;  %1992 = vmatpush.msrb.mxu2 %v8354_v5 }
  0xe9   : > { %1929 = vmatpush.msrb.mxu1 %v5928_v18  ;;  %2039 = vmatpush.msrb.mxu3 %v5943_v35 }
  0xea   : > { %1898 = vmatpush.msrb.mxu0 %v6031_v3  ;;  %1996 = vmatpush.msrb.mxu2 %v1821_v46 }
  0xeb   : > { %1931 = vmatpush.msrb.mxu1 %v5943_v35  ;;  %2041 = vmatpush.msrb.mxu3 %v5958_v51 }
  0xec   : > { %1901 = vmatpush.msrb.mxu0 %v6051_v32  ;;  %2000 = vmatpush.msrb.mxu2 %v1827_v39  ;;  %v834_v35 = vpop.f32.mrf.mxu1 }
  0xed   : > { %1933 = vmatpush.msrb.mxu1 %v5958_v51  ;;  %2043 = vmatpush.msrb.mxu3 %v5971_v59  ;;  %v835_v18 = vadd.f32 %v834_v35, %v733_v12 }
  0xee   : > { %1904 = vmatpush.msrb.mxu0 %v6064_v56  ;;  %2004 = vmatpush.msrb.mxu2 %v1833_v2  ;;  %v888_v45 = vpop.f32.mrf.mxu2  ;;  %v927_v54 = vpop.f32.mrf.mxu3 }
  0xef   : > { %1935 = vmatpush.msrb.mxu1 %v5971_v59  ;;  %2045 = vmatpush.msrb.mxu3 %v5986_v31  ;;  %v889_v36 = vadd.f32 %v888_v45, %v835_v18 }
  0xf0   : > { %1907 = vmatpush.msrb.mxu0 %v6077_v23  ;;  %2008 = vmatpush.msrb.mxu2 %v1839_v7 }
  0xf1   : > { %1937 = vmatpush.msrb.mxu1 %v5986_v31  ;;  %2047 = vmatpush.msrb.mxu3 %v6000_v4  ;;  %v928_v42 = vadd.f32 %v927_v54, %v889_v36 }
  0xf2   : > { %1910 = vmatmul.f32.vlgmr.msrb.gmra.mxu0 %v6066_v19  ;;  %2012 = vmatpush.msrb.mxu2 %v1845_v43 }
  0xf3   : > { %1939 = vmatpush.msrb.mxu1 %v6000_v4  ;;  %2049 = vmatpush.msrb.mxu3 %v6018_v28  ;;  %v996_v1 = vpop.f32.mrf.mxu0 }
  0xf4   : > { %2016 = vmatpush.msrb.mxu2 %v1851_v53  ;;  %v997_v61 = vadd.f32 %v996_v1, %v928_v42 }
  0xf5   : > { %1941 = vmatpush.msrb.mxu1 %v6018_v28  ;;  %2051 = vmatpush.msrb.mxu3 %v6037_v17 }
  0xf6   : > { %4862 = vmatmul.msk.f32.vlgmr.msrb.gmra.mxu2 %vm6021_vm5, %v8323_v33  ;;  %v1033_v59 = vpop.f32.mrf.mxu1 }
  0xf7   : > { %1943 = vmatpush.msrb.mxu1 %v6037_v17  ;;  %2053 = vmatpush.msrb.mxu3 %v6053_v21  ;;  %v1034_v51 = vadd.f32 %v1033_v59, %v997_v61  ;;  %v1074_v41 = vpop.f32.mrf.mxu2 }
  0xf8   : > { %4863 = vmatmul.msk.f32.vlgmr.msrb.gmra.mxu3 %vm6021_vm5, %v8323_v33 }
  0xf9   : > { %1945 = vmatpush.msrb.mxu1 %v6053_v21  ;;  %v1075_v57 = vadd.f32 %v1074_v41, %v1034_v51 }
  0xfa   : > { %1949 = vmatmul.f32.vlgmr.msrb.gmra.mxu1 %v1752_v62  ;;  %v1175_v49 = vpop.f32.mrf.mxu3 }
  0xfb   : > { %v1176_v31 = vadd.f32 %v1175_v49, %v1075_v57 }
 0x109   : > { %v1229_v33 = vpop.f32.mrf.mxu0 }
 0x10a   : > { %v1230_v47 = vadd.f32 %v1229_v33, %v1176_v31 }
 0x113   : > { %v1268_v4 = vpop.f32.mrf.mxu1  ;;  %v1337_v24 = vpop.f32.mrf.mxu2 }
 0x114   : > { %v1269_v28 = vadd.f32 %v1268_v4, %v1230_v47 }
 0x116   : > { %v1338_v46 = vadd.f32 %v1337_v24, %v1269_v28  ;;  %v1374_v3 = vpop.f32.mrf.mxu3 }
 0x118   : > { %v1375_v39 = vadd.f32 %v1374_v3, %v1338_v46 }
 0x12b   : > { %v1415_v17 = vpop.f32.mrf.mxu0 }
 0x12c   : > { %v1416_v21 = vadd.f32 %v1415_v17, %v1375_v39 }
 0x135   : > { %v1516_v32 = vpop.f32.mrf.mxu1  ;;  %v1570_v56 = vpop.f32.mrf.mxu2 }
 0x136   : > { %v1517_v2 = vadd.f32 %v1516_v32, %v1416_v21 }
 0x138   : > { %v1571_v19 = vadd.f32 %v1570_v56, %v1517_v2  ;;  %v1609_v11 = vpop.f32.mrf.mxu3 }
 0x13a   : > { %v1610_v23 = vadd.f32 %v1609_v11, %v1571_v19 }
 0x14d   : > { %v1678_v7 = vpop.f32.mrf.mxu0 }
 0x14e   : > { %v1679_v34 = vadd.f32 %v1678_v7, %v1610_v23 }
 0x157   : > { %v1715_v13 = vpop.f32.mrf.mxu1  ;;  %v1756_v43 = vpop.f32.mrf.mxu2 }
 0x158   : > { %v1716_v20 = vadd.f32 %v1715_v13, %v1679_v34 }
 0x15a   : > { %v1757_v62 = vadd.f32 %v1756_v43, %v1716_v20  ;;  %v1857_v14 = vpop.f32.mrf.mxu3 }
 0x15c   : > { %v1858_v29 = vadd.f32 %v1857_v14, %v1757_v62 }
 0x16f   : > { %v1911_v37 = vpop.f32.mrf.mxu0 }
 0x170   : > { %v1912_v53 = vadd.f32 %v1911_v37, %v1858_v29 }
 0x177   : > { %v1950_v10 = vpop.f32.mrf.mxu1 }
 0x178   : > { %v1951_v63 = vadd.f32 %v1950_v10, %v1912_v53 }
 0x179   : > { %v2019_v22 = vpop.f32.mrf.mxu2 }
 0x17a   : > { %v2020_v58 = vadd.f32 %v2019_v22, %v1951_v63 }
 0x17b   : > { %v2056_v52 = vpop.f32.mrf.mxu3 }
 0x17c   : > { %v2057_v6 = vadd.f32 %v2056_v52, %v2020_v58 }
 0x17e   : > { %v2059_v0 = vadd.f32 %v2057_v6, %v630_v50 }
 0x180   : > { %2061 = vst.msk [vmem:[#allocation2] sm:$0xff] %vm2060_vm6, %v2059_v0 }
 0x181 PF: > { %p4864_p11 = scmp.ge.s32.totalorder %s5049_s19, 5 }
 0x183   : > { %2065 = sbr.rel (%p4864_p11) target bundleno = 738 (0x2e2), region = 92 }
 0x188   : > { %v2101_v60 = vld [vmem:[%s5077_s25 + $0x78] sm:$0xff]  ;;  %v2100_v25 = vld [vmem:[%s5077_s25 + $0x70] sm:$0xff]  ;;  %v2099_v44 = vld [vmem:[%s5077_s25 + $0x68] sm:$0xff]  ;;  %vm3515_vm11 = vcmask 392192  }
 0x189   : > { %v6222_v30 = vand.u32 4294901760, %v2101_v60  ;;  %v6224_v8 = vand.u32 4294901760, %v2100_v25  ;;  %v6226_v38 = vand.u32 4294901760, %v2099_v44  ;;  %v2098_v48 = vld [vmem:[%s5077_s25 + $0x60] sm:$0xff]  ;;  %v2097_v40 = vld [vmem:[%s5077_s25 + $0x58] sm:$0xff]  ;;  %v2096_v55 = vld [vmem:[%s5077_s25 + $0x50] sm:$0xff] }
 0x18a   : > { %v6231_v16 = vand.u32 4294901760, %v2098_v48  ;;  %v6233_v15 = vand.u32 4294901760, %v2097_v40  ;;  %v6235_v9 = vand.u32 4294901760, %v2096_v55  ;;  %v2095_v26 = vld [vmem:[%s5077_s25 + $0x48] sm:$0xff]  ;;  %v2094_v27 = vld [vmem:[%s5077_s25 + $0x40] sm:$0xff]  ;;  %v2093_v45 = vld [vmem:[%s5077_s25 + $0x38] sm:$0xff] }
 0x18b   : > { %2151 = vmatpush.msra.mxu0 %v6222_v30  ;;  %v6241_v5 = vsub.f32 %v2101_v60, %v6222_v30  ;;  %v6244_v35 = vsub.f32 %v2100_v25, %v6224_v8  ;;  %2347 = vmatpush.msra.mxu3 %v6222_v30  ;;  %v6248_v12 = vsub.f32 %v2099_v44, %v6226_v38  ;;  %v6250_v18 = vand.u32 4294901760, %v2095_v26  ;;  %v2092_v41 = vld [vmem:[%s5077_s25 + $0x30] sm:$0xff]  ;;  %v2091_v3 = vld [vmem:[%s5077_s25 + $0x28] sm:$0xff]  ;;  %v2090_v56 = vld [vmem:[%s5077_s25 + $0x20] sm:$0xff] }
 0x18c   : > { %v6254_v36 = vsub.f32 %v2098_v48, %v6231_v16  ;;  %v6257_v54 = vsub.f32 %v2097_v40, %v6233_v15  ;;  %v6260_v42 = vsub.f32 %v2096_v55, %v6235_v9  ;;  %v6267_v51 = vand.u32 4294901760, %v2094_v27  ;;  %v2089_v34 = vld [vmem:[%s5077_s25 + $0x18] sm:$0xff]  ;;  %v2088_v29 = vld [vmem:[%s5077_s25 + $0x10] sm:$0xff]  ;;  %v2087_v52 = vld [vmem:[%s5077_s25 + $0x8] sm:$0xff] }
 0x18d   : > { %2153 = vmatpush.msra.mxu0 %v6224_v8  ;;  %2294 = vmatpush.msra.mxu2 %v6241_v5  ;;  %v2193_v1 = vand.u32 4294901760, %v6241_v5  ;;  %v8229_v61 = vand.u32 4294901760, %v6244_v35  ;;  %v8227_v59 = vand.u32 4294901760, %v6248_v12  ;;  %v6272_v49 = vand.u32 4294901760, %v2093_v45  ;;  %v2117_v58 = vld [vmem:[%s5077_s25 + $0xf8] sm:$0xff]  ;;  %v2086_v44 = vld [vmem:[%s5077_s25] sm:$0xff] }
 0x18e   : > { %2349 = vmatpush.msra.mxu3 %v6224_v8  ;;  %v8224_v57 = vand.u32 4294901760, %v6254_v36  ;;  %v6275_v33 = vsub.f32 %v2095_v26, %v6250_v18  ;;  %v8223_v28 = vand.u32 4294901760, %v6257_v54  ;;  %v6290_v24 = vand.u32 4294901760, %v2092_v41  ;;  %v2116_v48 = vld [vmem:[%s5077_s25 + $0xf0] sm:$0xff] }
 0x18f   : > { %2155 = vmatpush.msra.mxu0 %v6226_v38  ;;  %2297 = vmatpush.msra.mxu2 %v6244_v35  ;;  %v2194_v31 = vsub.f32 %v6241_v5, %v2193_v1  ;;  %v2200_v4 = vsub.f32 %v6244_v35, %v8229_v61  ;;  %v2206_v47 = vsub.f32 %v6248_v12, %v8227_v59  ;;  %v8221_v46 = vand.u32 4294901760, %v6260_v42 }
 0x190   : > { %2351 = vmatpush.msra.mxu3 %v6226_v38  ;;  %v2212_v32 = vsub.f32 %v6254_v36, %v8224_v57  ;;  %v6300_v21 = vsub.f32 %v2094_v27, %v6267_v51  ;;  %v6304_v2 = vsub.f32 %v2093_v45, %v6272_v49  ;;  %v2218_v11 = vsub.f32 %v6257_v54, %v8223_v28  ;;  %v2109_v57 = vld [vmem:[%s5077_s25 + $0xb8] sm:$0xff] }
 0x191   : > { %2157 = vmatpush.msra.mxu0 %v6231_v16  ;;  %v2195_v17 = vand.u32 4294901760, %v2194_v31  ;;  %2300 = vmatpush.msra.mxu2 %v6248_v12  ;;  %v2201_v39 = vand.u32 4294901760, %v2200_v4  ;;  %v2207_v19 = vand.u32 4294901760, %v2206_v47  ;;  %v6311_v7 = vand.u32 4294901760, %v2091_v3  ;;  %v2115_v47 = vld [vmem:[%s5077_s25 + $0xe8] sm:$0xff] }
 0x192   : > { %2353 = vmatpush.msra.mxu3 %v6231_v16  ;;  %v8220_v23 = vand.u32 4294901760, %v6275_v33  ;;  %v2224_v13 = vsub.f32 %v6260_v42, %v8221_v46  ;;  %v2213_v20 = vand.u32 4294901760, %v2212_v32  ;;  %v6321_v43 = vand.u32 4294901760, %v2090_v56 }
 0x193   : > { %2159 = vmatpush.msra.mxu0 %v6233_v15  ;;  %2196 = vmatpush.msra.mxu1 %v2195_v17  ;;  %v8219_v62 = vand.u32 4294901760, %v6300_v21  ;;  %v6325_v14 = vsub.f32 %v2092_v41, %v6290_v24  ;;  %v8217_v37 = vand.u32 4294901760, %v6304_v2  ;;  %v2219_v53 = vand.u32 4294901760, %v2218_v11  ;;  %v2114_v11 = vld [vmem:[%s5077_s25 + $0xe0] sm:$0xff] }
 0x194   : > { %2303 = vmatpush.msra.mxu2 %v6254_v36  ;;  %2355 = vmatpush.msra.mxu3 %v6233_v15  ;;  %v2230_v10 = vsub.f32 %v6275_v33, %v8220_v23  ;;  %v6335_v63 = vand.u32 4294901760, %v2089_v34  ;;  %v6338_v22 = vsub.f32 %v2091_v3, %v6311_v7  ;;  %v2225_v50 = vand.u32 4294901760, %v2224_v13  ;;  %v2110_v23 = vld [vmem:[%s5077_s25 + $0xc0] sm:$0xff] }
 0x195   : > { %2161 = vmatpush.msra.mxu0 %v6235_v9  ;;  %2202 = vmatpush.msra.mxu1 %v2201_v39  ;;  %v2236_v6 = vsub.f32 %v6300_v21, %v8219_v62  ;;  %v6348_v0 = vand.u32 4294901760, %v2088_v29  ;;  %v8216_v60 = vand.u32 4294901760, %v6325_v14  ;;  %v6352_v25 = vsub.f32 %v2090_v56, %v6321_v43 }
 0x196   : > { %2306 = vmatpush.msra.mxu2 %v6257_v54  ;;  %2357 = vmatpush.msra.mxu3 %v6235_v9  ;;  %v2242_v40 = vsub.f32 %v6304_v2, %v8217_v37  ;;  %v6361_v55 = vand.u32 4294901760, %v2117_v58  ;;  %v2231_v26 = vand.u32 4294901760, %v2230_v10  ;;  %v6364_v27 = vand.u32 4294901760, %v2087_v52 }
 0x197   : > { %2163 = vmatpush.msra.mxu0 %v6250_v18  ;;  %2208 = vmatpush.msra.mxu1 %v2207_v19  ;;  %v8215_v45 = vand.u32 4294901760, %v6338_v22  ;;  %v6368_v41 = vsub.f32 %v2089_v34, %v6335_v63  ;;  %v6372_v31 = vand.u32 4294901760, %v2086_v44  ;;  %v6374_v4 = vand.u32 4294901760, %v2116_v48 }
 0x198   : > { %2309 = vmatpush.msra.mxu2 %v6260_v42  ;;  %2359 = vmatpush.msra.mxu3 %v6250_v18  ;;  %8355 = vst [vmem:[#allocation12_spill] sm:$0xff] %v6361_v55  ;;  %v2237_v3 = vand.u32 4294901760, %v2236_v6  ;;  %v2248_v17 = vsub.f32 %v6325_v14, %v8216_v60  ;;  %v8214_v39 = vand.u32 4294901760, %v6352_v25  ;;  %v6383_v32 = vsub.f32 %v2088_v29, %v6348_v0  ;;  %v2111_v60 = vld [vmem:[%s5077_s25 + $0xc8] sm:$0xff] }
 0x199   : > { %2165 = vmatpush.msra.mxu0 %v6267_v51  ;;  %2214 = vmatpush.msra.mxu1 %v2213_v20  ;;  %8356 = vst [vmem:[#allocation13_spill] sm:$0xff] %v6364_v27  ;;  %v2243_v56 = vand.u32 4294901760, %v2242_v40  ;;  %v6388_v19 = vsub.f32 %v2117_v58, %v6361_v55  ;;  %v2254_v13 = vsub.f32 %v6338_v22, %v8215_v45  ;;  %v8218_v34 = vand.u32 4294901760, %v6368_v41 }
 0x19a   : > { %2312 = vmatpush.msra.mxu2 %v6275_v33  ;;  %2361 = vmatpush.msra.mxu3 %v6267_v51  ;;  %8357 = vst [vmem:[#allocation14_spill] sm:$0xff] %v6372_v31  ;;  %v6397_v20 = vsub.f32 %v2087_v52, %v6364_v27  ;;  %v6399_v29 = vand.u32 4294901760, %v2115_v47  ;;  %v6405_v10 = vsub.f32 %v2086_v44, %v6372_v31  ;;  %v8222_v6 = vand.u32 4294901760, %v6383_v32 }
 0x19b   : > { %2167 = vmatpush.msra.mxu0 %v6272_v49  ;;  %2220 = vmatpush.msra.mxu1 %v2219_v53  ;;  %8358 = vst [vmem:[#allocation15_spill] sm:$0xff] %v6374_v4  ;;  %v2113_v53 = vld [vmem:[%s5077_s25 + $0xd8] sm:$0xff]  ;;  %v6408_v58 = vsub.f32 %v2116_v48, %v6374_v4  ;;  %v2260_v52 = vsub.f32 %v6352_v25, %v8214_v39  ;;  %v6415_v40 = vand.u32 4294901760, %v2114_v11  ;;  %v8225_v44 = vand.u32 4294901760, %v6388_v19 }
 0x19c   : > { %2315 = vmatpush.msra.mxu2 %v6300_v21  ;;  %2363 = vmatpush.msra.mxu3 %v6272_v49  ;;  %v6420_v48 = vand.u32 4294901760, %v2113_v53  ;;  %v8226_v39 = vand.u32 4294901760, %v6397_v20  ;;  %v6429_v45 = vsub.f32 %v2115_v47, %v6399_v29  ;;  %v8230_v37 = vand.u32 4294901760, %v6405_v10 }
 0x19d   : > { %2169 = vmatpush.msra.mxu0 %v6290_v24  ;;  %2226 = vmatpush.msra.mxu1 %v2225_v50  ;;  %v2249_v50 = vand.u32 4294901760, %v2248_v17  ;;  %v2266_v17 = vsub.f32 %v6368_v41, %v8218_v34  ;;  %v2272_v34 = vsub.f32 %v6383_v32, %v8222_v6  ;;  %v6441_v47 = vsub.f32 %v2114_v11, %v6415_v40 }
 0x19e   : > { %2318 = vmatpush.msra.mxu2 %v6304_v2  ;;  %2365 = vmatpush.msra.mxu3 %v6290_v24  ;;  %v6454_v46 = vand.u32 4294901760, %v2111_v60  ;;  %v2278_v6 = vsub.f32 %v6397_v20, %v8226_v39  ;;  %v8231_v28 = vand.u32 4294901760, %v6429_v45  ;;  %v6484_v61 = vand.u32 4294901760, %v2109_v57 }
 0x19f   : > { %2171 = vmatpush.msra.mxu0 %v6311_v7  ;;  %2232 = vmatpush.msra.mxu1 %v2231_v26  ;;  %v2112_v26 = vld [vmem:[%s5077_s25 + $0xd0] sm:$0xff]  ;;  %v2267_v11 = vand.u32 4294901760, %v2266_v17  ;;  %v2284_v17 = vsub.f32 %v6405_v10, %v8230_v37 }
 0x1a0   : > { %2321 = vmatpush.msra.mxu2 %v6325_v14  ;;  %2367 = vmatpush.msra.mxu3 %v6311_v7  ;;  %v6443_v62 = vand.u32 4294901760, %v2112_v26  ;;  %v2108_v37 = vld [vmem:[%s5077_s25 + $0xb0] sm:$0xff]  ;;  %v2279_v39 = vand.u32 4294901760, %v2278_v6  ;;  %v2547_v5 = vsub.f32 %v6429_v45, %v8231_v28  ;;  %v6503_v6 = vld [vmem:[%s575_s16] sm:$0xf] }
 0x1a1   : > { %2173 = vmatpush.msra.mxu0 %v6321_v43  ;;  %2238 = vmatpush.msra.mxu1 %v2237_v3  ;;  %v2255_v3 = vand.u32 4294901760, %v2254_v13  ;;  %v2261_v13 = vand.u32 4294901760, %v2260_v52  ;;  %v6452_v52 = vsub.f32 %v2113_v53, %v6420_v48  ;;  %v6510_v28 = vand.u32 4294901760, %v2108_v37 }
 0x1a2   : > { %2324 = vmatpush.msra.mxu2 %v6338_v22  ;;  %2369 = vmatpush.msra.mxu3 %v6321_v43  ;;  %v6475_v59 = vsub.f32 %v2112_v26, %v6443_v62  ;;  %v8359_v26 = vand.u32 4294901760, %v6244_v35  ;;  %v8360_v35 = vand.u32 4294901760, %v6441_v47 }
 0x1a3   : > { %2175 = vmatpush.msra.mxu0 %v6335_v63  ;;  %2244 = vmatpush.msra.mxu1 %v2243_v56  ;;  %v8228_v56 = vand.u32 4294901760, %v6408_v58 }
 0x1a4   : > { %2327 = vmatpush.msra.mxu2 %v6352_v25  ;;  %2371 = vmatpush.msra.mxu3 %v6335_v63 }
 0x1a5   : > { %2177 = vmatpush.msra.mxu0 %v6348_v0  ;;  %2250 = vmatpush.msra.mxu1 %v2249_v50  ;;  %v2535_v50 = vsub.f32 %v6388_v19, %v8225_v44  ;;  %v2541_v53 = vsub.f32 %v6408_v58, %v8228_v56  ;;  %v6467_v44 = vand.u32 4294901760, %v2110_v23 }
 0x1a6   : > { %2330 = vmatpush.msra.mxu2 %v6368_v41  ;;  %2373 = vmatpush.msra.mxu3 %v6348_v0 }
 0x1a7   : > { %2179 = vmatpush.msra.mxu0 %v6364_v27  ;;  %2256 = vmatpush.msra.mxu1 %v2255_v3  ;;  %v2273_v3 = vand.u32 4294901760, %v2272_v34  ;;  %v2536_v56 = vand.u32 4294901760, %v2535_v50  ;;  %v6482_v34 = vsub.f32 %v2111_v60, %v6454_v46  ;;  %v2542_v60 = vand.u32 4294901760, %v2541_v53 }
 0x1a8   : > { %2333 = vmatpush.msra.mxu2 %v6383_v32  ;;  %2375 = vmatpush.msra.mxu3 %v6364_v27  ;;  %v6495_v50 = vsub.f32 %v2110_v23, %v6467_v44  ;;  %v8361_v23 = vand.u32 4294901760, %v6248_v12  ;;  %v2106_v27 = vld [vmem:[%s5077_s25 + $0xa0] sm:$0xff] }
 0x1a9   : > { %2181 = vmatpush.msra.mxu0 %v6372_v31  ;;  %2262 = vmatpush.msra.mxu1 %v2261_v13  ;;  %v2107_v13 = vld [vmem:[%s5077_s25 + $0xa8] sm:$0xff] }
 0x1aa   : > { %2336 = vmatpush.msra.mxu2 %v6397_v20  ;;  %2377 = vmatpush.msra.mxu3 %v6372_v31  ;;  %v8362_v31 = vand.u32 4294901760, %v6452_v52  ;;  %v6523_v53 = vand.u32 4294901760, %v2107_v13 }
 0x1ab   : > { %2388 = vmatpush.msrb.mxu0 %v2193_v1  ;;  %2268 = vmatpush.msra.mxu1 %v2267_v11  ;;  %v2067_v1 = vlaneseq  ;;  %v2285_v11 = vand.u32 4294901760, %v2284_v17  ;;  %v6519_v17 = vsub.f32 %v2109_v57, %v6484_v61 }
 0x1ac   : > { %2339 = vmatpush.msra.mxu2 %v6405_v10  ;;  %2537 = vmatpush.msrb.mxu3 %v2536_v56  ;;  %v2069_v56 = vperm.slane %v6503_v6, 0 }
 0x1ad   : > { %2392 = vmatpush.msrb.mxu0 %v8359_v26  ;;  %2274 = vmatpush.msra.mxu1 %v2273_v3  ;;  %v2553_v26 = vsub.f32 %v6441_v47, %v8360_v35  ;;  %v2559_v3 = vsub.f32 %v6452_v52, %v8362_v31  ;;  %v2548_v35 = vand.u32 4294901760, %v2547_v5  ;;  %v6525_v12 = vshrl.u32 %v2067_v1, 7 }
 0x1ae   : > { %2492 = vmatpush.msrb.mxu2 %v6361_v55  ;;  %2543 = vmatpush.msrb.mxu3 %v2542_v60  ;;  %v8239_v31 = vand.u32 4294901760, %v6495_v50  ;;  %v2105_v55 = vld [vmem:[%s5077_s25 + $0x98] sm:$0xff]  ;;  %v6537_v1 = vsub.f32 %v2108_v37, %v6510_v28  ;;  %v6550_v37 = vsub.f32 %v2107_v13, %v6523_v53 }
 0x1af   : > { %2396 = vmatpush.msrb.mxu0 %v8361_v23  ;;  %2280 = vmatpush.msra.mxu1 %v2279_v39  ;;  %v8363_v23 = vand.u32 4294901760, %v6254_v36  ;;  %v2554_v57 = vand.u32 4294901760, %v2553_v26  ;;  %v8364_v39 = vand.u32 4294901760, %v6475_v59  ;;  %v8365_v36 = vand.u32 4294901760, %v6257_v54 }
 0x1b0   : > { %2494 = vmatpush.msrb.mxu2 %v6374_v4  ;;  %v6539_v4 = vand.u32 4294901760, %v2106_v27  ;;  %v2560_v60 = vand.u32 4294901760, %v2559_v3  ;;  %2549 = vmatpush.msrb.mxu3 %v2548_v35  ;;  %vm6555_vm7 = vcmp.eq.s32.totalorder %v6525_v12, %v2069_v56  ;;  %v2577_v3 = vsub.f32 %v6495_v50, %v8239_v31  ;;  %v2104_v35 = vld [vmem:[%s5077_s25 + $0x90] sm:$0xff] }
 0x1b1   : > { %2400 = vmatpush.msrb.mxu0 %v8363_v23  ;;  %2286 = vmatpush.msra.mxu1 %v2285_v11  ;;  %v2565_v5 = vsub.f32 %v6475_v59, %v8364_v39  ;;  %v8366_v11 = vand.u32 4294901760, %v6482_v34  ;;  %v8238_v23 = vand.u32 4294901760, %v6519_v17  ;;  %v6552_v39 = vand.u32 4294901760, %v2105_v55 }
 0x1b2   : > { %2496 = vmatpush.msrb.mxu2 %v6399_v29  ;;  %2555 = vmatpush.msrb.mxu3 %v2554_v57  ;;  %v6569_v56 = vsub.f32 %v2106_v27, %v6539_v4 }
 0x1b3   : > { %2404 = vmatpush.msrb.mxu0 %v8365_v36  ;;  %2455 = vmatpush.msrb.mxu1 %v6222_v30  ;;  %v2571_v26 = vsub.f32 %v6482_v34, %v8366_v11  ;;  %v8369_v30 = vand.u32 4294901760, %v6260_v42  ;;  %v2566_v13 = vand.u32 4294901760, %v2565_v5  ;;  %v2588_v36 = vand.u32 4294901760, %v6537_v1  ;;  %v2103_v5 = vld [vmem:[%s5077_s25 + $0x88] sm:$0xff] }
 0x1b4   : > { %2498 = vmatpush.msrb.mxu2 %v6415_v40  ;;  %v8370_v11 = vand.u32 4294901760, %v6275_v33  ;;  %v8240_v42 = vmov 0.0   ;;  %2561 = vmatpush.msrb.mxu3 %v2560_v60  ;;  %v2594_v33 = vand.u32 4294901760, %v6550_v37 }
 0x1b5   : > { %2408 = vmatpush.msrb.mxu0 %v8369_v30  ;;  %2457 = vmatpush.msrb.mxu1 %v6224_v8  ;;  %v2583_v8 = vsub.f32 %v6519_v17, %v8238_v23  ;;  %v4865_v57 = vsel %vm6555_vm7, 1.0, %v8240_v42  ;;  %v2572_v27 = vand.u32 4294901760, %v2571_v26  ;;  %v6583_v30 = vand.u32 4294901760, %v2104_v35 }
 0x1b6   : > { %2500 = vmatpush.msrb.mxu2 %v6420_v48  ;;  %v2578_v23 = vand.u32 4294901760, %v2577_v3  ;;  %2567 = vmatpush.msrb.mxu3 %v2566_v13  ;;  %v2589_v60 = vsub.f32 %v6537_v1, %v2588_v36  ;;  %v2600_v26 = vand.u32 4294901760, %v6569_v56  ;;  %v6596_v31 = vsub.f32 %v4865_v57, %v4865_v57 }
 0x1b7   : > { %2412 = vmatpush.msrb.mxu0 %v8370_v11  ;;  %2459 = vmatpush.msrb.mxu1 %v6226_v38  ;;  %v6586_v38 = vsub.f32 %v2105_v55, %v6552_v39  ;;  %v8371_v11 = vand.u32 4294901760, %v6300_v21  ;;  %v6598_v42 = vand.u32 4294901760, %v2103_v5  ;;  %v2102_v55 = vld [vmem:[%s5077_s25 + $0x80] sm:$0xff]  ;;  %v8372_v21 = vand.u32 4294901760, %v6304_v2 }
 0x1b8   : > { %2502 = vmatpush.msrb.mxu2 %v6443_v62  ;;  %2573 = vmatpush.msrb.mxu3 %v2572_v27  ;;  %v2595_v3 = vsub.f32 %v6550_v37, %v2594_v33  ;;  %v6610_v57 = vsub.f32 %v2104_v35, %v6583_v30  ;;  %v8373_v2 = vand.u32 4294901760, %v6325_v14  ;;  %v2601_v27 = vsub.f32 %v6569_v56, %v2600_v26 }
 0x1b9   : > { %2416 = vmatpush.msrb.mxu0 %v8371_v11  ;;  %2461 = vmatpush.msrb.mxu1 %v6231_v16  ;;  %v2584_v16 = vand.u32 4294901760, %v2583_v8  ;;  %v2606_v13 = vand.u32 4294901760, %v6586_v38  ;;  %v2070_v11 = vperm.slane %v6503_v6, 1  ;;  %v2590_v8 = vand.u32 4294901760, %v2589_v60 }
 0x1ba   : > { %2504 = vmatpush.msrb.mxu2 %v6454_v46  ;;  %2579 = vmatpush.msrb.mxu3 %v2578_v23  ;;  %v2184_v35 = vand.u32 4294901760, %v6596_v31  ;;  %v8374_v14 = vand.u32 4294901760, %v6338_v22  ;;  %v2612_v60 = vand.u32 4294901760, %v6610_v57  ;;  %v8377_v22 = vand.u32 4294901760, %v6352_v25 }
 0x1bb   : > { %2420 = vmatpush.msrb.mxu0 %v8372_v21  ;;  %2463 = vmatpush.msrb.mxu1 %v6233_v15  ;;  %v6616_v15 = vand.u32 4294901760, %v2102_v55  ;;  %v6624_v21 = vsub.f32 %v2103_v5, %v6598_v42  ;;  %v2607_v23 = vsub.f32 %v6586_v38, %v2606_v13  ;;  %vm6635_vm8 = vcmp.eq.s32.totalorder %v6525_v12, %v2070_v11 }
 0x1bc   : > { %2506 = vmatpush.msrb.mxu2 %v6467_v44  ;;  %2585 = vmatpush.msrb.mxu3 %v2584_v16  ;;  %v2602_v5 = vand.u32 4294901760, %v2601_v27  ;;  %v2185_v16 = vsub.f32 %v6596_v31, %v2184_v35  ;;  %v8378_v11 = vand.u32 4294901760, %v6368_v41  ;;  %v8379_v25 = vmov 0.0  }
 0x1bd   : > { %2424 = vmatpush.msrb.mxu0 %v8373_v2  ;;  %2465 = vmatpush.msrb.mxu1 %v6235_v9  ;;  %v2596_v9 = vand.u32 4294901760, %v2595_v3  ;;  %v2618_v3 = vand.u32 4294901760, %v6624_v21  ;;  %v8380_v27 = vand.u32 4294901760, %v6383_v32  ;;  %v8382_v32 = vand.u32 4294901760, %v6405_v10  ;;  %v8384_v10 = vld [vmem:[#allocation13_spill] sm:$0xff] }
 0x1be   : > { %2508 = vmatpush.msrb.mxu2 %v6484_v61  ;;  %2591 = vmatpush.msrb.mxu3 %v2590_v8  ;;  %v2613_v8 = vsub.f32 %v6610_v57, %v2612_v60  ;;  %v2071_v2 = vperm.slane %v6503_v6, 2 }
 0x1bf   : > { %2428 = vmatpush.msrb.mxu0 %v8374_v14  ;;  %2467 = vmatpush.msrb.mxu1 %v6250_v18  ;;  %v6643_v18 = vsub.f32 %v2102_v55, %v6616_v15  ;;  %v2608_v55 = vand.u32 4294901760, %v2607_v23  ;;  %v2619_v14 = vsub.f32 %v6624_v21, %v2618_v3  ;;  %v8381_v23 = vand.u32 4294901760, %v6397_v20 }
 0x1c0   : > { %2510 = vmatpush.msrb.mxu2 %v6510_v28  ;;  %2597 = vmatpush.msrb.mxu3 %v2596_v9  ;;  %vm6891_vm9 = vcmp.eq.s32.totalorder %v6525_v12, %v2071_v2  ;;  %v2118_v2 = vld [vmem:[%s5077_s25 + $0x100] sm:$0xff] }
 0x1c1   : > { %2432 = vmatpush.msrb.mxu0 %v8377_v22  ;;  %2469 = vmatpush.msrb.mxu1 %v6267_v51  ;;  %v4866_v51 = vsel %vm6635_vm8, 1.0, %v8379_v25  ;;  %v2624_v41 = vand.u32 4294901760, %v6643_v18  ;;  %v2620_v20 = vand.u32 4294901760, %v2619_v14 }
 0x1c2   : > { %2512 = vmatpush.msrb.mxu2 %v6523_v53  ;;  %2603 = vmatpush.msrb.mxu3 %v2602_v5  ;;  %v6666_v9 = vsub.f32 %v4866_v51, %v4866_v51  ;;  %v8389_v51 = vld [vmem:[#allocation15_spill] sm:$0xff] }
 0x1c3   : > { %2436 = vmatpush.msrb.mxu0 %v8378_v11  ;;  %2471 = vmatpush.msrb.mxu1 %v6272_v49  ;;  %v2186_v49 = vand.u32 4294901760, %v2185_v16  ;;  %v2625_v22 = vsub.f32 %v6643_v18, %v2624_v41  ;;  %v8387_v11 = vld [vmem:[#allocation14_spill] sm:$0xff] }
 0x1c4   : > { %2514 = vmatpush.msrb.mxu2 %v6539_v4  ;;  %2609 = vmatpush.msrb.mxu3 %v2608_v55  ;;  %v2525_v5 = vand.u32 4294901760, %v6666_v9 }
 0x1c5   : > { %2440 = vmatpush.msrb.mxu0 %v8380_v27  ;;  %2473 = vmatpush.msrb.mxu1 %v6290_v24  ;;  %v2614_v24 = vand.u32 4294901760, %v2613_v8 }
 0x1c6   : > { %2516 = vmatpush.msrb.mxu2 %v6552_v39  ;;  %2187 = vmatmul.f32.vlgmr.msra.gmra.mxu0 %v2186_v49 }
 0x1c7   : > { %2444 = vmatpush.msrb.mxu0 %v8381_v23  ;;  %2475 = vmatpush.msrb.mxu1 %v6311_v7  ;;  %v2626_v7 = vand.u32 4294901760, %v2625_v22 }
 0x1c8   : > { %2518 = vmatpush.msrb.mxu2 %v6583_v30  ;;  %2615 = vmatpush.msrb.mxu3 %v2614_v24  ;;  %v2123_v24 = vld [vmem:[%s5077_s25 + $0x128] sm:$0xff] }
 0x1c9   : > { %2448 = vmatpush.msrb.mxu0 %v8382_v32  ;;  %2477 = vmatpush.msrb.mxu1 %v6321_v43  ;;  %v2526_v43 = vsub.f32 %v6666_v9, %v2525_v5 }
 0x1ca   : > { %2520 = vmatpush.msrb.mxu2 %v6598_v42  ;;  %2621 = vmatpush.msrb.mxu3 %v2620_v20 }
 0x1cb   : > { %2635 = vmatpush.msra.mxu0 %v6388_v19  ;;  %2479 = vmatpush.msrb.mxu1 %v6335_v63  ;;  %v8383_v63 = vand.u32 4294901760, %v6388_v19  ;;  %v2527_v16 = vand.u32 4294901760, %v2526_v43  ;;  %v8388_v19 = vand.u32 4294901760, %v6429_v45 }
 0x1cc   : > { %2342 = vmatmul.f32.vlgmr.msra.gmra.mxu2 %v6596_v31  ;;  %2381 = vmatmul.f32.vlgmr.msra.gmra.mxu3 %v2184_v35  ;;  %v8250_v31 = vmov 1.0   ;;  %v8386_v35 = vld [vmem:[#allocation12_spill] sm:$0xff] }
 0x1cd   : > { %2638 = vmatpush.msra.mxu0 %v6408_v58  ;;  %2481 = vmatpush.msrb.mxu1 %v6348_v0  ;;  %v8385_v0 = vand.u32 4294901760, %v6408_v58  ;;  %v8390_v58 = vand.u32 4294901760, %v6441_v47 }
 0x1ce   : > { %2522 = vmatpush.msrb.mxu2 %v6616_v15  ;;  %2627 = vmatpush.msrb.mxu3 %v2626_v7 }
 0x1cf   : > { %2641 = vmatpush.msra.mxu0 %v6429_v45  ;;  %2483 = vmatpush.msrb.mxu1 %v8384_v10  ;;  %v8391_v45 = vand.u32 4294901760, %v6452_v52 }
 0x1d0   : > { %2729 = vmatpush.msra.mxu2 %v8383_v63  ;;  %4869 = vmatmul.msk.f32.vlgmr.msra.gmra.mxu1 %vm6555_vm7, %v8250_v31  ;;  %v2122_v63 = vld [vmem:[%s5077_s25 + $0x120] sm:$0xff] }
 0x1d1   : > { %2644 = vmatpush.msra.mxu0 %v6441_v47  ;;  %2796 = vmatpush.msra.mxu3 %v8386_v35  ;;  %v8392_v47 = vand.u32 4294901760, %v6475_v59 }
 0x1d2   : > { %2733 = vmatpush.msra.mxu2 %v8385_v0  ;;  %2485 = vmatpush.msrb.mxu1 %v8387_v11  ;;  %v6879_v0 = vand.u32 4294901760, %v2123_v24 }
 0x1d3   : > { %2647 = vmatpush.msra.mxu0 %v6452_v52  ;;  %2798 = vmatpush.msra.mxu3 %v8389_v51 }
 0x1d4   : > { %2688 = vmatpush.msra.mxu1 %v8386_v35  ;;  %2737 = vmatpush.msra.mxu2 %v8388_v19  ;;  %v6896_v19 = vand.u32 4294901760, %v2122_v63 }
 0x1d5   : > { %2528 = vmatmul.f32.vlgmr.msrb.gmra.mxu2 %v2527_v16  ;;  %2650 = vmatpush.msra.mxu0 %v6475_v59  ;;  %v2133_v59 = vld [vmem:[%s5077_s25 + $0x178] sm:$0xff] }
 0x1d6   : > { %2690 = vmatpush.msra.mxu1 %v8389_v51  ;;  %2741 = vmatpush.msra.mxu2 %v8390_v58  ;;  %v6752_v52 = vand.u32 4294901760, %v2133_v59 }
 0x1d7   : > { %2800 = vmatpush.msra.mxu3 %v6399_v29  ;;  %4870 = vmatmul.msk.f32.vlgmr.msrb.gmra.mxu0 %vm6555_vm7, %v8250_v31 }
 0x1d8   : > { %4872 = vmatmul.msk.f32.vlgmr.msrb.gmra.mxu3 %vm6635_vm8, %v8250_v31  ;;  %2653 = vmatpush.msra.mxu0 %v6482_v34 }
 0x1d9   : > { %2692 = vmatpush.msra.mxu1 %v6399_v29  ;;  %2745 = vmatpush.msra.mxu2 %v8391_v45  ;;  %v8393_v29 = vand.u32 4294901760, %v6482_v34  ;;  %v2130_v34 = vld [vmem:[%s5077_s25 + $0x160] sm:$0xff] }
 0x1da   : > { %2802 = vmatpush.msra.mxu3 %v6415_v40  ;;  %4871 = vmatmul.msk.f32.vlgmr.msrb.gmra.mxu1 %vm6555_vm7, %v8250_v31 }
 0x1db   : > { %2656 = vmatpush.msra.mxu0 %v6495_v50  ;;  %2694 = vmatpush.msra.mxu1 %v6415_v40  ;;  %v8394_v40 = vand.u32 4294901760, %v6495_v50  ;;  %v6771_v50 = vsub.f32 %v2133_v59, %v6752_v52 }
 0x1dc   : > { %2749 = vmatpush.msra.mxu2 %v8392_v47  ;;  %2804 = vmatpush.msra.mxu3 %v6420_v48 }
 0x1dd   : > { %2659 = vmatpush.msra.mxu0 %v6519_v17  ;;  %2696 = vmatpush.msra.mxu1 %v6420_v48  ;;  %v8395_v48 = vand.u32 4294901760, %v6519_v17  ;;  %v2129_v17 = vld [vmem:[%s5077_s25 + $0x158] sm:$0xff] }
 0x1de   : > { %2753 = vmatpush.msra.mxu2 %v8393_v29  ;;  %2806 = vmatpush.msra.mxu3 %v6443_v62  ;;  %v6787_v54 = vand.u32 4294901760, %v2129_v17  ;;  %v2120_v29 = vld [vmem:[%s5077_s25 + $0x110] sm:$0xff] }
 0x1df   : > { %2662 = vmatpush.msra.mxu0 %v6537_v1  ;;  %2698 = vmatpush.msra.mxu1 %v6443_v62  ;;  %v2132_v62 = vld [vmem:[%s5077_s25 + $0x170] sm:$0xff] }
 0x1e0   : > { %2757 = vmatpush.msra.mxu2 %v8394_v40  ;;  %2808 = vmatpush.msra.mxu3 %v6454_v46 }
 0x1e1   : > { %2665 = vmatpush.msra.mxu0 %v6550_v37  ;;  %2700 = vmatpush.msra.mxu1 %v6454_v46  ;;  %v2131_v46 = vld [vmem:[%s5077_s25 + $0x168] sm:$0xff]  ;;  %v2128_v37 = vld [vmem:[%s5077_s25 + $0x150] sm:$0xff] }
 0x1e2   : > { %2761 = vmatpush.msra.mxu2 %v8395_v48  ;;  %2810 = vmatpush.msra.mxu3 %v6467_v44  ;;  %v6913_v48 = vsub.f32 %v2123_v24, %v6879_v0 }
 0x1e3   : > { %2668 = vmatpush.msra.mxu0 %v6569_v56  ;;  %2702 = vmatpush.msra.mxu1 %v6467_v44  ;;  %v6760_v44 = vand.u32 4294901760, %v2132_v62  ;;  %v2127_v56 = vld [vmem:[%s5077_s25 + $0x148] sm:$0xff] }
 0x1e4   : > { %2765 = vmatpush.msra.mxu2 %v2588_v36  ;;  %2812 = vmatpush.msra.mxu3 %v6484_v61 }
 0x1e5   : > { %2671 = vmatpush.msra.mxu0 %v6586_v38  ;;  %2704 = vmatpush.msra.mxu1 %v6484_v61  ;;  %v6768_v61 = vand.u32 4294901760, %v2131_v46  ;;  %v6782_v1 = vsub.f32 %v2132_v62, %v6760_v44  ;;  %v4867_v62 = vsel %vm6891_vm9, 1.0, %v8379_v25 }
 0x1e6   : > { %2769 = vmatpush.msra.mxu2 %v2594_v33  ;;  %2814 = vmatpush.msra.mxu3 %v6510_v28  ;;  %v6799_v33 = vand.u32 4294901760, %v2128_v37 }
 0x1e7   : > { %2674 = vmatpush.msra.mxu0 %v6610_v57  ;;  %2706 = vmatpush.msra.mxu1 %v6510_v28  ;;  %v6779_v28 = vand.u32 4294901760, %v2130_v34  ;;  %v6794_v36 = vsub.f32 %v2131_v46, %v6768_v61 }
 0x1e8   : > { %2773 = vmatpush.msra.mxu2 %v2600_v26  ;;  %2816 = vmatpush.msra.mxu3 %v6523_v53  ;;  %v6810_v26 = vand.u32 4294901760, %v2127_v56 }
 0x1e9   : > { %2677 = vmatpush.msra.mxu0 %v6624_v21  ;;  %2708 = vmatpush.msra.mxu1 %v6523_v53  ;;  %v2875_v53 = vand.u32 4294901760, %v6771_v50  ;;  %v6806_v38 = vsub.f32 %v2130_v34, %v6779_v28  ;;  %v8257_v21 = vand.u32 4294901760, %v6794_v36 }
 0x1ea   : > { %2777 = vmatpush.msra.mxu2 %v2606_v13  ;;  %2818 = vmatpush.msra.mxu3 %v6539_v4  ;;  %v2126_v13 = vld [vmem:[%s5077_s25 + $0x140] sm:$0xff]  ;;  %v6843_v27 = vsub.f32 %v2127_v56, %v6810_v26  ;;  %v6928_v56 = vsub.f32 %v2122_v63, %v6896_v19 }
 0x1eb   : > { %2680 = vmatpush.msra.mxu0 %v6643_v18  ;;  %2710 = vmatpush.msra.mxu1 %v6539_v4  ;;  %v2881_v4 = vand.u32 4294901760, %v6782_v1  ;;  %v2876_v57 = vsub.f32 %v6771_v50, %v2875_v53  ;;  %v8254_v55 = vand.u32 4294901760, %v6806_v38  ;;  %v2888_v14 = vsub.f32 %v6794_v36, %v8257_v21  ;;  %v2142_v21 = vld [vmem:[%s5077_s25 + $0x1c0] sm:$0xff] }
 0x1ec   : > { %2781 = vmatpush.msra.mxu2 %v2612_v60  ;;  %2820 = vmatpush.msra.mxu3 %v6552_v39  ;;  %v2125_v60 = vld [vmem:[%s5077_s25 + $0x138] sm:$0xff]  ;;  %v8247_v43 = vand.u32 4294901760, %v6843_v27 }
 0x1ed   : > { %2683 = vmatmul.f32.vlgmr.msra.gmra.mxu0 %v6666_v9  ;;  %2712 = vmatpush.msra.mxu1 %v6552_v39  ;;  %v6813_v39 = vsub.f32 %v2129_v17, %v6787_v54  ;;  %v2882_v18 = vsub.f32 %v6782_v1, %v2881_v4  ;;  %v2877_v49 = vand.u32 4294901760, %v2876_v57  ;;  %v2894_v22 = vsub.f32 %v6806_v38, %v8254_v55 }
 0x1ee   : > { %2833 = vmatpush.msrb.mxu0 %v6752_v52  ;;  %2785 = vmatpush.msra.mxu2 %v2618_v3  ;;  %v6836_v3 = vand.u32 4294901760, %v2126_v13  ;;  %v2889_v10 = vand.u32 4294901760, %v2888_v14  ;;  %v2912_v47 = vsub.f32 %v6843_v27, %v8247_v43  ;;  %v6924_v17 = vand.u32 4294901760, %v2120_v29  ;;  %v2149_v14 = vld [vmem:[%s5077_s25 + $0x1f8] sm:$0xff] }
 0x1ef   : > { %2822 = vmatpush.msra.mxu3 %v6583_v30  ;;  %2714 = vmatpush.msra.mxu1 %v6583_v30  ;;  %v6828_v30 = vsub.f32 %v2128_v37, %v6799_v33  ;;  %v8252_v8 = vand.u32 4294901760, %v6813_v39  ;;  %v2883_v32 = vand.u32 4294901760, %v2882_v18  ;;  %v2895_v11 = vand.u32 4294901760, %v2894_v22  ;;  %v2145_v43 = vld [vmem:[%s5077_s25 + $0x1d8] sm:$0xff] }
 0x1f0   : > { %2835 = vmatpush.msrb.mxu0 %v6760_v44  ;;  %2789 = vmatpush.msra.mxu2 %v2624_v41  ;;  %v2124_v41 = vld [vmem:[%s5077_s25 + $0x130] sm:$0xff]  ;;  %v6868_v7 = vsub.f32 %v2126_v13, %v6836_v3  ;;  %v2119_v13 = vld [vmem:[%s5077_s25 + $0x108] sm:$0xff]  ;;  %v6933_v57 = vsub.f32 %v4867_v62, %v4867_v62  ;;  %v6955_v63 = vsub.f32 %v2120_v29, %v6924_v17 }
 0x1f1   : > { %2824 = vmatpush.msra.mxu3 %v6598_v42  ;;  %4873 = vmatmul.msk.f32.vlgmr.msra.gmra.mxu2 %vm6635_vm8, %v8250_v31  ;;  %v8249_v23 = vand.u32 4294901760, %v6828_v30  ;;  %v6865_v20 = vand.u32 4294901760, %v2124_v41  ;;  %v6946_v24 = vand.u32 4294901760, %v2119_v13 }
 0x1f2   : > { %2837 = vmatpush.msrb.mxu0 %v6768_v61  ;;  %2976 = vmatpush.msrb.mxu2 %v6771_v50  ;;  %v8246_v51 = vand.u32 4294901760, %v6868_v7 }
 0x1f3   : > { %2716 = vmatpush.msra.mxu1 %v6598_v42  ;;  %2826 = vmatpush.msra.mxu3 %v6616_v15  ;;  %v6853_v42 = vand.u32 4294901760, %v2125_v60  ;;  %v2906_v9 = vsub.f32 %v6828_v30, %v8249_v23  ;;  %v6900_v58 = vsub.f32 %v2124_v41, %v6865_v20  ;;  %v8242_v41 = vand.u32 4294901760, %v6913_v48  ;;  %8398 = vst [vmem:[#allocation13_spill] sm:$0xff] %v6946_v24 }
 0x1f4   : > { %4874 = vmatmul.msk.f32.vlgmr.msra.gmra.mxu3 %vm6635_vm8, %v8250_v31  ;;  %2839 = vmatpush.msrb.mxu0 %v6779_v28  ;;  %v2918_v34 = vsub.f32 %v6868_v7, %v8246_v51  ;;  %v6973_v62 = vsub.f32 %v2119_v13, %v6946_v24 }
 0x1f5   : > { %2979 = vmatpush.msrb.mxu2 %v6782_v1  ;;  %3029 = vmatpush.msrb.mxu3 %v6752_v52  ;;  %v6882_v16 = vsub.f32 %v2125_v60, %v6853_v42  ;;  %v2907_v46 = vand.u32 4294901760, %v2906_v9  ;;  %v8243_v37 = vand.u32 4294901760, %v6900_v58  ;;  %v2913_v60 = vand.u32 4294901760, %v2912_v47  ;;  %v2140_v1 = vld [vmem:[%s5077_s25 + $0x1b0] sm:$0xff] }
 0x1f6   : > { %2718 = vmatpush.msra.mxu1 %v6616_v15  ;;  %2841 = vmatpush.msrb.mxu0 %v6787_v54  ;;  %v2900_v15 = vsub.f32 %v6813_v39, %v8252_v8  ;;  %v6960_v9 = vand.u32 4294901760, %v2149_v14  ;;  %v6967_v47 = vand.u32 4294901760, %v2118_v2  ;;  %v7017_v8 = vand.u32 4294901760, %v2145_v43 }
 0x1f7   : > { %2722 = vmatmul.f32.vlgmr.msra.gmra.mxu1 %v2525_v5  ;;  %2982 = vmatpush.msrb.mxu2 %v6794_v36  ;;  %v2121_v5 = vld [vmem:[%s5077_s25 + $0x118] sm:$0xff]  ;;  %v8245_v59 = vand.u32 4294901760, %v6882_v16  ;;  %v2930_v22 = vsub.f32 %v6900_v58, %v8243_v37  ;;  %v2146_v37 = vld [vmem:[%s5077_s25 + $0x1e0] sm:$0xff] }
 0x1f8   : > { %2878 = vmatpush.msrb.mxu1 %v2877_v49  ;;  %3031 = vmatpush.msrb.mxu3 %v6760_v44  ;;  %v2901_v45 = vand.u32 4294901760, %v2900_v15  ;;  %v6909_v40 = vand.u32 4294901760, %v2121_v5  ;;  %v8244_v15 = vand.u32 4294901760, %v6928_v56  ;;  %8399 = vst [vmem:[#allocation12_spill] sm:$0xff] %v6960_v9 }
 0x1f9   : > { %2843 = vmatpush.msrb.mxu0 %v6799_v33  ;;  %2985 = vmatpush.msrb.mxu2 %v6806_v38  ;;  %v2924_v18 = vsub.f32 %v6882_v16, %v8245_v59  ;;  %8400 = vst [vmem:[#allocation14_spill] sm:$0xff] %v6967_v47  ;;  %v6997_v59 = vsub.f32 %v2118_v2, %v6967_v47 }
 0x1fa   : > { %2884 = vmatpush.msrb.mxu1 %v2883_v32  ;;  %3033 = vmatpush.msrb.mxu3 %v6768_v61  ;;  %v6941_v49 = vsub.f32 %v2121_v5, %v6909_v40  ;;  %v2919_v32 = vand.u32 4294901760, %v2918_v34  ;;  %v2148_v5 = vld [vmem:[%s5077_s25 + $0x1f0] sm:$0xff]  ;;  %v2931_v34 = vand.u32 4294901760, %v2930_v22 }
 0x1fb   : > { %2845 = vmatpush.msrb.mxu0 %v6810_v26  ;;  %2988 = vmatpush.msrb.mxu2 %v6813_v39 }
 0x1fc   : > { %2890 = vmatpush.msrb.mxu1 %v2889_v10  ;;  %3035 = vmatpush.msrb.mxu3 %v6779_v28  ;;  %v8255_v10 = vand.u32 4294901760, %v6933_v57  ;;  %v8248_v29 = vand.u32 4294901760, %v6941_v49 }
 0x1fd   : > { %2847 = vmatpush.msrb.mxu0 %v6836_v3  ;;  %2991 = vmatpush.msrb.mxu2 %v6828_v30 }
 0x1fe   : > { %2896 = vmatpush.msrb.mxu1 %v2895_v11  ;;  %3037 = vmatpush.msrb.mxu3 %v6787_v54  ;;  %v2925_v11 = vand.u32 4294901760, %v2924_v18  ;;  %v8253_v18 = vand.u32 4294901760, %v6955_v63  ;;  %v2867_v13 = vsub.f32 %v6933_v57, %v8255_v10  ;;  %v2141_v10 = vld [vmem:[%s5077_s25 + $0x1b8] sm:$0xff] }
 0x1ff   : > { %2849 = vmatpush.msrb.mxu0 %v6853_v42  ;;  %2994 = vmatpush.msrb.mxu2 %v6843_v27 }
 0x200   : > { %2902 = vmatpush.msrb.mxu1 %v2901_v45  ;;  %3039 = vmatpush.msrb.mxu3 %v6799_v33  ;;  %v2936_v45 = vsub.f32 %v6913_v48, %v8242_v41  ;;  %v6981_v41 = vand.u32 4294901760, %v2148_v5  ;;  %v2954_v2 = vsub.f32 %v6955_v63, %v8253_v18  ;;  %v2868_v23 = vand.u32 4294901760, %v2867_v13 }
 0x201   : > { %2851 = vmatpush.msrb.mxu0 %v6865_v20  ;;  %2997 = vmatpush.msrb.mxu2 %v6868_v7  ;;  %v8259_v18 = vand.u32 4294901760, %v6997_v59 }
 0x202   : > { %2908 = vmatpush.msrb.mxu1 %v2907_v46  ;;  %3041 = vmatpush.msrb.mxu3 %v6810_v26  ;;  %v2147_v46 = vld [vmem:[%s5077_s25 + $0x1e8] sm:$0xff]  ;;  %v2937_v22 = vand.u32 4294901760, %v2936_v45 }
 0x203   : > { %2853 = vmatpush.msrb.mxu0 %v6879_v0  ;;  %3000 = vmatpush.msrb.mxu2 %v6882_v16  ;;  %v6999_v51 = vand.u32 4294901760, %v2147_v46 }
 0x204   : > { %2914 = vmatpush.msrb.mxu1 %v2913_v60  ;;  %3043 = vmatpush.msrb.mxu3 %v6836_v3  ;;  %v2942_v60 = vsub.f32 %v6928_v56, %v8244_v15  ;;  %v2948_v15 = vsub.f32 %v6941_v49, %v8248_v29  ;;  %v7012_v29 = vsub.f32 %v2148_v5, %v6981_v41 }
 0x205   : > { %2855 = vmatpush.msrb.mxu0 %v6896_v19  ;;  %3003 = vmatpush.msrb.mxu2 %v6900_v58  ;;  %v7023_v5 = vsub.f32 %v2147_v46, %v6999_v51 }
 0x206   : > { %2920 = vmatpush.msrb.mxu1 %v2919_v32  ;;  %3045 = vmatpush.msrb.mxu3 %v6853_v42  ;;  %v6990_v32 = vsub.f32 %v2149_v14, %v6960_v9  ;;  %v8256_v14 = vand.u32 4294901760, %v6973_v62  ;;  %v2943_v45 = vand.u32 4294901760, %v2942_v60  ;;  %v2949_v60 = vand.u32 4294901760, %v2948_v15 }
 0x207   : > { %2857 = vmatpush.msrb.mxu0 %v6909_v40  ;;  %3006 = vmatpush.msrb.mxu2 %v6913_v48  ;;  %v2955_v15 = vand.u32 4294901760, %v2954_v2  ;;  %v8401_v50 = vand.u32 4294901760, %v7012_v29 }
 0x208   : > { %2926 = vmatpush.msrb.mxu1 %v2925_v11  ;;  %3047 = vmatpush.msrb.mxu3 %v6865_v20  ;;  %v7005_v11 = vand.u32 4294901760, %v2146_v37  ;;  %v8258_v31 = vand.u32 4294901760, %v6990_v32  ;;  %v2960_v13 = vsub.f32 %v6973_v62, %v8256_v14 }
 0x209   : > { %2859 = vmatpush.msrb.mxu0 %v6924_v17  ;;  %3009 = vmatpush.msrb.mxu2 %v6928_v56 }
 0x20a   : > { %2932 = vmatpush.msrb.mxu1 %v2931_v34  ;;  %3049 = vmatpush.msrb.mxu3 %v6879_v0  ;;  %v2144_v34 = vld [vmem:[%s5077_s25 + $0x1d0] sm:$0xff]  ;;  %v7031_v55 = vsub.f32 %v2146_v37, %v7005_v11  ;;  %v3217_v14 = vsub.f32 %v6990_v32, %v8258_v31  ;;  %v7043_v37 = vsub.f32 %v2145_v43, %v7017_v8  ;;  %v2961_v43 = vand.u32 4294901760, %v2960_v13 }
 0x20b   : > { %2861 = vmatpush.msrb.mxu0 %v6946_v24  ;;  %3012 = vmatpush.msrb.mxu2 %v6941_v49  ;;  %v7036_v46 = vand.u32 4294901760, %v2144_v34  ;;  %v8405_v31 = vand.u32 4294901760, %v6806_v38 }
 0x20c   : > { %2938 = vmatpush.msrb.mxu1 %v2937_v22  ;;  %3051 = vmatpush.msrb.mxu3 %v6896_v19  ;;  %v2143_v22 = vld [vmem:[%s5077_s25 + $0x1c8] sm:$0xff]  ;;  %v3218_v13 = vand.u32 4294901760, %v3217_v14  ;;  %v8403_v14 = vand.u32 4294901760, %v7031_v55  ;;  %v8434_v35 = vand.u32 4294901760, %v7043_v37 }
 0x20d   : > { %2863 = vmatpush.msrb.mxu0 %v6967_v47  ;;  %3015 = vmatpush.msrb.mxu2 %v6955_v63  ;;  %v7052_v2 = vand.u32 4294901760, %v2143_v22 }
 0x20e   : > { %2944 = vmatpush.msrb.mxu1 %v2943_v45  ;;  %3053 = vmatpush.msrb.mxu3 %v6909_v40  ;;  %v2966_v45 = vsub.f32 %v6997_v59, %v8259_v18  ;;  %v7066_v18 = vand.u32 4294901760, %v2142_v21 }
 0x20f   : > { %2869 = vmatmul.f32.vlgmr.msrb.gmra.mxu0 %v2868_v23  ;;  %3018 = vmatpush.msrb.mxu2 %v6973_v62  ;;  %v8261_v23 = vand.u32 4294901760, %v7023_v5 }
 0x210   : > { %3070 = vmatpush.msra.mxu0 %v2875_v53  ;;  %2950 = vmatpush.msrb.mxu1 %v2949_v60  ;;  %v3223_v53 = vsub.f32 %v7012_v29, %v8401_v50  ;;  %v7064_v60 = vsub.f32 %v2144_v34, %v7036_v46  ;;  %v7079_v50 = vsub.f32 %v2143_v22, %v7052_v2 }
 0x211   : > { %3055 = vmatpush.msrb.mxu3 %v6924_v17  ;;  %3021 = vmatpush.msrb.mxu2 %v6997_v59  ;;  %v3229_v34 = vsub.f32 %v7023_v5, %v8261_v23 }
 0x212   : > { %3074 = vmatpush.msra.mxu0 %v2881_v4  ;;  %2956 = vmatpush.msrb.mxu1 %v2955_v15  ;;  %v8402_v4 = vand.u32 4294901760, %v6794_v36  ;;  %v2967_v15 = vand.u32 4294901760, %v2966_v45  ;;  %v3235_v36 = vsub.f32 %v7031_v55, %v8403_v14  ;;  %v8404_v45 = vand.u32 4294901760, %v6933_v57 }
 0x213   : > { %3057 = vmatpush.msrb.mxu3 %v6946_v24  ;;  %3024 = vmatmul.f32.vlgmr.msrb.gmra.mxu2 %v6933_v57  ;;  %v7081_v24 = vand.u32 4294901760, %v2141_v10  ;;  %v3224_v23 = vand.u32 4294901760, %v3223_v53  ;;  %v8406_v14 = vand.u32 4294901760, %v7043_v37  ;;  %v3230_v38 = vand.u32 4294901760, %v3229_v34 }
 0x214   : > { %3078 = vmatpush.msra.mxu0 %v8402_v4  ;;  %3174 = vmatpush.msra.mxu2 %v6960_v9  ;;  %v2139_v4 = vld [vmem:[%s5077_s25 + $0x1a8] sm:$0xff]  ;;  %v7094_v9 = vsub.f32 %v2142_v21, %v7066_v18  ;;  %v8410_v53 = vand.u32 4294901760, %v6828_v30 }
 0x215   : > { %2962 = vmatpush.msrb.mxu1 %v2961_v43  ;;  %3059 = vmatpush.msrb.mxu3 %v6967_v47  ;;  %v7096_v43 = vand.u32 4294901760, %v2140_v1  ;;  %v3241_v57 = vsub.f32 %v7043_v37, %v8406_v14  ;;  %v7107_v21 = vsub.f32 %v2141_v10, %v7081_v24  ;;  %v7109_v22 = vand.u32 4294901760, %v2139_v4  ;;  %v2137_v14 = vld [vmem:[%s5077_s25 + $0x198] sm:$0xff] }
 0x216   : > { %3063 = vmatmul.f32.vlgmr.msrb.gmra.mxu3 %v8404_v45  ;;  %3082 = vmatpush.msra.mxu0 %v8405_v31  ;;  %v2138_v45 = vld [vmem:[%s5077_s25 + $0x1a0] sm:$0xff]  ;;  %v8407_v31 = vand.u32 4294901760, %v6813_v39  ;;  %v8408_v47 = vmov 1.0   ;;  %v8409_v39 = vand.u32 4294901760, %v7064_v60  ;;  %v7138_v30 = vand.u32 4294901760, %v2137_v14 }
 0x217   : > { %3176 = vmatpush.msra.mxu2 %v6981_v41  ;;  %3219 = vmatpush.msra.mxu3 %v3218_v13  ;;  %v3236_v13 = vand.u32 4294901760, %v3235_v36  ;;  %v7122_v34 = vsub.f32 %v2140_v1, %v7096_v43  ;;  %v3242_v36 = vand.u32 4294901760, %v3241_v57  ;;  %v7136_v10 = vsub.f32 %v2139_v4, %v7109_v22  ;;  %v2135_v1 = vld [vmem:[%s5077_s25 + $0x188] sm:$0xff] }
 0x218   : > { %2968 = vmatpush.msrb.mxu1 %v2967_v15  ;;  %3086 = vmatpush.msra.mxu0 %v8407_v31  ;;  %v3247_v15 = vsub.f32 %v7064_v60, %v8409_v39  ;;  %v7124_v31 = vand.u32 4294901760, %v2138_v45  ;;  %v8412_v57 = vand.u32 4294901760, %v6843_v27  ;;  %v8414_v27 = vand.u32 4294901760, %v6868_v7 }
 0x219   : > { %4875 = vmatmul.msk.f32.vlgmr.msrb.gmra.mxu1 %vm6891_vm9, %v8408_v47  ;;  %3178 = vmatpush.msra.mxu2 %v6999_v51  ;;  %v3276_v7 = vand.u32 4294901760, %v7136_v10  ;;  %v8418_v4 = vand.u32 4294901760, %v6882_v16  ;;  %v8420_v16 = vand.u32 4294901760, %v6900_v58  ;;  %v8421_v58 = vand.u32 4294901760, %v6913_v48 }
 0x21a   : > { %3137 = vmatpush.msra.mxu1 %v6752_v52  ;;  %3225 = vmatpush.msra.mxu3 %v3224_v23  ;;  %v2072_v52 = vperm.slane %v6503_v6, 3  ;;  %v8411_v23 = vand.u32 4294901760, %v7079_v50  ;;  %v3248_v6 = vand.u32 4294901760, %v3247_v15 }
 0x21b   : > { %3090 = vmatpush.msra.mxu0 %v8410_v53  ;;  %3180 = vmatpush.msra.mxu2 %v7005_v11  ;;  %v2136_v53 = vld [vmem:[%s5077_s25 + $0x190] sm:$0xff] }
 0x21c   : > { %3139 = vmatpush.msra.mxu1 %v6760_v44  ;;  %3231 = vmatpush.msra.mxu3 %v3230_v38  ;;  %v3253_v39 = vsub.f32 %v7079_v50, %v8411_v23  ;;  %v8413_v44 = vand.u32 4294901760, %v7094_v9  ;;  %v7150_v23 = vsub.f32 %v2138_v45, %v7124_v31  ;;  %vm7159_vm10 = vcmp.eq.s32.totalorder %v6525_v12, %v2072_v52 }
 0x21d   : > { %3094 = vmatpush.msra.mxu0 %v8412_v57  ;;  %3182 = vmatpush.msra.mxu2 %v7017_v8  ;;  %v7156_v57 = vand.u32 4294901760, %v2136_v53  ;;  %v8417_v45 = vand.u32 4294901760, %v7107_v21  ;;  %v7175_v12 = vand.u32 4294901760, %v2135_v1 }
 0x21e   : > { %3141 = vmatpush.msra.mxu1 %v6768_v61  ;;  %3237 = vmatpush.msra.mxu3 %v3236_v13  ;;  %v3259_v38 = vsub.f32 %v7094_v9, %v8413_v44  ;;  %v3254_v13 = vand.u32 4294901760, %v3253_v39  ;;  %v7169_v44 = vsub.f32 %v2137_v14, %v7138_v30  ;;  %v3282_v39 = vand.u32 4294901760, %v7150_v23 }
 0x21f   : > { %3098 = vmatpush.msra.mxu0 %v8414_v27  ;;  %3184 = vmatpush.msra.mxu2 %v7036_v46  ;;  %v3265_v15 = vsub.f32 %v7107_v21, %v8417_v45  ;;  %v2134_v27 = vld [vmem:[%s5077_s25 + $0x180] sm:$0xff]  ;;  %v4868_v14 = vsel %vm7159_vm10, 1.0, %v8379_v25 }
 0x220   : > { %3143 = vmatpush.msra.mxu1 %v6779_v28  ;;  %3243 = vmatpush.msra.mxu3 %v3242_v36  ;;  %v3260_v28 = vand.u32 4294901760, %v3259_v38  ;;  %v8419_v36 = vand.u32 4294901760, %v7122_v34  ;;  %v3277_v38 = vsub.f32 %v7136_v10, %v3276_v7  ;;  %v3288_v25 = vand.u32 4294901760, %v7169_v44 }
 0x221   : > { %3102 = vmatpush.msra.mxu0 %v8418_v4  ;;  %3186 = vmatpush.msra.mxu2 %v7052_v2  ;;  %v7189_v4 = vsub.f32 %v2136_v53, %v7156_v57  ;;  %v7202_v53 = vsub.f32 %v2135_v1, %v7175_v12  ;;  %v7204_v45 = vsub.f32 %v4868_v14, %v4868_v14 }
 0x222   : > { %3145 = vmatpush.msra.mxu1 %v6787_v54  ;;  %3249 = vmatpush.msra.mxu3 %v3248_v6  ;;  %v3271_v52 = vsub.f32 %v7122_v34, %v8419_v36  ;;  %v7191_v54 = vand.u32 4294901760, %v2134_v27  ;;  %v3266_v6 = vand.u32 4294901760, %v3265_v15  ;;  %v8422_v15 = vand.u32 4294901760, %v6928_v56 }
 0x223   : > { %3106 = vmatpush.msra.mxu0 %v8420_v16  ;;  %3188 = vmatpush.msra.mxu2 %v7066_v18  ;;  %v3294_v48 = vand.u32 4294901760, %v7189_v4  ;;  %v8423_v36 = vand.u32 4294901760, %v6941_v49  ;;  %v3300_v56 = vand.u32 4294901760, %v7202_v53 }
 0x224   : > { %3147 = vmatpush.msra.mxu1 %v6799_v33  ;;  %3255 = vmatpush.msra.mxu3 %v3254_v13  ;;  %v3272_v33 = vand.u32 4294901760, %v3271_v52  ;;  %v3283_v13 = vsub.f32 %v7150_v23, %v3282_v39  ;;  %v7215_v1 = vsub.f32 %v2134_v27, %v7191_v54  ;;  %v3207_v52 = vand.u32 4294901760, %v7204_v45 }
 0x225   : > { %3110 = vmatpush.msra.mxu0 %v8421_v58  ;;  %3190 = vmatpush.msra.mxu2 %v7081_v24  ;;  %v3295_v49 = vsub.f32 %v7189_v4, %v3294_v48 }
 0x226   : > { %3149 = vmatpush.msra.mxu1 %v6810_v26  ;;  %3261 = vmatpush.msra.mxu3 %v3260_v28  ;;  %v3278_v26 = vand.u32 4294901760, %v3277_v38  ;;  %v3289_v28 = vsub.f32 %v7169_v44, %v3288_v25  ;;  %v3284_v27 = vand.u32 4294901760, %v3283_v13  ;;  %v3306_v14 = vand.u32 4294901760, %v7215_v1  ;;  %v8431_v13 = vld [vmem:[#allocation14_spill] sm:$0xff] }
 0x227   : > { %3114 = vmatpush.msra.mxu0 %v8422_v15  ;;  %3192 = vmatpush.msra.mxu2 %v7096_v43 }
 0x228   : > { %3151 = vmatpush.msra.mxu1 %v6836_v3  ;;  %3267 = vmatpush.msra.mxu3 %v3266_v6  ;;  %v8424_v3 = vand.u32 4294901760, %v6955_v63  ;;  %v3290_v16 = vand.u32 4294901760, %v3289_v28  ;;  %v8425_v6 = vand.u32 4294901760, %v6973_v62  ;;  %v3208_v63 = vsub.f32 %v7204_v45, %v3207_v52 }
 0x229   : > { %3118 = vmatpush.msra.mxu0 %v8423_v36  ;;  %3194 = vmatpush.msra.mxu2 %v7109_v22  ;;  %v3296_v62 = vand.u32 4294901760, %v3295_v49  ;;  %v3307_v38 = vsub.f32 %v7215_v1, %v3306_v14 }
 0x22a   : > { %3153 = vmatpush.msra.mxu1 %v6853_v42  ;;  %3273 = vmatpush.msra.mxu3 %v3272_v33  ;;  %v3301_v42 = vsub.f32 %v7202_v53, %v3300_v56  ;;  %v3209_v58 = vand.u32 4294901760, %v3208_v63  ;;  %v8428_v33 = vld [vmem:[#allocation13_spill] sm:$0xff] }
 0x22b   : > { %3122 = vmatpush.msra.mxu0 %v8424_v3  ;;  %3196 = vmatpush.msra.mxu2 %v7124_v31 }
 0x22c   : > { %3155 = vmatpush.msra.mxu1 %v6865_v20  ;;  %3279 = vmatpush.msra.mxu3 %v3278_v26  ;;  %v8426_v20 = vand.u32 4294901760, %v6997_v59  ;;  %v3308_v59 = vand.u32 4294901760, %v3307_v38 }
 0x22d   : > { %3126 = vmatpush.msra.mxu0 %v8425_v6  ;;  %3198 = vmatpush.msra.mxu2 %v7138_v30 }
 0x22e   : > { %3157 = vmatpush.msra.mxu1 %v6879_v0  ;;  %3285 = vmatpush.msra.mxu3 %v3284_v27  ;;  %v3302_v0 = vand.u32 4294901760, %v3301_v42 }
 0x22f   : > { %3130 = vmatpush.msra.mxu0 %v8426_v20  ;;  %3200 = vmatpush.msra.mxu2 %v7156_v57  ;;  %v2085_v20 = vld [vmem:[#allocation3] sm:$0xff] }
 0x230   : > { %3159 = vmatpush.msra.mxu1 %v6896_v19  ;;  %3291 = vmatpush.msra.mxu3 %v3290_v16  ;;  %v8427_v19 = vand.u32 4294901760, %v6990_v32 }
 0x231   : > { %4876 = vmatmul.msk.f32.vlgmr.msra.gmra.mxu0 %vm6891_vm9, %v8408_v47  ;;  %3202 = vmatpush.msra.mxu2 %v7175_v12 }
 0x232   : > { %3317 = vmatpush.msrb.mxu0 %v6990_v32  ;;  %3161 = vmatpush.msra.mxu1 %v6909_v40  ;;  %v8429_v40 = vand.u32 4294901760, %v7012_v29  ;;  %v8432_v32 = vand.u32 4294901760, %v7023_v5 }
 0x233   : > { %3297 = vmatpush.msra.mxu3 %v3296_v62  ;;  %3204 = vmatpush.msra.mxu2 %v7191_v54 }
 0x234   : > { %3320 = vmatpush.msrb.mxu0 %v7012_v29  ;;  %3163 = vmatpush.msra.mxu1 %v6924_v17  ;;  %v8430_v17 = vld [vmem:[#allocation12_spill] sm:$0xff]  ;;  %v8433_v29 = vand.u32 4294901760, %v7031_v55 }
 0x235   : > { %3303 = vmatpush.msra.mxu3 %v3302_v0  ;;  %3210 = vmatmul.f32.vlgmr.msra.gmra.mxu2 %v3209_v58 }
 0x236   : > { %3323 = vmatpush.msrb.mxu0 %v7023_v5  ;;  %3411 = vmatpush.msrb.mxu2 %v8427_v19  ;;  %v8435_v5 = vand.u32 4294901760, %v7064_v60 }
 0x237   : > { %3165 = vmatpush.msra.mxu1 %v8428_v33  ;;  %3309 = vmatpush.msra.mxu3 %v3308_v59 }
 0x238   : > { %4878 = vmatmul.msk.f32.vlgmr.msra.gmra.mxu3 %vm7159_vm10, %v8408_v47  ;;  %3326 = vmatpush.msrb.mxu0 %v7031_v55  ;;  %v8436_v55 = vand.u32 4294901760, %v7079_v50 }
 0x239   : > { %3415 = vmatpush.msrb.mxu2 %v8429_v40  ;;  %3478 = vmatpush.msrb.mxu3 %v8430_v17 }
 0x23a   : > { %3167 = vmatpush.msra.mxu1 %v8431_v13  ;;  %3329 = vmatpush.msrb.mxu0 %v7043_v37 }
 0x23b   : > { %4877 = vmatmul.msk.f32.vlgmr.msra.gmra.mxu1 %vm6891_vm9, %v8408_v47  ;;  %3419 = vmatpush.msrb.mxu2 %v8432_v32 }
 0x23c   : > { %3370 = vmatpush.msrb.mxu1 %v8430_v17  ;;  %3480 = vmatpush.msrb.mxu3 %v6981_v41 }
 0x23d   : > { %3332 = vmatpush.msrb.mxu0 %v7064_v60  ;;  %3423 = vmatpush.msrb.mxu2 %v8433_v29 }
 0x23e   : > { %3372 = vmatpush.msrb.mxu1 %v6981_v41  ;;  %3482 = vmatpush.msrb.mxu3 %v6999_v51  ;;  %v8438_v41 = vand.u32 4294901760, %v7107_v21 }
 0x23f   : > { %3335 = vmatpush.msrb.mxu0 %v7079_v50  ;;  %3427 = vmatpush.msrb.mxu2 %v8434_v35 }
 0x240   : > { %3374 = vmatpush.msrb.mxu1 %v6999_v51  ;;  %3484 = vmatpush.msrb.mxu3 %v7005_v11  ;;  %v8437_v51 = vand.u32 4294901760, %v7094_v9 }
 0x241   : > { %3338 = vmatpush.msrb.mxu0 %v7094_v9  ;;  %3431 = vmatpush.msrb.mxu2 %v8435_v5 }
 0x242   : > { %3376 = vmatpush.msrb.mxu1 %v7005_v11  ;;  %3486 = vmatpush.msrb.mxu3 %v7017_v8 }
 0x243   : > { %3341 = vmatpush.msrb.mxu0 %v7107_v21  ;;  %3435 = vmatpush.msrb.mxu2 %v8436_v55  ;;  %v2188_v9 = vpop.f32.mrf.mxu0 }
 0x244   : > { %3378 = vmatpush.msrb.mxu1 %v7017_v8  ;;  %3488 = vmatpush.msrb.mxu3 %v7036_v46  ;;  %v8439_v8 = vand.u32 4294901760, %v7122_v34 }
 0x245   : > { %3344 = vmatpush.msrb.mxu0 %v7122_v34  ;;  %3439 = vmatpush.msrb.mxu2 %v8437_v51 }
 0x246   : > { %3380 = vmatpush.msrb.mxu1 %v7036_v46  ;;  %3490 = vmatpush.msrb.mxu3 %v7052_v2 }
 0x247   : > { %3347 = vmatpush.msrb.mxu0 %v7136_v10  ;;  %3443 = vmatpush.msrb.mxu2 %v8438_v41 }
 0x248   : > { %3382 = vmatpush.msrb.mxu1 %v7052_v2  ;;  %3492 = vmatpush.msrb.mxu3 %v7066_v18 }
 0x249   : > { %3350 = vmatpush.msrb.mxu0 %v7150_v23  ;;  %3447 = vmatpush.msrb.mxu2 %v8439_v8 }
 0x24a   : > { %3384 = vmatpush.msrb.mxu1 %v7066_v18  ;;  %3494 = vmatpush.msrb.mxu3 %v7081_v24 }
 0x24b   : > { %3353 = vmatpush.msrb.mxu0 %v7169_v44  ;;  %3451 = vmatpush.msrb.mxu2 %v3276_v7 }
 0x24c   : > { %3386 = vmatpush.msrb.mxu1 %v7081_v24  ;;  %3496 = vmatpush.msrb.mxu3 %v7096_v43 }
 0x24d   : > { %3356 = vmatpush.msrb.mxu0 %v7189_v4  ;;  %3455 = vmatpush.msrb.mxu2 %v3282_v39  ;;  %v2289_v24 = vpop.f32.mrf.mxu1 }
 0x24e   : > { %3388 = vmatpush.msrb.mxu1 %v7096_v43  ;;  %3498 = vmatpush.msrb.mxu3 %v7109_v22  ;;  %v2290_v18 = vadd.f32 %v2289_v24, %v2188_v9 }
 0x24f   : > { %3359 = vmatpush.msrb.mxu0 %v7202_v53  ;;  %3459 = vmatpush.msrb.mxu2 %v3288_v25  ;;  %v2343_v11 = vpop.f32.mrf.mxu2  ;;  %v2382_v37 = vpop.f32.mrf.mxu3 }
 0x250   : > { %3390 = vmatpush.msrb.mxu1 %v7109_v22  ;;  %3500 = vmatpush.msrb.mxu3 %v7124_v31  ;;  %v2344_v46 = vadd.f32 %v2343_v11, %v2290_v18 }
 0x251   : > { %3362 = vmatpush.msrb.mxu0 %v7215_v1  ;;  %3463 = vmatpush.msrb.mxu2 %v3294_v48 }
 0x252   : > { %3392 = vmatpush.msrb.mxu1 %v7124_v31  ;;  %3502 = vmatpush.msrb.mxu3 %v7138_v30  ;;  %v2383_v2 = vadd.f32 %v2382_v37, %v2344_v46 }
 0x253   : > { %3365 = vmatmul.f32.vlgmr.msrb.gmra.mxu0 %v7204_v45  ;;  %3467 = vmatpush.msrb.mxu2 %v3300_v56 }
 0x254   : > { %3394 = vmatpush.msrb.mxu1 %v7138_v30  ;;  %3504 = vmatpush.msrb.mxu3 %v7156_v57  ;;  %v2451_v60 = vpop.f32.mrf.mxu0 }
 0x255   : > { %3471 = vmatpush.msrb.mxu2 %v3306_v14  ;;  %v2452_v50 = vadd.f32 %v2451_v60, %v2383_v2 }
 0x256   : > { %3396 = vmatpush.msrb.mxu1 %v7156_v57  ;;  %3506 = vmatpush.msrb.mxu3 %v7175_v12 }
 0x257   : > { %4879 = vmatmul.msk.f32.vlgmr.msrb.gmra.mxu2 %vm7159_vm10, %v8408_v47  ;;  %v2488_v22 = vpop.f32.mrf.mxu1 }
 0x258   : > { %3398 = vmatpush.msrb.mxu1 %v7175_v12  ;;  %3508 = vmatpush.msrb.mxu3 %v7191_v54  ;;  %v2489_v43 = vadd.f32 %v2488_v22, %v2452_v50  ;;  %v2529_v21 = vpop.f32.mrf.mxu2 }
 0x259   : > { %4880 = vmatmul.msk.f32.vlgmr.msrb.gmra.mxu3 %vm7159_vm10, %v8408_v47 }
 0x25a   : > { %3400 = vmatpush.msrb.mxu1 %v7191_v54  ;;  %v2530_v10 = vadd.f32 %v2529_v21, %v2489_v43 }
 0x25b   : > { %3404 = vmatmul.f32.vlgmr.msrb.gmra.mxu1 %v3207_v52  ;;  %v2630_v34 = vpop.f32.mrf.mxu3 }
 0x25c   : > { %v2631_v31 = vadd.f32 %v2630_v34, %v2530_v10 }
 0x26a   : > { %v2684_v47 = vpop.f32.mrf.mxu0 }
 0x26b   : > { %v2685_v23 = vadd.f32 %v2684_v47, %v2631_v31 }
 0x274   : > { %v2723_v30 = vpop.f32.mrf.mxu1  ;;  %v2792_v61 = vpop.f32.mrf.mxu2 }
 0x275   : > { %v2724_v57 = vadd.f32 %v2723_v30, %v2685_v23 }
 0x277   : > { %v2793_v7 = vadd.f32 %v2792_v61, %v2724_v57  ;;  %v2829_v44 = vpop.f32.mrf.mxu3 }
 0x279   : > { %v2830_v39 = vadd.f32 %v2829_v44, %v2793_v7 }
 0x28c   : > { %v2870_v12 = vpop.f32.mrf.mxu0 }
 0x28d   : > { %v2871_v54 = vadd.f32 %v2870_v12, %v2830_v39 }
 0x296   : > { %v2971_v4 = vpop.f32.mrf.mxu1  ;;  %v3025_v53 = vpop.f32.mrf.mxu2 }
 0x297   : > { %v2972_v25 = vadd.f32 %v2971_v4, %v2871_v54 }
 0x299   : > { %v3026_v45 = vadd.f32 %v3025_v53, %v2972_v25  ;;  %v3064_v15 = vpop.f32.mrf.mxu3 }
 0x29b   : > { %v3065_v1 = vadd.f32 %v3064_v15, %v3026_v45 }
 0x2ae   : > { %v3133_v48 = vpop.f32.mrf.mxu0 }
 0x2af   : > { %v3134_v28 = vadd.f32 %v3133_v48, %v3065_v1 }
 0x2b8   : > { %v3170_v26 = vpop.f32.mrf.mxu1  ;;  %v3211_v56 = vpop.f32.mrf.mxu2 }
 0x2b9   : > { %v3171_v36 = vadd.f32 %v3170_v26, %v3134_v28 }
 0x2bb   : > { %v3212_v52 = vadd.f32 %v3211_v56, %v3171_v36  ;;  %v3312_v27 = vpop.f32.mrf.mxu3 }
 0x2bd   : > { %v3313_v49 = vadd.f32 %v3312_v27, %v3212_v52 }
 0x2d0   : > { %v3366_v3 = vpop.f32.mrf.mxu0 }
 0x2d1   : > { %v3367_v14 = vadd.f32 %v3366_v3, %v3313_v49 }
 0x2d8   : > { %v3405_v16 = vpop.f32.mrf.mxu1 }
 0x2d9   : > { %v3406_v6 = vadd.f32 %v3405_v16, %v3367_v14 }
 0x2da   : > { %v3474_v42 = vpop.f32.mrf.mxu2 }
 0x2db   : > { %v3475_v63 = vadd.f32 %v3474_v42, %v3406_v6 }
 0x2dc   : > { %v3511_v62 = vpop.f32.mrf.mxu3 }
 0x2dd   : > { %v3512_v38 = vadd.f32 %v3511_v62, %v3475_v63 }
 0x2df   : > { %v3514_v0 = vadd.f32 %v3512_v38, %v2085_v20 }
 0x2e1   : > { %3516 = vst.msk [vmem:[#allocation3] sm:$0xff] %vm3515_vm11, %v3514_v0 }
 0x2e2 PF: > { %p4881_p12 = scmp.ne.s32.totalorder %s5049_s19, 4 }
 0x2e3   : > { %s8440_s24 = sld [smem:[#allocation16_spill]] (!%p4881_p12) }
 0x2e4   : > { %3520 = sbr.rel (%p4881_p12) target bundleno = 1322 (0x52a), region = 96  ;;  %s8441_s28 = sld [smem:[#allocation17_spill]] (!%p4881_p12) }
 0x2e5   : > { %s8442_s16 = sld [smem:[#allocation18_spill]] (!%p4881_p12) }
 0x2e9   : > { %v3535_v58 = vld [vmem:[%s8151_s5 + $0x28] sm:$0xff]  ;;  %v3534_v59 = vld [vmem:[%s8151_s5 + $0x20] sm:$0xff]  ;;  %v3533_v19 = vld [vmem:[%s8151_s5 + $0x18] sm:$0xff]  ;;  %vm3536_vm12 = vcmask 392192   ;;  %vm3751_vm13 = vcmask 261120  }
 0x2ea   : > { %v7366_v33 = vand.u32 4294901760, %v3535_v58  ;;  %v7368_v40 = vand.u32 4294901760, %v3534_v59  ;;  %v7370_v17 = vand.u32 4294901760, %v3533_v19  ;;  %v3532_v13 = vld [vmem:[%s8151_s5 + $0x10] sm:$0xff]  ;;  %v3531_v32 = vld [vmem:[%s8151_s5 + $0x8] sm:$0xff]  ;;  %v3530_v29 = vld [vmem:[%s8151_s5] sm:$0xff] }
 0x2eb   : > { %v7381_v35 = vand.u32 4294901760, %v3532_v13  ;;  %v7383_v5 = vand.u32 4294901760, %v3531_v32  ;;  %v7385_v55 = vand.u32 4294901760, %v3530_v29  ;;  %v3529_v51 = vld [vmem:[#allocation3] sm:$0xff]  ;;  %v3528_v41 = vld [vmem:[%s8150_s4 + $0x18] sm:$0xff]  ;;  %v3527_v11 = vld [vmem:[%s8150_s4 + $0x10] sm:$0xff] }
 0x2ec   : > { %3551 = vmatpush.msra.mxu0 %v7366_v33  ;;  %v7392_v8 = vsub.f32 %v3535_v58, %v7366_v33  ;;  %v7395_v24 = vsub.f32 %v3534_v59, %v7368_v40  ;;  %3667 = vmatpush.msra.mxu3 %v7366_v33  ;;  %v7399_v9 = vsub.f32 %v3533_v19, %v7370_v17  ;;  %v3538_v18 = vsel %vm3536_vm12, %v3529_v51, 0  ;;  %v3526_v39 = vld [vmem:[%s8150_s4 + $0x8] sm:$0xff]  ;;  %v3525_v4 = vld [vmem:[%s8150_s4] sm:$0xff] }
 0x2ed   : > { %v7406_v46 = vsub.f32 %v3532_v13, %v7381_v35  ;;  %v7409_v37 = vsub.f32 %v3531_v32, %v7383_v5  ;;  %v7412_v2 = vsub.f32 %v3530_v29, %v7385_v55  ;;  %v7414_v60 = vand.u32 4294901760, %v3538_v18  ;;  %v3524_v53 = vld [vmem:[#allocation2] sm:$0xff] }
 0x2ee   : > { %3634 = vmatpush.msra.mxu2 %v7392_v8  ;;  %3553 = vmatpush.msra.mxu0 %v7368_v40  ;;  %v3583_v50 = vand.u32 4294901760, %v7392_v8  ;;  %v3589_v22 = vand.u32 4294901760, %v7395_v24  ;;  %v3595_v43 = vand.u32 4294901760, %v7399_v9  ;;  %v7421_v21 = vand.u32 4294901760, %v3528_v41 }
 0x2ef   : > { %3669 = vmatpush.msra.mxu3 %v7368_v40  ;;  %v3601_v10 = vand.u32 4294901760, %v7406_v46  ;;  %v3563_v34 = vsub.f32 %v3538_v18, %v7414_v60  ;;  %v3607_v47 = vand.u32 4294901760, %v7409_v37  ;;  %v7427_v31 = vand.u32 4294901760, %v3527_v11 }
 0x2f0   : > { %3637 = vmatpush.msra.mxu2 %v7395_v24  ;;  %3555 = vmatpush.msra.mxu0 %v7370_v17  ;;  %v3584_v30 = vsub.f32 %v7392_v8, %v3583_v50  ;;  %v3590_v23 = vsub.f32 %v7395_v24, %v3589_v22  ;;  %v3596_v57 = vsub.f32 %v7399_v9, %v3595_v43  ;;  %v3613_v61 = vand.u32 4294901760, %v7412_v2 }
 0x2f1   : > { %3671 = vmatpush.msra.mxu3 %v7370_v17  ;;  %v3602_v7 = vsub.f32 %v7406_v46, %v3601_v10  ;;  %v3564_v44 = vand.u32 4294901760, %v3563_v34  ;;  %v7444_v12 = vsub.f32 %v3528_v41, %v7421_v21  ;;  %v3608_v15 = vsub.f32 %v7409_v37, %v3607_v47 }
 0x2f2   : > { %3640 = vmatpush.msra.mxu2 %v7399_v9  ;;  %v3585_v54 = vand.u32 4294901760, %v3584_v30  ;;  %3557 = vmatpush.msra.mxu0 %v7381_v35  ;;  %v3591_v25 = vand.u32 4294901760, %v3590_v23  ;;  %v3597_v45 = vand.u32 4294901760, %v3596_v57  ;;  %v3614_v1 = vsub.f32 %v7412_v2, %v3613_v61 }
 0x2f3   : > { %3673 = vmatpush.msra.mxu3 %v7381_v35  ;;  %v3798_v48 = vand.u32 4294901760, %v7444_v12  ;;  %v7463_v26 = vand.u32 4294901760, %v3526_v39  ;;  %v7466_v28 = vsub.f32 %v3527_v11, %v7427_v31  ;;  %v7468_v36 = vand.u32 4294901760, %v3525_v4 }
 0x2f4   : > { %3586 = vmatpush.msra.mxu1 %v3585_v54  ;;  %3643 = vmatpush.msra.mxu2 %v7406_v46  ;;  %v3603_v56 = vand.u32 4294901760, %v3602_v7  ;;  %v3565_v27 = vsub.f32 %v3563_v34, %v3564_v44  ;;  %v3753_v3 = vsel %vm3751_vm13, %v3524_v53, 0  ;;  %v3609_v42 = vand.u32 4294901760, %v3608_v15  ;;  %v4003_v46 = vld [vmem:[%s8155_s9 + $0x60] sm:$0xff] }
 0x2f5   : > { %3559 = vmatpush.msra.mxu0 %v7383_v5  ;;  %3675 = vmatpush.msra.mxu3 %v7383_v5  ;;  %v3799_v52 = vsub.f32 %v7444_v12, %v3798_v48  ;;  %v3804_v49 = vand.u32 4294901760, %v7466_v28  ;;  %v7479_v14 = vsub.f32 %v3526_v39, %v7463_v26  ;;  %v7481_v16 = vand.u32 4294901760, %v3753_v3  ;;  %v3999_v53 = vld [vmem:[%s8155_s9 + $0x40] sm:$0xff] }
 0x2f6   : > { %3592 = vmatpush.msra.mxu1 %v3591_v25  ;;  %3646 = vmatpush.msra.mxu2 %v7409_v37  ;;  %v7484_v6 = vsub.f32 %v3525_v4, %v7468_v36  ;;  %v3566_v58 = vand.u32 4294901760, %v3565_v27  ;;  %v3615_v59 = vand.u32 4294901760, %v3614_v1  ;;  %v7628_v1 = vand.u32 4294901760, %v3999_v53 }
 0x2f7   : > { %3561 = vmatpush.msra.mxu0 %v7385_v55  ;;  %3677 = vmatpush.msra.mxu3 %v7385_v55  ;;  %v3805_v63 = vsub.f32 %v7466_v28, %v3804_v49  ;;  %v3810_v20 = vand.u32 4294901760, %v7479_v14  ;;  %v3776_v62 = vsub.f32 %v3753_v3, %v7481_v16  ;;  %v3800_v0 = vand.u32 4294901760, %v3799_v52 }
 0x2f8   : > { %3598 = vmatpush.msra.mxu1 %v3597_v45  ;;  %3649 = vmatpush.msra.mxu2 %v7412_v2  ;;  %v3816_v38 = vand.u32 4294901760, %v7484_v6 }
 0x2f9   : > { %3652 = vmatmul.f32.vlgmr.msra.gmra.mxu2 %v3563_v34  ;;  %3698 = vmatpush.msrb.mxu0 %v3583_v50  ;;  %v3811_v19 = vsub.f32 %v7479_v14, %v3810_v20  ;;  %v3777_v13 = vand.u32 4294901760, %v3776_v62  ;;  %v3806_v32 = vand.u32 4294901760, %v3805_v63  ;;  %v7572_v50 = vand.u32 4294901760, %v4003_v46 }
 0x2fa   : > { %3604 = vmatpush.msra.mxu1 %v3603_v56  ;;  %3768 = vmatpush.msrb.mxu2 %v7421_v21  ;;  %v3817_v51 = vsub.f32 %v7484_v6, %v3816_v38  ;;  %v3998_v56 = vld [vmem:[%s8155_s9 + $0x38] sm:$0xff] }
 0x2fb   : > { %3681 = vmatmul.f32.vlgmr.msra.gmra.mxu3 %v3564_v44  ;;  %3702 = vmatpush.msrb.mxu0 %v3589_v22  ;;  %v3778_v29 = vsub.f32 %v3776_v62, %v3777_v13  ;;  %v3812_v41 = vand.u32 4294901760, %v3811_v19  ;;  %v4002_v22 = vld [vmem:[%s8155_s9 + $0x58] sm:$0xff]  ;;  %v7587_v34 = vsub.f32 %v4003_v46, %v7572_v50  ;;  %v4000_v44 = vld [vmem:[%s8155_s9 + $0x48] sm:$0xff] }
 0x2fc   : > { %3610 = vmatpush.msra.mxu1 %v3609_v42  ;;  %3770 = vmatpush.msrb.mxu2 %v7427_v31  ;;  %v3818_v24 = vand.u32 4294901760, %v3817_v51  ;;  %v7612_v4 = vand.u32 4294901760, %v4000_v44  ;;  %v3997_v42 = vld [vmem:[%s8155_s9 + $0x30] sm:$0xff]  ;;  %v3996_v19 = vld [vmem:[%s8155_s9 + $0x28] sm:$0xff] }
 0x2fd   : > { %3801 = vmatpush.msrb.mxu3 %v3800_v0  ;;  %3567 = vmatmul.f32.vlgmr.msra.gmra.mxu0 %v3566_v58  ;;  %v3779_v8 = vand.u32 4294901760, %v3778_v29  ;;  %v7672_v51 = vand.u32 4294901760, %v3996_v19 }
 0x2fe   : > { %3616 = vmatpush.msra.mxu1 %v3615_v59  ;;  %3706 = vmatpush.msrb.mxu0 %v3595_v43  ;;  %v7662_v59 = vand.u32 4294901760, %v3997_v42 }
 0x2ff   : > { %3772 = vmatpush.msrb.mxu2 %v7463_v26  ;;  %3807 = vmatpush.msrb.mxu3 %v3806_v32 }
 0x300   : > { %3618 = vmatmul.f32.vlgmr.msra.gmra.mxu1 %v7414_v60  ;;  %3710 = vmatpush.msrb.mxu0 %v3601_v10 }
 0x301   : > { %3735 = vmatpush.msrb.mxu1 %v7366_v33  ;;  %3774 = vmatpush.msrb.mxu2 %v7468_v36  ;;  %v4006_v33 = vld [vmem:[%s8155_s9 + $0x78] sm:$0xff] }
 0x302   : > { %3813 = vmatpush.msrb.mxu3 %v3812_v41  ;;  %3714 = vmatpush.msrb.mxu0 %v3607_v47  ;;  %v7589_v47 = vand.u32 4294901760, %v4002_v22  ;;  %v7677_v41 = vsub.f32 %v3997_v42, %v7662_v59 }
 0x303   : > { %3737 = vmatpush.msrb.mxu1 %v7368_v40  ;;  %3780 = vmatmul.f32.vlgmr.msrb.gmra.mxu2 %v3779_v8  ;;  %v7538_v40 = vand.u32 4294901760, %v4006_v33  ;;  %v3995_v8 = vld [vmem:[%s8155_s9 + $0x20] sm:$0xff] }
 0x304   : > { %3819 = vmatpush.msrb.mxu3 %v3818_v24  ;;  %3839 = vmatpush.msra.mxu2 %v7444_v12  ;;  %v7602_v7 = vsub.f32 %v4002_v22, %v7589_v47  ;;  %v3994_v22 = vld [vmem:[%s8155_s9 + $0x18] sm:$0xff] }
 0x305   : > { %3739 = vmatpush.msrb.mxu1 %v7370_v17  ;;  %3718 = vmatpush.msrb.mxu0 %v3613_v61  ;;  %v4005_v17 = vld [vmem:[%s8155_s9 + $0x70] sm:$0xff]  ;;  %v4072_v61 = vand.u32 4294901760, %v7587_v34 }
 0x306   : > { %3821 = vmatmul.f32.vlgmr.msrb.gmra.mxu3 %v7481_v16  ;;  %3842 = vmatpush.msra.mxu2 %v7466_v28  ;;  %v4078_v25 = vand.u32 4294901760, %v7602_v7 }
 0x307   : > { %3868 = vmatpush.msra.mxu3 %v7421_v21  ;;  %3720 = vmatmul.f32.vlgmr.msrb.gmra.mxu0 %v7414_v60  ;;  %v4073_v54 = vsub.f32 %v7587_v34, %v4072_v61 }
 0x308   : > { %3741 = vmatpush.msrb.mxu1 %v7381_v35  ;;  %3845 = vmatpush.msra.mxu2 %v7479_v14  ;;  %v7544_v35 = vsub.f32 %v4006_v33, %v7538_v40  ;;  %v7646_v14 = vand.u32 4294901760, %v3998_v56 }
 0x309   : > { %3870 = vmatpush.msra.mxu3 %v7427_v31  ;;  %3897 = vmatpush.msra.mxu0 %v3798_v48  ;;  %v7626_v48 = vsub.f32 %v4000_v44, %v7612_v4  ;;  %v4074_v28 = vand.u32 4294901760, %v4073_v54  ;;  %v3993_v54 = vld [vmem:[%s8155_s9 + $0x10] sm:$0xff] }
 0x30a   : > { %3743 = vmatpush.msrb.mxu1 %v7383_v5  ;;  %3848 = vmatpush.msra.mxu2 %v7484_v6  ;;  %v7546_v5 = vand.u32 4294901760, %v4005_v17  ;;  %v4054_v9 = vand.u32 4294901760, %v7544_v35  ;;  %v7658_v0 = vsub.f32 %v3998_v56, %v7646_v14 }
 0x30b   : > { %3872 = vmatpush.msra.mxu3 %v7463_v26  ;;  %3851 = vmatmul.f32.vlgmr.msra.gmra.mxu2 %v3776_v62  ;;  %v4090_v3 = vand.u32 4294901760, %v7626_v48 }
 0x30c   : > { %3745 = vmatpush.msrb.mxu1 %v7385_v55  ;;  %3901 = vmatpush.msra.mxu0 %v3804_v49  ;;  %v4004_v55 = vld [vmem:[%s8155_s9 + $0x68] sm:$0xff]  ;;  %v7555_v18 = vsub.f32 %v4005_v17, %v7546_v5  ;;  %v4055_v37 = vsub.f32 %v7544_v35, %v4054_v9  ;;  %v7644_v49 = vsub.f32 %v3999_v53, %v7628_v1  ;;  %v4102_v29 = vand.u32 4294901760, %v7658_v0 }
 0x30d   : > { %3747 = vmatmul.f32.vlgmr.msrb.gmra.mxu1 %v7414_v60  ;;  %3874 = vmatpush.msra.mxu3 %v7468_v36  ;;  %v7557_v11 = vand.u32 4294901760, %v4004_v55  ;;  %v4091_v62 = vsub.f32 %v7626_v48, %v4090_v3  ;;  %v7687_v17 = vsub.f32 %v3996_v19, %v7672_v51 }
 0x30e   : > { %3878 = vmatmul.f32.vlgmr.msra.gmra.mxu3 %v3777_v13  ;;  %3928 = vmatpush.msra.mxu1 %v7421_v21  ;;  %v4060_v2 = vand.u32 4294901760, %v7555_v18  ;;  %v4056_v43 = vand.u32 4294901760, %v4055_v37  ;;  %v4103_v33 = vsub.f32 %v7658_v0, %v4102_v29  ;;  %v4108_v37 = vand.u32 4294901760, %v7677_v41 }
 0x30f   : > { %3905 = vmatpush.msra.mxu0 %v3810_v20  ;;  %4012 = vmatpush.msrb.mxu2 %v7538_v40  ;;  %v7570_v60 = vsub.f32 %v4004_v55, %v7557_v11  ;;  %v4092_v13 = vand.u32 4294901760, %v4091_v62  ;;  %v7689_v55 = vand.u32 4294901760, %v3995_v8 }
 0x310   : > { %3930 = vmatpush.msra.mxu1 %v7427_v31  ;;  %v4061_v21 = vsub.f32 %v7555_v18, %v4060_v2  ;;  %v4001_v31 = vld [vmem:[%s8155_s9 + $0x50] sm:$0xff]  ;;  %4057 = vmatpush.msrb.mxu3 %v4056_v43  ;;  %v4109_v44 = vsub.f32 %v7677_v41, %v4108_v37 }
 0x311   : > { %3909 = vmatpush.msra.mxu0 %v3816_v38  ;;  %4014 = vmatpush.msrb.mxu2 %v7546_v5  ;;  %v4066_v10 = vand.u32 4294901760, %v7570_v60  ;;  %v7598_v57 = vand.u32 4294901760, %v4001_v31  ;;  %v4096_v38 = vand.u32 4294901760, %v7644_v49 }
 0x312   : > { %3932 = vmatpush.msra.mxu1 %v7463_v26  ;;  %3911 = vmatmul.f32.vlgmr.msra.gmra.mxu0 %v7481_v16  ;;  %v4062_v30 = vand.u32 4294901760, %v4061_v21  ;;  %v4104_v21 = vand.u32 4294901760, %v4103_v33 }
 0x313   : > { %4155 = vmatpush.msrb.mxu0 %v7544_v35  ;;  %4016 = vmatpush.msrb.mxu2 %v7557_v11  ;;  %v4067_v23 = vsub.f32 %v7570_v60, %v4066_v10  ;;  %v7610_v39 = vsub.f32 %v4001_v31, %v7598_v57  ;;  %v4097_v32 = vsub.f32 %v7644_v49, %v4096_v38  ;;  %v4114_v31 = vand.u32 4294901760, %v7687_v17 }
 0x314   : > { %3934 = vmatpush.msra.mxu1 %v7468_v36  ;;  %4063 = vmatpush.msrb.mxu3 %v4062_v30  ;;  %v4079_v36 = vsub.f32 %v7602_v7, %v4078_v25  ;;  %v7700_v30 = vsub.f32 %v3995_v8, %v7689_v55 }
 0x315   : > { %3936 = vmatmul.f32.vlgmr.msra.gmra.mxu1 %v7481_v16  ;;  %4158 = vmatpush.msrb.mxu0 %v7555_v18  ;;  %v4068_v12 = vand.u32 4294901760, %v4067_v23  ;;  %v4084_v15 = vand.u32 4294901760, %v7610_v39  ;;  %v4098_v24 = vand.u32 4294901760, %v4097_v32  ;;  %v4115_v53 = vsub.f32 %v7687_v17, %v4114_v31  ;;  %v4906_v18 = vld [vmem:[%s8152_s6] ss:$0 sm:$0xff] }
 0x316   : > { %4208 = vmatpush.msrb.mxu1 %v7538_v40  ;;  %4018 = vmatpush.msrb.mxu2 %v7572_v50  ;;  %v4080_v6 = vand.u32 4294901760, %v4079_v36  ;;  %v4110_v36 = vand.u32 4294901760, %v4109_v44 }
 0x317   : > { %4161 = vmatpush.msrb.mxu0 %v7570_v60  ;;  %4069 = vmatpush.msrb.mxu3 %v4068_v12  ;;  %v4085_v27 = vsub.f32 %v7610_v39, %v4084_v15  ;;  %v7707_v12 = vand.u32 4294901760, %v3994_v22 }
 0x318   : > { %4210 = vmatpush.msrb.mxu1 %v7546_v5  ;;  %4020 = vmatpush.msrb.mxu2 %v7589_v47 }
 0x319   : > { %4164 = vmatpush.msrb.mxu0 %v7587_v34  ;;  %4075 = vmatpush.msrb.mxu3 %v4074_v28  ;;  %v4086_v20 = vand.u32 4294901760, %v4085_v27  ;;  %v7722_v56 = vsub.f32 %v3994_v22, %v7707_v12 }
 0x31a   : > { %4212 = vmatpush.msrb.mxu1 %v7557_v11  ;;  %4022 = vmatpush.msrb.mxu2 %v7598_v57 }
 0x31b   : > { %4167 = vmatpush.msrb.mxu0 %v7602_v7  ;;  %4081 = vmatpush.msrb.mxu3 %v4080_v6  ;;  %v4126_v62 = vand.u32 4294901760, %v7722_v56 }
 0x31c   : > { %4214 = vmatpush.msrb.mxu1 %v7572_v50  ;;  %4024 = vmatpush.msrb.mxu2 %v7612_v4 }
 0x31d   : > { %4170 = vmatpush.msrb.mxu0 %v7610_v39  ;;  %4087 = vmatpush.msrb.mxu3 %v4086_v20 }
 0x31e   : > { %4216 = vmatpush.msrb.mxu1 %v7589_v47  ;;  %4026 = vmatpush.msrb.mxu2 %v7628_v1 }
 0x31f   : > { %4173 = vmatpush.msrb.mxu0 %v7626_v48  ;;  %4093 = vmatpush.msrb.mxu3 %v4092_v13 }
 0x320   : > { %4218 = vmatpush.msrb.mxu1 %v7598_v57  ;;  %4028 = vmatpush.msrb.mxu2 %v7646_v14 }
 0x321   : > { %4176 = vmatpush.msrb.mxu0 %v7644_v49  ;;  %4099 = vmatpush.msrb.mxu3 %v4098_v24  ;;  %v4127_v24 = vsub.f32 %v7722_v56, %v4126_v62 }
 0x322   : > { %4220 = vmatpush.msrb.mxu1 %v7612_v4  ;;  %4030 = vmatpush.msrb.mxu2 %v7662_v59 }
 0x323   : > { %4179 = vmatpush.msrb.mxu0 %v7658_v0  ;;  %4105 = vmatpush.msrb.mxu3 %v4104_v21  ;;  %v4128_v44 = vand.u32 4294901760, %v4127_v24 }
 0x324   : > { %4222 = vmatpush.msrb.mxu1 %v7628_v1  ;;  %4032 = vmatpush.msrb.mxu2 %v7672_v51 }
 0x325   : > { %4182 = vmatpush.msrb.mxu0 %v7677_v41  ;;  %4111 = vmatpush.msrb.mxu3 %v4110_v36 }
 0x326   : > { %4224 = vmatpush.msrb.mxu1 %v7646_v14  ;;  %4034 = vmatpush.msrb.mxu2 %v7689_v55 }
 0x327   : > { %4185 = vmatpush.msrb.mxu0 %v7687_v17 }
 0x328   : > { %4226 = vmatpush.msrb.mxu1 %v7662_v59  ;;  %4036 = vmatpush.msrb.mxu2 %v7707_v12 }
 0x329   : > { %4188 = vmatpush.msrb.mxu0 %v7700_v30 }
 0x32a   : > { %4228 = vmatpush.msrb.mxu1 %v7672_v51 }
 0x32b   : > { %4191 = vmatpush.msrb.mxu0 %v7722_v56 }
 0x32c   : > { %4230 = vmatpush.msrb.mxu1 %v7689_v55 }
 0x32e   : > { %4232 = vmatpush.msrb.mxu1 %v7707_v12 }
 0x37a   : > { %v3568_v45 = vpop.f32.mrf.mxu0 }
 0x37c   : > { %v3653_v26 = vpop.f32.mrf.mxu2 }
 0x37d   : > { %v3619_v52 = vpop.f32.mrf.mxu1 }
 0x37e   : > { %v3620_v16 = vadd.f32 %v3619_v52, %v3568_v45  ;;  %v3682_v63 = vpop.f32.mrf.mxu3  ;;  %v4120_v45 = vand.u32 4294901760, %v7700_v30  ;;  %v3992_v52 = vld [vmem:[%s8155_s9 + $0x8] sm:$0xff] }
 0x380   : > { %v3654_v58 = vadd.f32 %v3653_v26, %v3620_v16  ;;  %v7717_v26 = vand.u32 4294901760, %v3993_v54  ;;  %v4116_v16 = vand.u32 4294901760, %v4115_v53  ;;  %v4121_v6 = vsub.f32 %v7700_v30, %v4120_v45 }
 0x382   : > { %v3683_v46 = vadd.f32 %v3682_v63, %v3654_v58  ;;  %v7732_v42 = vsub.f32 %v3993_v54, %v7717_v26  ;;  %v7734_v63 = vand.u32 4294901760, %v3992_v52  ;;  %v3991_v58 = vld [vmem:[%s8155_s9] sm:$0xff]  ;;  %4038 = vmatpush.msrb.mxu2 %v7717_v26  ;;  %v4122_v13 = vand.u32 4294901760, %v4121_v6  ;;  %4234 = vmatpush.msrb.mxu1 %v7717_v26 }
 0x383   : > { %4117 = vmatpush.msrb.mxu3 %v4116_v16  ;;  %v7752_v33 = vand.u32 4294901760, %v3991_v58 }
 0x384   : > { %v3721_v43 = vpop.f32.mrf.mxu0  ;;  %v4132_v32 = vand.u32 4294901760, %v7732_v42  ;;  %v7745_v8 = vsub.f32 %v3992_v52, %v7734_v63  ;;  %4040 = vmatpush.msrb.mxu2 %v7734_v63  ;;  %4194 = vmatpush.msrb.mxu0 %v7732_v42 }
 0x385   : > { %v3722_v28 = vadd.f32 %v3721_v43, %v3683_v46  ;;  %4236 = vmatpush.msrb.mxu1 %v7734_v63  ;;  %4123 = vmatpush.msrb.mxu3 %v4122_v13  ;;  %v7762_v54 = vsub.f32 %v3991_v58, %v7752_v33 }
 0x386   : > { %v3781_v23 = vpop.f32.mrf.mxu2  ;;  %v4133_v22 = vsub.f32 %v7732_v42, %v4132_v32  ;;  %v4138_v43 = vand.u32 4294901760, %v7745_v8  ;;  %4042 = vmatpush.msrb.mxu2 %v7752_v33  ;;  %4197 = vmatpush.msrb.mxu0 %v7745_v8 }
 0x387   : > { %4129 = vmatpush.msrb.mxu3 %v4128_v44  ;;  %v4144_v36 = vand.u32 4294901760, %v7762_v54  ;;  %4238 = vmatpush.msrb.mxu1 %v7752_v33  ;;  %v4409_v44 = vld [vmem:[%s8159_s13 + $0x68] sm:$0xff] }
 0x388   : > { %4249 = vmatpush.msra.mxu2 %v4054_v9  ;;  %4200 = vmatpush.msrb.mxu0 %v7762_v54 }
 0x389   : > { %v3822_v27 = vpop.f32.mrf.mxu3  ;;  %v4145_v35 = vsub.f32 %v7762_v54, %v4144_v36 }
 0x38a   : > { %v3748_v20 = vpop.f32.mrf.mxu1  ;;  %4253 = vmatpush.msra.mxu2 %v4060_v2 }
 0x38b   : > { %v3749_v19 = vadd.f32 %v3748_v20, %v3722_v28  ;;  %v4139_v28 = vsub.f32 %v7745_v8, %v4138_v43  ;;  %v3521_v20 = vlaneseq }
 0x38c   : > { %4257 = vmatpush.msra.mxu2 %v4066_v10 }
 0x38d   : > { %v3782_v46 = vadd.f32 %v3781_v23, %v3749_v19  ;;  %v4134_v23 = vand.u32 4294901760, %v4133_v22  ;;  %v4140_v6 = vand.u32 4294901760, %v4139_v28  ;;  %v4146_v19 = vand.u32 4294901760, %v4145_v35  ;;  %v4410_v22 = vld [vmem:[%s8159_s13 + $0x70] sm:$0xff]  ;;  %v4408_v28 = vld [vmem:[%s8159_s13 + $0x60] sm:$0xff] }
 0x38e   : > { %v3852_v21 = vpop.f32.mrf.mxu2  ;;  %4261 = vmatpush.msra.mxu2 %v4072_v61  ;;  %v7786_v2 = vshrl.u32 %v3521_v20, 7 }
 0x38f   : > { %v3823_v53 = vadd.f32 %v3822_v27, %v3782_v46  ;;  %v3912_v27 = vpop.f32.mrf.mxu0  ;;  %4135 = vmatpush.msrb.mxu3 %v4134_v23  ;;  %v7859_v23 = vand.u32 4294901760, %v4409_v44 }
 0x390   : > { %4265 = vmatpush.msra.mxu2 %v4078_v25  ;;  %vm3523_vm14 = vcmp.lt.s32.totalorder %v7786_v2, 6 }
 0x391   : > { %v3853_v52 = vadd.f32 %v3852_v21, %v3823_v53  ;;  %v3879_v16 = vpop.f32.mrf.mxu3  ;;  %4141 = vmatpush.msrb.mxu3 %v4140_v6  ;;  %v7848_v21 = vand.u32 4294901760, %v4410_v22  ;;  %v7874_v6 = vand.u32 4294901760, %v4408_v28 }
 0x392   : > { %v3937_v58 = vpop.f32.mrf.mxu1  ;;  %4269 = vmatpush.msra.mxu2 %v4084_v15 }
 0x393   : > { %v3880_v9 = vadd.f32 %v3879_v16, %v3853_v52  ;;  %4147 = vmatpush.msrb.mxu3 %v4146_v19  ;;  %v7857_v53 = vsub.f32 %v4410_v22, %v7848_v21  ;;  %v7872_v16 = vsub.f32 %v4409_v44, %v7859_v23 }
 0x394   : > { %4273 = vmatpush.msra.mxu2 %v4090_v3 }
 0x395   : > { %v3913_v13 = vadd.f32 %v3912_v27, %v3880_v9  ;;  %4316 = vmatpush.msra.mxu3 %v7538_v40  ;;  %v4465_v52 = vand.u32 4294901760, %v7857_v53  ;;  %v4407_v27 = vld [vmem:[%s8159_s13 + $0x58] sm:$0xff]  ;;  %v4471_v20 = vand.u32 4294901760, %v7872_v16 }
 0x396   : > { %4277 = vmatpush.msra.mxu2 %v4096_v38  ;;  %v7891_v19 = vand.u32 4294901760, %v4407_v27 }
 0x397   : > { %v3938_v24 = vadd.f32 %v3937_v58, %v3913_v13  ;;  %4318 = vmatpush.msra.mxu3 %v7546_v5  ;;  %v4466_v9 = vsub.f32 %v7857_v53, %v4465_v52  ;;  %v7887_v58 = vsub.f32 %v4408_v28, %v7874_v6  ;;  %v4406_v13 = vld [vmem:[%s8159_s13 + $0x50] sm:$0xff] }
 0x398   : > { %4281 = vmatpush.msra.mxu2 %v4102_v29 }
 0x399   : > { %v3944_v60 = vadd.f32 %v4906_v18, %v3938_v24  ;;  %4320 = vmatpush.msra.mxu3 %v7557_v11  ;;  %v4467_v18 = vand.u32 4294901760, %v4466_v9  ;;  %v4472_v24 = vsub.f32 %v7872_v16, %v4471_v20 }
 0x39a   : > { %4285 = vmatpush.msra.mxu2 %v4108_v37 }
 0x39b   : > { %vm3945_vm15 = vcmp.gt.f32.partialorder %v3944_v60, 0.0  ;;  %v3946_v10 = vmul.f32 0.01, %v3944_v60  ;;  %4322 = vmatpush.msra.mxu3 %v7572_v50 }
 0x39c   : > { %4289 = vmatpush.msra.mxu2 %v4114_v31  ;;  %v4907_v31 = vld [vmem:[%s8153_s7] ss:$0 sm:$0xff] }
 0x39d   : > { %v3947_v34 = vsel %vm3945_vm15, %v3944_v60, %v3946_v10  ;;  %4324 = vmatpush.msra.mxu3 %v7589_v47  ;;  %v4477_v60 = vand.u32 4294901760, %v7887_v58  ;;  %v7901_v10 = vand.u32 4294901760, %v4406_v13 }
 0x39e   : > { %v3950_v40 = vsel %vm3523_vm14, %v3947_v34, 0.0  ;;  %4293 = vmatpush.msra.mxu2 %v4120_v45  ;;  %v4908_v45 = vld [vmem:[%s8154_s8] ss:$0 sm:$0xff] }
 0x39f   : > { %v3951_v5 = vrot.slane %v3950_v40, 4  ;;  %v3958_v61 = vmul.f32 %v3950_v40, %v3950_v40  ;;  %4326 = vmatpush.msra.mxu3 %v7598_v57 }
 0x3a0   : > { %4297 = vmatpush.msra.mxu2 %v4126_v62 }
 0x3a1   : > { %v3952_v11 = vadd.f32 %v3951_v5, %v3950_v40  ;;  %v3959_v7 = vrot.slane %v3958_v61, 4  ;;  %4328 = vmatpush.msra.mxu3 %v7612_v4  ;;  %v4405_v40 = vld [vmem:[%s8159_s13 + $0x48] sm:$0xff]  ;;  %v4473_v5 = vand.u32 4294901760, %v4472_v24 }
 0x3a2   : > { %4301 = vmatpush.msra.mxu2 %v4132_v32 }
 0x3a3   : > { %v3953_v50 = vrot.slane %v3952_v11, 2  ;;  %v3960_v39 = vadd.f32 %v3959_v7, %v3958_v61  ;;  %4330 = vmatpush.msra.mxu3 %v7628_v1  ;;  %v4478_v61 = vsub.f32 %v7887_v58, %v4477_v60  ;;  %v7918_v7 = vand.u32 4294901760, %v4405_v40 }
 0x3a4   : > { %4305 = vmatpush.msra.mxu2 %v4138_v43 }
 0x3a5   : > { %v3954_v25 = vadd.f32 %v3953_v50, %v3952_v11  ;;  %v3961_v15 = vrot.slane %v3960_v39, 2  ;;  %4332 = vmatpush.msra.mxu3 %v7646_v14  ;;  %v7916_v11 = vsub.f32 %v4406_v13, %v7901_v10 }
 0x3a6   : > { %4309 = vmatpush.msra.mxu2 %v4144_v36 }
 0x3a7   : > { %v3955_v47 = vrot.slane %v3954_v25, 1  ;;  %v3962_v48 = vadd.f32 %v3961_v15, %v3960_v39  ;;  %4334 = vmatpush.msra.mxu3 %v7662_v59  ;;  %v4404_v39 = vld [vmem:[%s8159_s13 + $0x40] sm:$0xff]  ;;  %v4489_v15 = vand.u32 4294901760, %v7916_v11 }
 0x3a9   : > { %v3956_v57 = vadd.f32 %v3955_v47, %v3954_v25  ;;  %v3963_v3 = vrot.slane %v3962_v48, 1  ;;  %4336 = vmatpush.msra.mxu3 %v7672_v51  ;;  %v4479_v25 = vand.u32 4294901760, %v4478_v61  ;;  %v7928_v47 = vsub.f32 %v4405_v40, %v7918_v7  ;;  %v4397_v40 = vld [vmem:[%s8159_s13 + $0x8] sm:$0xff] }
 0x3ab   : > { %v3957_v4 = vmul.f32 0.16666667, %v3956_v57  ;;  %v3964_v49 = vadd.f32 %v3963_v3, %v3962_v48  ;;  %4338 = vmatpush.msra.mxu3 %v7689_v55  ;;  %v7930_v48 = vand.u32 4294901760, %v4404_v39  ;;  %v4403_v3 = vld [vmem:[%s8159_s13 + $0x38] sm:$0xff] }
 0x3ad   : > { %v3965_v1 = vmul.f32 0.16666667, %v3964_v49  ;;  %v3966_v38 = vmul.f32 %v3957_v4, %v3957_v4  ;;  %4340 = vmatpush.msra.mxu3 %v7707_v12  ;;  %v3968_v37 = vsub.f32 %v3947_v34, %v3957_v4  ;;  %v7905_v34 = vsub.f32 %v4407_v27, %v7891_v19  ;;  %v4398_v27 = vld [vmem:[%s8159_s13 + $0x10] sm:$0xff] }
 0x3ae   : > { %v4490_v4 = vsub.f32 %v7916_v11, %v4489_v15  ;;  %v4495_v49 = vand.u32 4294901760, %v7928_v47 }
 0x3af   : > { %v3967_v14 = vsub.f32 %v3965_v1, %v3966_v38  ;;  %4342 = vmatpush.msra.mxu3 %v7717_v26  ;;  %v4483_v50 = vand.u32 4294901760, %v7905_v34  ;;  %v7946_v1 = vsub.f32 %v4404_v39, %v7930_v48  ;;  %v7948_v38 = vand.u32 4294901760, %v4403_v3 }
 0x3b1   : > { %v3969_v0 = vadd.f32 1e-05, %v3967_v14  ;;  %4344 = vmatpush.msra.mxu3 %v7734_v63  ;;  %v4484_v57 = vsub.f32 %v7905_v34, %v4483_v50 }
 0x3b3   : > { %4913 = vrsqrt.f32 %v3969_v0  ;;  %4346 = vmatpush.msra.mxu3 %v7752_v33  ;;  %vm3976_vm1 = vweird.f32 %v3969_v0  ;;  %v4411_v33 = vld [vmem:[%s8159_s13 + $0x78] sm:$0xff]  ;;  %v4485_v14 = vand.u32 4294901760, %v4484_v57  ;;  %v8039_v57 = vand.u32 4294901760, %v4397_v40 }
 0x3b4   : > { %v7840_v46 = vand.u32 4294901760, %v4411_v33 }
 0x3b6   : > { %v7846_v43 = vsub.f32 %v4411_v33, %v7840_v46  ;;  %4417 = vmatpush.msra.mxu0 %v7840_v46 }
 0x3b8   : > { %v4459_v54 = vand.u32 4294901760, %v7846_v43  ;;  %4419 = vmatpush.msra.mxu0 %v7848_v21 }
 0x3b9   : > { %v4914_v59 = vpop.eup %4913 }
 0x3ba   : > { %v3971_v29 = vmul.f32 %v4914_v59, %v3969_v0  ;;  %vm3977_vm0 = vweird.f32 %v4914_v59  ;;  %v4460_v36 = vsub.f32 %v7846_v43, %v4459_v54  ;;  %4421 = vmatpush.msra.mxu0 %v7859_v23  ;;  %v4402_v0 = vld [vmem:[%s8159_s13 + $0x30] sm:$0xff] }
 0x3bb   : > { %vm3978_vm2 = vmor %vm3976_vm1, %vm3977_vm0 }
 0x3bc   : > { %v3972_v51 = vmul.f32 %v4914_v59, %v3971_v29  ;;  %v4461_v35 = vand.u32 4294901760, %v4460_v36  ;;  %4423 = vmatpush.msra.mxu0 %v7874_v6  ;;  %v4496_v29 = vsub.f32 %v7928_v47, %v4495_v49 }
 0x3be   : > { %v3973_v41 = vmul.f32 0.5, %v3972_v51  ;;  %4462 = vmatpush.msra.mxu1 %v4461_v35  ;;  %4425 = vmatpush.msra.mxu0 %v7891_v19  ;;  %v4501_v51 = vand.u32 4294901760, %v7946_v1 }
 0x3c0   : > { %v3974_v17 = vsub.f32 1.5, %v3973_v41  ;;  %4468 = vmatpush.msra.mxu1 %v4467_v18  ;;  %4427 = vmatpush.msra.mxu0 %v7901_v10  ;;  %v7961_v41 = vsub.f32 %v4403_v3, %v7948_v38  ;;  %v8022_v18 = vand.u32 4294901760, %v4398_v27  ;;  %v4396_v3 = vld [vmem:[%s8159_s13] sm:$0xff] }
 0x3c2   : > { %v3975_v55 = vmul.f32 %v4914_v59, %v3974_v17  ;;  %4474 = vmatpush.msra.mxu1 %v4473_v5  ;;  %4429 = vmatpush.msra.mxu0 %v7918_v7  ;;  %v7964_v17 = vand.u32 4294901760, %v4402_v0 }
 0x3c4   : > { %v3979_v30 = vsel %vm3978_vm2, %v4914_v59, %v3975_v55  ;;  %4480 = vmatpush.msra.mxu1 %v4479_v25  ;;  %4431 = vmatpush.msra.mxu0 %v7930_v48  ;;  %v4491_v59 = vand.u32 4294901760, %v4490_v4  ;;  %v4401_v55 = vld [vmem:[%s8159_s13 + $0x28] sm:$0xff]  ;;  %v8035_v25 = vsub.f32 %v4398_v27, %v8022_v18  ;;  %v4909_v4 = vld [vmem:[%s8156_s10] ss:$0 sm:$0xff] }
 0x3c5   : > { %v3980_v12 = vmul.f32 %v3979_v30, %v3968_v37  ;;  %v4497_v37 = vand.u32 4294901760, %v4496_v29  ;;  %v4507_v30 = vand.u32 4294901760, %v7961_v41  ;;  %v8052_v29 = vand.u32 4294901760, %v4396_v3 }
 0x3c6   : > { %4486 = vmatpush.msra.mxu1 %v4485_v14  ;;  %4433 = vmatpush.msra.mxu0 %v7948_v38 }
 0x3c7   : > { %v3985_v26 = vmul.f32 %v4907_v31, %v3980_v12  ;;  %v4502_v31 = vsub.f32 %v7946_v1, %v4501_v51  ;;  %v7974_v12 = vand.u32 4294901760, %v4401_v55 }
 0x3c8   : > { %4492 = vmatpush.msra.mxu1 %v4491_v59  ;;  %4435 = vmatpush.msra.mxu0 %v7964_v17  ;;  %v4537_v59 = vand.u32 4294901760, %v8035_v25 }
 0x3c9   : > { %v3990_v56 = vadd.f32 %v4908_v45, %v3985_v26  ;;  %v7979_v45 = vsub.f32 %v4402_v0, %v7964_v17  ;;  %v4400_v26 = vld [vmem:[%s8159_s13 + $0x20] sm:$0xff] }
 0x3ca   : > { %4498 = vmatpush.msra.mxu1 %v4497_v37  ;;  %4437 = vmatpush.msra.mxu0 %v7974_v12 }
 0x3cb   : > { %v4043_v42 = vand.u32 4294901760, %v3990_v56 }
 0x3cd   : > { %4149 = vmatmul.f32.vlgmr.msrb.gmra.mxu3 %v4043_v42  ;;  %v4044_v63 = vsub.f32 %v3990_v56, %v4043_v42  ;;  %v4503_v56 = vand.u32 4294901760, %v4502_v31  ;;  %v4538_v31 = vsub.f32 %v8035_v25, %v4537_v59 }
 0x3ce   : > { %4613 = vmatpush.msrb.mxu3 %v7840_v46 }
 0x3cf   : > { %4203 = vmatmul.f32.vlgmr.msrb.gmra.mxu0 %v4044_v63  ;;  %v4045_v62 = vand.u32 4294901760, %v4044_v63  ;;  %4504 = vmatpush.msra.mxu1 %v4503_v56 }
 0x3d0   : > { %4615 = vmatpush.msrb.mxu3 %v7848_v21 }
 0x3d1   : > { %4242 = vmatmul.f32.vlgmr.msrb.gmra.mxu1 %v4045_v62  ;;  %v4046_v32 = vsub.f32 %v4044_v63, %v4045_v62  ;;  %v7989_v63 = vsub.f32 %v4401_v55, %v7974_v12  ;;  %v7991_v62 = vand.u32 4294901760, %v4400_v26  ;;  %v8057_v55 = vsub.f32 %v4397_v40, %v8039_v57 }
 0x3d2   : > { %4617 = vmatpush.msrb.mxu3 %v7859_v23 }
 0x3d3   : > { %v4047_v8 = vand.u32 4294901760, %v4046_v32  ;;  %v4513_v32 = vand.u32 4294901760, %v7979_v45  ;;  %v4519_v22 = vand.u32 4294901760, %v7989_v63  ;;  %v8002_v44 = vsub.f32 %v4400_v26, %v7991_v62  ;;  %4439 = vmatpush.msra.mxu0 %v7991_v62 }
 0x3d4   : > { %4619 = vmatpush.msrb.mxu3 %v7874_v6  ;;  %v8064_v26 = vsub.f32 %v4396_v3, %v8052_v29 }
 0x3d5   : > { %4048 = vmatmul.f32.vlgmr.msrb.gmra.mxu2 %v4047_v8  ;;  %4348 = vmatmul.f32.vlgmr.msra.gmra.mxu3 %v4043_v42  ;;  %v4399_v8 = vld [vmem:[%s8159_s13 + $0x18] sm:$0xff]  ;;  %v4514_v36 = vsub.f32 %v7979_v45, %v4513_v32  ;;  %v4520_v35 = vsub.f32 %v7989_v63, %v4519_v22  ;;  %v4525_v9 = vand.u32 4294901760, %v8002_v44 }
 0x3d6   : > { %4560 = vmatpush.msrb.mxu2 %v7846_v43  ;;  %4621 = vmatpush.msrb.mxu3 %v7891_v19  ;;  %v8004_v28 = vand.u32 4294901760, %v4399_v8  ;;  %v4549_v27 = vand.u32 4294901760, %v8064_v26 }
 0x3d7   : > { %v4515_v24 = vand.u32 4294901760, %v4514_v36  ;;  %v4521_v5 = vand.u32 4294901760, %v4520_v35  ;;  %v4526_v61 = vsub.f32 %v8002_v44, %v4525_v9  ;;  %v4539_v36 = vand.u32 4294901760, %v4538_v31 }
 0x3d8   : > { %4563 = vmatpush.msrb.mxu2 %v7857_v53  ;;  %4623 = vmatpush.msrb.mxu3 %v7901_v10  ;;  %v8020_v13 = vsub.f32 %v4399_v8, %v8004_v28  ;;  %v4543_v8 = vand.u32 4294901760, %v8057_v55  ;;  %v4550_v40 = vsub.f32 %v8064_v26, %v4549_v27 }
 0x3d9   : > { %4441 = vmatpush.msra.mxu0 %v8004_v28  ;;  %v4527_v14 = vand.u32 4294901760, %v4526_v61 }
 0x3da   : > { %4566 = vmatpush.msrb.mxu2 %v7872_v16  ;;  %4625 = vmatpush.msrb.mxu3 %v7918_v7  ;;  %v4531_v39 = vand.u32 4294901760, %v8020_v13  ;;  %v4544_v35 = vsub.f32 %v8057_v55, %v4543_v8  ;;  %v4551_v61 = vand.u32 4294901760, %v4550_v40 }
 0x3db   : > { %4443 = vmatpush.msra.mxu0 %v8022_v18 }
 0x3dc   : > { %4569 = vmatpush.msrb.mxu2 %v7887_v58  ;;  %4627 = vmatpush.msrb.mxu3 %v7930_v48  ;;  %v4532_v0 = vsub.f32 %v8020_v13, %v4531_v39 }
 0x3dd   : > { %4311 = vmatmul.f32.vlgmr.msra.gmra.mxu2 %v4043_v42  ;;  %v4508_v42 = vsub.f32 %v7961_v41, %v4507_v30  ;;  %4445 = vmatpush.msra.mxu0 %v8039_v57 }
 0x3de   : > { %4572 = vmatpush.msrb.mxu2 %v7905_v34  ;;  %4629 = vmatpush.msrb.mxu3 %v7948_v38  ;;  %v4533_v37 = vand.u32 4294901760, %v4532_v0 }
 0x3df   : > { %v4509_v33 = vand.u32 4294901760, %v4508_v42  ;;  %4447 = vmatpush.msra.mxu0 %v8052_v29 }
 0x3e0   : > { %4575 = vmatpush.msrb.mxu2 %v7916_v11  ;;  %4631 = vmatpush.msrb.mxu3 %v7964_v17 }
 0x3e1   : > { %4510 = vmatpush.msra.mxu1 %v4509_v33  ;;  %4654 = vmatpush.msrb.mxu0 %v4459_v54  ;;  %v4545_v54 = vand.u32 4294901760, %v4544_v35 }
 0x3e2   : > { %4578 = vmatpush.msrb.mxu2 %v7928_v47  ;;  %4633 = vmatpush.msrb.mxu3 %v7974_v12 }
 0x3e3   : > { %4516 = vmatpush.msra.mxu1 %v4515_v24  ;;  %4658 = vmatpush.msrb.mxu0 %v4465_v52 }
 0x3e4   : > { %4581 = vmatpush.msrb.mxu2 %v7946_v1  ;;  %4635 = vmatpush.msrb.mxu3 %v7991_v62 }
 0x3e5   : > { %4522 = vmatpush.msra.mxu1 %v4521_v5  ;;  %4662 = vmatpush.msrb.mxu0 %v4471_v20 }
 0x3e6   : > { %4584 = vmatpush.msrb.mxu2 %v7961_v41  ;;  %4637 = vmatpush.msrb.mxu3 %v8004_v28 }
 0x3e7   : > { %4528 = vmatpush.msra.mxu1 %v4527_v14  ;;  %4666 = vmatpush.msrb.mxu0 %v4477_v60 }
 0x3e8   : > { %4587 = vmatpush.msrb.mxu2 %v7979_v45  ;;  %4639 = vmatpush.msrb.mxu3 %v8022_v18 }
 0x3e9   : > { %4534 = vmatpush.msra.mxu1 %v4533_v37  ;;  %4670 = vmatpush.msrb.mxu0 %v4483_v50 }
 0x3ea   : > { %4590 = vmatpush.msrb.mxu2 %v7989_v63  ;;  %4641 = vmatpush.msrb.mxu3 %v8039_v57 }
 0x3eb   : > { %4540 = vmatpush.msra.mxu1 %v4539_v36  ;;  %4674 = vmatpush.msrb.mxu0 %v4489_v15 }
 0x3ec   : > { %4593 = vmatpush.msrb.mxu2 %v8002_v44  ;;  %4643 = vmatpush.msrb.mxu3 %v8052_v29  ;;  %v4911_v44 = vld [vmem:[%s8441_s28] ss:$0 sm:$0xff] }
 0x3ed   : > { %4546 = vmatpush.msra.mxu1 %v4545_v54  ;;  %4678 = vmatpush.msrb.mxu0 %v4495_v49 }
 0x3ee   : > { %4596 = vmatpush.msrb.mxu2 %v8020_v13 }
 0x3ef   : > { %4552 = vmatpush.msra.mxu1 %v4551_v61  ;;  %4682 = vmatpush.msrb.mxu0 %v4501_v51 }
 0x3f0   : > { %4599 = vmatpush.msrb.mxu2 %v8035_v25 }
 0x3f1   : > { %4721 = vmatpush.msrb.mxu1 %v7840_v46  ;;  %4686 = vmatpush.msrb.mxu0 %v4507_v30 }
 0x3f2   : > { %4602 = vmatpush.msrb.mxu2 %v8057_v55 }
 0x3f3   : > { %4723 = vmatpush.msrb.mxu1 %v7848_v21  ;;  %4690 = vmatpush.msrb.mxu0 %v4513_v32 }
 0x3f4   : > { %4605 = vmatpush.msrb.mxu2 %v8064_v26 }
 0x3f5   : > { %4725 = vmatpush.msrb.mxu1 %v7859_v23  ;;  %4694 = vmatpush.msrb.mxu0 %v4519_v22 }
 0x3f7   : > { %4727 = vmatpush.msrb.mxu1 %v7874_v6  ;;  %4698 = vmatpush.msrb.mxu0 %v4525_v9 }
 0x3f9   : > { %4729 = vmatpush.msrb.mxu1 %v7891_v19  ;;  %4702 = vmatpush.msrb.mxu0 %v4531_v39 }
 0x3fb   : > { %4731 = vmatpush.msrb.mxu1 %v7901_v10  ;;  %4706 = vmatpush.msrb.mxu0 %v4537_v59  ;;  %v4912_v59 = vld [vmem:[%s8442_s16] ss:$0 sm:$0xff] }
 0x3fd   : > { %4733 = vmatpush.msrb.mxu1 %v7918_v7  ;;  %4710 = vmatpush.msrb.mxu0 %v4543_v8 }
 0x3ff   : > { %4735 = vmatpush.msrb.mxu1 %v7930_v48  ;;  %4714 = vmatpush.msrb.mxu0 %v4549_v27 }
 0x401   : > { %4737 = vmatpush.msrb.mxu1 %v7948_v38 }
 0x403   : > { %4739 = vmatpush.msrb.mxu1 %v7964_v17 }
 0x405   : > { %4741 = vmatpush.msrb.mxu1 %v7974_v12 }
 0x407   : > { %4743 = vmatpush.msrb.mxu1 %v7991_v62  ;;  %v4910_v62 = vld [vmem:[%s8440_s24] ss:$0 sm:$0xff] }
 0x409   : > { %4745 = vmatpush.msrb.mxu1 %v8004_v28 }
 0x40b   : > { %4747 = vmatpush.msrb.mxu1 %v8022_v18 }
 0x40d   : > { %4749 = vmatpush.msrb.mxu1 %v8039_v57 }
 0x40f   : > { %4751 = vmatpush.msrb.mxu1 %v8052_v29 }
 0x44c   : > { %v4204_v43 = vpop.f32.mrf.mxu0 }
 0x44e   : > { %v4243_v3 = vpop.f32.mrf.mxu1 }
 0x450   : > { %v4150_v56 = vpop.f32.mrf.mxu3 }
 0x458   : > { %v4049_v42 = vpop.f32.mrf.mxu2  ;;  %v4349_v52 = vpop.f32.mrf.mxu3 }
 0x459   : > { %v4050_v33 = vadd.f32 %v4909_v4, %v4049_v42 }
 0x45b   : > { %v4151_v24 = vadd.f32 %v4150_v56, %v4050_v33 }
 0x45d   : > { %v4205_v5 = vadd.f32 %v4204_v43, %v4151_v24 }
 0x45f   : > { %v4244_v4 = vadd.f32 %v4243_v3, %v4205_v5 }
 0x460   : > { %v4312_v14 = vpop.f32.mrf.mxu2 }
 0x461   : > { %v4313_v53 = vadd.f32 %v4312_v14, %v4244_v4 }
 0x463   : > { %v4350_v0 = vadd.f32 %v4349_v52, %v4313_v53 }
 0x465   : > { %vm4352_vm3 = vcmp.gt.f32.partialorder %v4350_v0, 0.0  ;;  %v4353_v16 = vmul.f32 0.01, %v4350_v0 }
 0x467   : > { %v4354_v20 = vsel %vm4352_vm3, %v4350_v0, %v4353_v16 }
 0x468   : > { %v4355_v46 = vsel %vm3523_vm14, %v4354_v20, 0.0 }
 0x469   : > { %v4356_v21 = vrot.slane %v4355_v46, 4  ;;  %v4363_v58 = vmul.f32 %v4355_v46, %v4355_v46 }
 0x46b   : > { %v4357_v23 = vadd.f32 %v4356_v21, %v4355_v46  ;;  %v4364_v60 = vrot.slane %v4363_v58, 4 }
 0x46d   : > { %v4358_v6 = vrot.slane %v4357_v23, 2  ;;  %v4365_v34 = vadd.f32 %v4364_v60, %v4363_v58 }
 0x46f   : > { %v4359_v2 = vadd.f32 %v4358_v6, %v4357_v23  ;;  %v4366_v11 = vrot.slane %v4365_v34, 2 }
 0x471   : > { %v4360_v19 = vrot.slane %v4359_v2, 1  ;;  %v4367_v50 = vadd.f32 %v4366_v11, %v4365_v34 }
 0x473   : > { %v4361_v10 = vadd.f32 %v4360_v19, %v4359_v2  ;;  %v4368_v15 = vrot.slane %v4367_v50, 1 }
 0x475   : > { %v4362_v7 = vmul.f32 0.16666667, %v4361_v10  ;;  %v4369_v47 = vadd.f32 %v4368_v15, %v4367_v50 }
 0x477   : > { %v4370_v48 = vmul.f32 0.16666667, %v4369_v47  ;;  %v4371_v49 = vmul.f32 %v4362_v7, %v4362_v7  ;;  %v4373_v63 = vsub.f32 %v4354_v20, %v4362_v7 }
 0x479   : > { %v4372_v1 = vsub.f32 %v4370_v48, %v4371_v49 }
 0x47b   : > { %v4374_v38 = vadd.f32 1e-05, %v4372_v1 }
 0x47d   : > { %4915 = vrsqrt.f32 %v4374_v38  ;;  %vm4381_vm5 = vweird.f32 %v4374_v38 }
 0x483   : > { %v4916_v51 = vpop.eup %4915 }
 0x484   : > { %v4376_v41 = vmul.f32 %v4916_v51, %v4374_v38  ;;  %vm4382_vm4 = vweird.f32 %v4916_v51 }
 0x485   : > { %vm4383_vm6 = vmor %vm4381_vm5, %vm4382_vm4 }
 0x486   : > { %v4377_v17 = vmul.f32 %v4916_v51, %v4376_v41 }
 0x488   : > { %v4378_v30 = vmul.f32 0.5, %v4377_v17 }
 0x48a   : > { %v4379_v12 = vsub.f32 1.5, %v4378_v30 }
 0x48c   : > { %v4380_v45 = vmul.f32 %v4916_v51, %v4379_v12 }
 0x48e   : > { %v4384_v32 = vsel %vm4383_vm6, %v4916_v51, %v4380_v45 }
 0x48f   : > { %v4385_v22 = vmul.f32 %v4384_v32, %v4373_v63 }
 0x491   : > { %v4390_v28 = vmul.f32 %v4910_v62, %v4385_v22 }
 0x493   : > { %v4395_v9 = vadd.f32 %v4911_v44, %v4390_v28 }
 0x495   : > { %v4448_v13 = vand.u32 4294901760, %v4395_v9 }
 0x497   : > { %4554 = vmatmul.f32.vlgmr.msra.gmra.mxu1 %v4448_v13  ;;  %v4449_v18 = vsub.f32 %v4395_v9, %v4448_v13 }
 0x499   : > { %4608 = vmatmul.f32.vlgmr.msrb.gmra.mxu2 %v4449_v18  ;;  %v4450_v39 = vand.u32 4294901760, %v4449_v18 }
 0x49b   : > { %4647 = vmatmul.f32.vlgmr.msrb.gmra.mxu3 %v4450_v39  ;;  %v4451_v25 = vsub.f32 %v4449_v18, %v4450_v39 }
 0x49d   : > { %v4452_v57 = vand.u32 4294901760, %v4451_v25 }
 0x49f   : > { %4453 = vmatmul.f32.vlgmr.msra.gmra.mxu0 %v4452_v57  ;;  %4753 = vmatmul.f32.vlgmr.msrb.gmra.mxu1 %v4448_v13 }
 0x4a7   : > { %4716 = vmatmul.f32.vlgmr.msrb.gmra.mxu0 %v4448_v13 }
 0x514   : > { %v4555_v29 = vpop.f32.mrf.mxu1 }
 0x51c   : > { %v4454_v55 = vpop.f32.mrf.mxu0  ;;  %v4609_v26 = vpop.f32.mrf.mxu2 }
 0x51d   : > { %v4455_v37 = vadd.f32 %v4912_v59, %v4454_v55  ;;  %v4754_v27 = vpop.f32.mrf.mxu1 }
 0x51e   : > { %v4648_v42 = vpop.f32.mrf.mxu3 }
 0x51f   : > { %v4556_v31 = vadd.f32 %v4555_v29, %v4455_v37 }
 0x521   : > { %v4610_v56 = vadd.f32 %v4609_v26, %v4556_v31 }
 0x523   : > { %v4649_v8 = vadd.f32 %v4648_v42, %v4610_v56 }
 0x524   : > { %v4717_v33 = vpop.f32.mrf.mxu0 }
 0x525   : > { %v4718_v36 = vadd.f32 %v4717_v33, %v4649_v8 }
 0x527   : > { %v4755_v35 = vadd.f32 %v4754_v27, %v4718_v36 }
 0x529   : > { %4757 = vst [vmem:[#allocation4] sm:$0xff] %v4755_v35 }
 0x52a PF: > { %p4890_p13 = scmp.eq.s32.totalorder %s5049_s19, 4  ;;  %s4962_s17 = smov [#allocation4]  }
 0x52b   : > { %s4764_s20 = sshll.u32 %s4962_s17, 4  ;;  %s8443_s12 = sld [smem:[#allocation19_spill]]  ;;  %s4765_s20 = int_to_ptr.vmem [resolvable:$true] %s4764_s20 }
 0x531   : > { %s4766_s14 = sshll.u32 %s8443_s12, 4  ;;  %s4767_s14 = int_to_ptr.hbm [resolvable:$true] %s4766_s14 }
 0x532   : > { %4887 = dma.vmem_to_hbm [thread:$0]  (%p4890_p13), %s4765_s20, 128, %s4767_s14, [#allocation5]  }
 0x533   : > { %4950 = dma.done.wait (%p4890_p13), [#allocation5], 128  }
 0x534   : > { %4952 = vsyncadd (%p4890_p13), [#allocation5], 4294967168 }
 0x535 PF: > { %s8444_s15 = sld [smem:[#allocation7_spill]] }
 0x53b   : > { %s26_s18 = sadd.s32 1, %s8444_s15  }
 0x53c   : > { %p23_p0 = scmp.ge.s32.totalorder %s26_s18, 7  }
 0x53e   :  { %25 = sbr.rel (!%p23_p0) target bundleno = 6 (0x6), region = 132 }
 0x543   :  { %4780 = vsyncpa [#allocation5], 1 }
 0x544   :  { %4782 = vsyncpa [#allocation5 + $0x1], 1 }

</bundles_post_ra>
